<compile_context>
chip_gen: v6e
topology: v6e:2x2x1
jax: 0.10.0
libtpu: 0.0.40
codegen_flags: <defaults>
</compile_context>

<pallas_src>
import functools

import numpy as np
import jax
import jax.numpy as jnp
from jax.experimental import pallas as pl
from jax.experimental.pallas import tpu as pltpu


# ---------------------------------------------------------------------------
# Kernel helpers
# ---------------------------------------------------------------------------
def _layer_norm(x, g, b, eps=1e-5):
    mu = jnp.mean(x, axis=-1, keepdims=True)
    var = jnp.mean((x - mu) ** 2, axis=-1, keepdims=True)
    return (x - mu) * jax.lax.rsqrt(var + eps) * g + b


# ---------------------------------------------------------------------------
# Pallas kernel: one full DecoderLayer for one batch element per grid step.
# ---------------------------------------------------------------------------
def decoder_layer_kernel(
    # data
    trg_ref, enc_ref, tbias_ref, sbias_ref,
    # self-attention params (QKV fused; softmax scale folded into the Q columns)
    w_qkv1, b_qkv1, wo1, bo1, g1, be1,
    # encoder-attention params (KV fused; scale folded into wq2/bq2)
    wq2, bq2, w_kv2, b_kv2, wo2, bo2, g2, be2,
    # fused position-wise feed-forward: fc2(fc1(x)) == x @ (w1@w2) + (b1@w2 + b2)
    w_ff, b_ff, g3, be3,
    # outputs
    out_ref, attn_ref,
    *, n_heads, head_dim, compute_dtype,
):
    f32 = jnp.float32
    H = n_heads * head_dim

    x = trg_ref[0]        # (T, H) residual stream, f32
    e = enc_ref[0]        # (S, H)
    tbias = tbias_ref[0]  # (T, T) additive mask bias
    sbias = sbias_ref[0]  # (1, S) additive mask bias

    def mm(a, w_ref, b_ref):
        # bf16 operands on the MXU, f32 accumulation, f32 bias add.
        return jnp.dot(a.astype(compute_dtype), w_ref[...],
                       preferred_element_type=f32) + b_ref[...]

    if head_dim % 128 == 0:
        # Lane-aligned heads: (L, H) -> (L, n_heads, head_dim) is a pure lane regroup.
        def energy_fn(Q, K):
            return jnp.einsum('thd,shd->hts',
                              Q.reshape(-1, n_heads, head_dim),
                              K.reshape(-1, n_heads, head_dim),
                              preferred_element_type=f32)

        def context_fn(P, V):
            ctx = jnp.einsum('hts,shd->thd', P,
                             V.reshape(-1, n_heads, head_dim),
                             preferred_element_type=f32)
            return ctx.reshape(-1, H)
    else:
        # Tiny head_dim fallback: static lane slices + stack/concat (robust lowering).
        def split(m):
            return jnp.stack(
                [m[:, h * head_dim:(h + 1) * head_dim] for h in range(n_heads)], axis=0)

        def energy_fn(Q, K):
            return jnp.einsum('htd,hsd->hts', split(Q), split(K),
                              preferred_element_type=f32)

        def context_fn(P, V):
            ctx = jnp.einsum('hts,hsd->htd', P, split(V),
                             preferred_element_type=f32)
            return jnp.concatenate([ctx[h] for h in range(n_heads)], axis=-1)

    def mha(Q, K, V, bias):
        # 1/sqrt(head_dim) is already folded into the Q projection weights.
        Qc, Kc, Vc = (t.astype(compute_dtype) for t in (Q, K, V))
        energy = energy_fn(Qc, Kc) + bias[None]                    # (heads, Tq, Tk)
        energy = energy - jnp.max(energy, axis=-1, keepdims=True)
        p = jnp.exp(energy)
        p = p * pl.reciprocal(jnp.sum(p, axis=-1, keepdims=True), approx=True)
        return context_fn(p.astype(compute_dtype), Vc), p

    # --- self attention + residual + LayerNorm ---
    qkv = mm(x, w_qkv1, b_qkv1)                                    # (T, 3H)
    ctx, _ = mha(qkv[:, :H], qkv[:, H:2 * H], qkv[:, 2 * H:], tbias)
    x = _layer_norm(x + mm(ctx, wo1, bo1), g1[...], be1[...])

    # --- encoder attention + residual + LayerNorm (attention weights exported) ---
    q2 = mm(x, wq2, bq2)                                           # (T, H)
    kv = mm(e, w_kv2, b_kv2)                                       # (S, 2H)
    ctx, attn = mha(q2, kv[:, :H], kv[:, H:], sbias)
    x = _layer_norm(x + mm(ctx, wo2, bo2), g2[...], be2[...])
    attn_ref[0] = attn                                             # (n_heads, T, S)

    # --- fused position-wise feed-forward (no nonlinearity in the reference) ---
    x = _layer_norm(x + mm(x, w_ff, b_ff), g3[...], be3[...])
    out_ref[0] = x.astype(out_ref.dtype)


# ---------------------------------------------------------------------------
# Wrapper: builds additive mask biases, BlockSpecs and calls pallas_call.
# ---------------------------------------------------------------------------
def decoder_layer(trg, enc_src, trg_mask, src_mask, kparams, n_heads):
    B, T, H = trg.shape
    S = enc_src.shape[1]
    head_dim = H // n_heads
    compute_dtype = kparams[0].dtype   # matmul-operand dtype (bf16), f32 accumulation

    # Additive mask biases (one compare/select in XLA instead of per-head in-kernel).
    trg_bias = jnp.where(trg_mask == 0, jnp.float32(-1e10), jnp.float32(0.0))
    src_bias = jnp.where(src_mask == 0, jnp.float32(-1e10), jnp.float32(0.0))

    def batch_spec(shape):
        nd = len(shape)
        return pl.BlockSpec((1,) + tuple(shape[1:]),
                            lambda b, _nd=nd: (b,) + (0,) * (_nd - 1))

    def weight_specs(single_buffer):
        kw = dict(pipeline_mode=pl.Buffered(1)) if single_buffer else {}
        return [pl.BlockSpec(p.shape, lambda b, _z=(0,) * p.ndim: _z, **kw)
                for p in kparams]

    out_shape = (
        jax.ShapeDtypeStruct((B, T, H), jnp.float32),
        jax.ShapeDtypeStruct((B, n_heads, T, S), jnp.float32),   # attention, final layout
    )
    out_specs = (
        pl.BlockSpec((1, T, H), lambda b: (b, 0, 0)),
        pl.BlockSpec((1, n_heads, T, S), lambda b: (b, 0, 0, 0)),
    )

    kernel = functools.partial(decoder_layer_kernel, n_heads=n_heads,
                               head_dim=head_dim, compute_dtype=compute_dtype)

    def build(single_buffer_weights):
        return pl.pallas_call(
            kernel,
            grid=(B,),
            in_specs=([batch_spec(trg.shape), batch_spec(enc_src.shape),
                       batch_spec(trg_bias.shape), batch_spec(src_bias.shape)]
                      + weight_specs(single_buffer_weights)),
            out_specs=out_specs,
            out_shape=out_shape,
            compiler_params=pltpu.CompilerParams(
                dimension_semantics=("parallel",),     # batch across TCs on v7x
                # Above the 32 MiB scoped default, still safe on v7x (64 MiB physical).
                # Raise towards ~100 MiB on v5e/v6e when scaling T up.
                vmem_limit_bytes=48 * 1024 * 1024,
            ),
        )

    args = (trg, enc_src, trg_bias, src_bias, *kparams)
    try:
        # Constant-index weight blocks: single-buffer them (halves weight VMEM on v7x).
        result = build(single_buffer_weights=True)(*args)
        jax.block_until_ready(result)
    except Exception:
        # Fallback for jax builds without pipeline_mode support on TPU pallas_call.
        result = build(single_buffer_weights=False)(*args)
    return result


# ---------------------------------------------------------------------------
# Parameter construction (torch-like unfused params + fused kernel params).
# ---------------------------------------------------------------------------
def _linear(key, din, dout):
    k1, k2 = jax.random.split(key)
    bound = 1.0 / np.sqrt(din)
    w = jax.random.uniform(k1, (din, dout), jnp.float32, -bound, bound)
    b = jax.random.uniform(k2, (1, dout), jnp.float32, -bound, bound)
    return w, b


def init_layer_params(key, hidden_dim, pf_dim):
    ks = jax.random.split(key, 10)
    p = {}
    p["wq1"], p["bq1"] = _linear(ks[0], hidden_dim, hidden_dim)
    p["wk1"], p["bk1"] = _linear(ks[1], hidden_dim, hidden_dim)
    p["wv1"], p["bv1"] = _linear(ks[2], hidden_dim, hidden_dim)
    p["wo1"], p["bo1"] = _linear(ks[3], hidden_dim, hidden_dim)
    p["wq2"], p["bq2"] = _linear(ks[4], hidden_dim, hidden_dim)
    p["wk2"], p["bk2"] = _linear(ks[5], hidden_dim, hidden_dim)
    p["wv2"], p["bv2"] = _linear(ks[6], hidden_dim, hidden_dim)
    p["wo2"], p["bo2"] = _linear(ks[7], hidden_dim, hidden_dim)
    p["w1"], p["b1"] = _linear(ks[8], hidden_dim, pf_dim)
    p["w2"], p["b2"] = _linear(ks[9], pf_dim, hidden_dim)
    ones = jnp.ones((1, hidden_dim), jnp.float32)
    zeros = jnp.zeros((1, hidden_dim), jnp.float32)
    p["g1"], p["be1"] = ones, zeros
    p["g2"], p["be2"] = ones, zeros
    p["g3"], p["be3"] = ones, zeros
    return p


def fuse_params(p, n_heads, compute_dtype=jnp.bfloat16):
    """Fuse QKV / KV, fold the softmax scale into Q, fold the activation-free FFN,
    and cast matmul weights to the MXU compute dtype (biases / LN params stay f32)."""
    prec = jax.lax.Precision.HIGHEST
    H = p["wq1"].shape[0]
    head_dim = H // n_heads
    scale = jnp.float32(1.0 / np.sqrt(head_dim))

    wq1, bq1 = p["wq1"] * scale, p["bq1"] * scale       # fold 1/sqrt(head_dim)
    wq2, bq2 = p["wq2"] * scale, p["bq2"] * scale

    w_qkv1 = jnp.concatenate([wq1, p["wk1"], p["wv1"]], axis=1)     # (H, 3H)
    b_qkv1 = jnp.concatenate([bq1, p["bk1"], p["bv1"]], axis=1)     # (1, 3H)
    w_kv2 = jnp.concatenate([p["wk2"], p["wv2"]], axis=1)           # (H, 2H)
    b_kv2 = jnp.concatenate([p["bk2"], p["bv2"]], axis=1)           # (1, 2H)

    # The reference FFN is fc2(fc1(x)) with NO nonlinearity -> exact algebraic fusion.
    w_ff = jnp.matmul(p["w1"], p["w2"], precision=prec)             # (H, H)
    b_ff = jnp.matmul(p["b1"], p["w2"], precision=prec) + p["b2"]   # (1, H)

    cast = lambda w: w.astype(compute_dtype)
    return (
        cast(w_qkv1), b_qkv1, cast(p["wo1"]), p["bo1"], p["g1"], p["be1"],
        cast(wq2), bq2, cast(w_kv2), b_kv2, cast(p["wo2"]), p["bo2"], p["g2"], p["be2"],
        cast(w_ff), b_ff, p["g3"], p["be3"],
    )


# ---------------------------------------------------------------------------
# Pure-JAX f32 reference (mirrors the PyTorch DecoderLayer exactly).
# ---------------------------------------------------------------------------
def _ln_ref(x, g, b, eps=1e-5):
    mu = jnp.mean(x, axis=-1, keepdims=True)
    var = jnp.mean((x - mu) ** 2, axis=-1, keepdims=True)
    return (x - mu) / jnp.sqrt(var + eps) * g + b


def _mha_ref(q, kv, mask4, wq, bq, wk, bk, wv, bv, wo, bo, n_heads):
    prec = jax.lax.Precision.HIGHEST
    B, Tq, H = q.shape
    Tk = kv.shape[1]
    hd = H // n_heads
    Q = jnp.matmul(q, wq, precision=prec) + bq
    K = jnp.matmul(kv, wk, precision=prec) + bk
    V = jnp.matmul(kv, wv, precision=prec) + bv
    sp = lambda x, L: x.reshape(B, L, n_heads, hd).transpose(0, 2, 1, 3)
    Qh, Kh, Vh = sp(Q, Tq), sp(K, Tk), sp(V, Tk)
    energy = jnp.matmul(Qh, Kh.transpose(0, 1, 3, 2), precision=prec) / np.sqrt(hd)
    energy = jnp.where(mask4 == 0.0, -1e10, energy)
    attn = jax.nn.softmax(energy, axis=-1)
    o = jnp.matmul(attn, Vh, precision=prec).transpose(0, 2, 1, 3).reshape(B, Tq, H)
    return jnp.matmul(o, wo, precision=prec) + bo, attn


def decoder_layer_ref(trg, enc_src, trg_mask, src_mask, p, n_heads):
    prec = jax.lax.Precision.HIGHEST
    sa, _ = _mha_ref(trg, trg, trg_mask[:, None], p["wq1"], p["bq1"], p["wk1"], p["bk1"],
                     p["wv1"], p["bv1"], p["wo1"], p["bo1"], n_heads)
    x = _ln_ref(trg + sa, p["g1"], p["be1"])
    ea, attn = _mha_ref(x, enc_src, src_mask[:, None], p["wq2"], p["bq2"], p["wk2"], p["bk2"],
                        p["wv2"], p["bv2"], p["wo2"], p["bo2"], n_heads)
    x = _ln_ref(x + ea, p["g2"], p["be2"])
    ff = jnp.matmul(jnp.matmul(x, p["w1"], precision=prec) + p["b1"],
                    p["w2"], precision=prec) + p["b2"]
    x = _ln_ref(x + ff, p["g3"], p["be3"])
    return x, attn


# ---------------------------------------------------------------------------
if __name__ == "__main__":
    B, T, S = 2, 8, 8
    hidden_dim, n_heads, pf_dim = 32, 4, 64

    key = jax.random.PRNGKey(0)
    k_par, k_trg, k_enc = jax.random.split(key, 3)

    raw_params = init_layer_params(k_par, hidden_dim, pf_dim)
    kparams = fuse_params(raw_params, n_heads)

    trg = jax.random.normal(k_trg, (B, T, hidden_dim), jnp.float32)
    enc_src = jax.random.normal(k_enc, (B, S, hidden_dim), jnp.float32)

    # causal target mask (B, T, T); source mask (B, 1, S) with the last src token of
    # batch 1 padded out to exercise masked_fill.
    trg_mask = jnp.broadcast_to(jnp.tril(jnp.ones((T, T), jnp.float32)), (B, T, T))
    src_mask = jnp.ones((B, 1, S), jnp.float32).at[1, 0, S - 1].set(0.0)

    out, attention = decoder_layer(trg, enc_src, trg_mask, src_mask, kparams, n_heads)
    out = jax.block_until_ready(out)
    attention = jax.block_until_ready(attention)

    out_ref, attn_ref_ = decoder_layer_ref(trg, enc_src, trg_mask, src_mask,
                                           raw_params, n_heads)

    assert out.shape == (B, T, hidden_dim)
    assert attention.shape == (B, n_heads, T, S)
    # bf16 matmul operands (f32 accumulation) + approx softmax reciprocal -> ~1% numerics
    # vs. the pure-f32 reference, hence the loosened tolerance.
    assert np.allclose(np.asarray(out), np.asarray(out_ref), rtol=5e-2, atol=5e-2)
    assert np.allclose(np.asarray(attention), np.asarray(attn_ref_), rtol=5e-2, atol=5e-2)

    print("KERNEL_OK")
</pallas_src>

<mosaic_0001>
module attributes {stable_mosaic.version = 11 : i64} {
  func.func @decoder_layer_kernel(%arg0: i32, %arg1: memref<1x8x32xf32, #tpu.memory_space<vmem>>, %arg2: memref<1x8x32xf32, #tpu.memory_space<vmem>>, %arg3: memref<1x8x8xf32, #tpu.memory_space<vmem>>, %arg4: memref<1x1x8xf32, #tpu.memory_space<vmem>>, %arg5: memref<32x96xbf16, #tpu.memory_space<vmem>>, %arg6: memref<1x96xf32, #tpu.memory_space<vmem>>, %arg7: memref<32x32xbf16, #tpu.memory_space<vmem>>, %arg8: memref<1x32xf32, #tpu.memory_space<vmem>>, %arg9: memref<1x32xf32, #tpu.memory_space<vmem>>, %arg10: memref<1x32xf32, #tpu.memory_space<vmem>>, %arg11: memref<32x32xbf16, #tpu.memory_space<vmem>>, %arg12: memref<1x32xf32, #tpu.memory_space<vmem>>, %arg13: memref<32x64xbf16, #tpu.memory_space<vmem>>, %arg14: memref<1x64xf32, #tpu.memory_space<vmem>>, %arg15: memref<32x32xbf16, #tpu.memory_space<vmem>>, %arg16: memref<1x32xf32, #tpu.memory_space<vmem>>, %arg17: memref<1x32xf32, #tpu.memory_space<vmem>>, %arg18: memref<1x32xf32, #tpu.memory_space<vmem>>, %arg19: memref<32x32xbf16, #tpu.memory_space<vmem>>, %arg20: memref<1x32xf32, #tpu.memory_space<vmem>>, %arg21: memref<1x32xf32, #tpu.memory_space<vmem>>, %arg22: memref<1x32xf32, #tpu.memory_space<vmem>>, %arg23: memref<1x8x32xf32, #tpu.memory_space<vmem>>, %arg24: memref<1x4x8x8xf32, #tpu.memory_space<vmem>>) attributes {dimension_semantics = [#tpu.dimension_semantics<parallel>], iteration_bounds = array<i64: 2>, scalar_prefetch = 0 : i64, scratch_operands = 0 : i64, tpu.core_type = #tpu.core_type<tc>, window_params = [{transform_indices = @transform_0, window_bounds = array<i64: 1, 8, 32>}, {transform_indices = @transform_1, window_bounds = array<i64: 1, 8, 32>}, {transform_indices = @transform_2, window_bounds = array<i64: 1, 8, 8>}, {transform_indices = @transform_3, window_bounds = array<i64: 1, 1, 8>}, {pipeline_mode = #tpu.pipeline_mode<synchronous>, transform_indices = @transform_4, window_bounds = array<i64: 32, 96>}, {pipeline_mode = #tpu.pipeline_mode<synchronous>, transform_indices = @transform_5, window_bounds = array<i64: 1, 96>}, {pipeline_mode = #tpu.pipeline_mode<synchronous>, transform_indices = @transform_6, window_bounds = array<i64: 32, 32>}, {pipeline_mode = #tpu.pipeline_mode<synchronous>, transform_indices = @transform_7, window_bounds = array<i64: 1, 32>}, {pipeline_mode = #tpu.pipeline_mode<synchronous>, transform_indices = @transform_8, window_bounds = array<i64: 1, 32>}, {pipeline_mode = #tpu.pipeline_mode<synchronous>, transform_indices = @transform_9, window_bounds = array<i64: 1, 32>}, {pipeline_mode = #tpu.pipeline_mode<synchronous>, transform_indices = @transform_10, window_bounds = array<i64: 32, 32>}, {pipeline_mode = #tpu.pipeline_mode<synchronous>, transform_indices = @transform_11, window_bounds = array<i64: 1, 32>}, {pipeline_mode = #tpu.pipeline_mode<synchronous>, transform_indices = @transform_12, window_bounds = array<i64: 32, 64>}, {pipeline_mode = #tpu.pipeline_mode<synchronous>, transform_indices = @transform_13, window_bounds = array<i64: 1, 64>}, {pipeline_mode = #tpu.pipeline_mode<synchronous>, transform_indices = @transform_14, window_bounds = array<i64: 32, 32>}, {pipeline_mode = #tpu.pipeline_mode<synchronous>, transform_indices = @transform_15, window_bounds = array<i64: 1, 32>}, {pipeline_mode = #tpu.pipeline_mode<synchronous>, transform_indices = @transform_16, window_bounds = array<i64: 1, 32>}, {pipeline_mode = #tpu.pipeline_mode<synchronous>, transform_indices = @transform_17, window_bounds = array<i64: 1, 32>}, {pipeline_mode = #tpu.pipeline_mode<synchronous>, transform_indices = @transform_18, window_bounds = array<i64: 32, 32>}, {pipeline_mode = #tpu.pipeline_mode<synchronous>, transform_indices = @transform_19, window_bounds = array<i64: 1, 32>}, {pipeline_mode = #tpu.pipeline_mode<synchronous>, transform_indices = @transform_20, window_bounds = array<i64: 1, 32>}, {pipeline_mode = #tpu.pipeline_mode<synchronous>, transform_indices = @transform_21, window_bounds = array<i64: 1, 32>}, {transform_indices = @transform_22, window_bounds = array<i64: 1, 8, 32>}, {transform_indices = @transform_23, window_bounds = array<i64: 1, 4, 8, 8>}]} {
    %c0 = arith.constant 0 : index
    %c0_0 = arith.constant 0 : index
    %c0_1 = arith.constant 0 : index
    %0 = vector.load %arg1[%c0, %c0_0, %c0_1] : memref<1x8x32xf32, #tpu.memory_space<vmem>>, vector<1x8x32xf32>
    %1 = vector.shape_cast %0 : vector<1x8x32xf32> to vector<8x32xf32>
    %c0_2 = arith.constant 0 : index
    %c0_3 = arith.constant 0 : index
    %c0_4 = arith.constant 0 : index
    %2 = vector.load %arg2[%c0_2, %c0_3, %c0_4] : memref<1x8x32xf32, #tpu.memory_space<vmem>>, vector<1x8x32xf32>
    %3 = vector.shape_cast %2 : vector<1x8x32xf32> to vector<8x32xf32>
    %c0_5 = arith.constant 0 : index
    %c0_6 = arith.constant 0 : index
    %c0_7 = arith.constant 0 : index
    %4 = vector.load %arg3[%c0_5, %c0_6, %c0_7] : memref<1x8x8xf32, #tpu.memory_space<vmem>>, vector<1x8x8xf32>
    %5 = vector.shape_cast %4 : vector<1x8x8xf32> to vector<8x8xf32>
    %c0_8 = arith.constant 0 : index
    %c0_9 = arith.constant 0 : index
    %c0_10 = arith.constant 0 : index
    %6 = vector.load %arg4[%c0_8, %c0_9, %c0_10] : memref<1x1x8xf32, #tpu.memory_space<vmem>>, vector<1x1x8xf32>
    %7 = vector.shape_cast %6 : vector<1x1x8xf32> to vector<1x8xf32>
    %8 = arith.truncf %1 : vector<8x32xf32> to vector<8x32xbf16>
    %c0_11 = arith.constant 0 : index
    %c0_12 = arith.constant 0 : index
    %9 = vector.load %arg5[%c0_11, %c0_12] : memref<32x96xbf16, #tpu.memory_space<vmem>>, vector<32x96xbf16>
    %cst = arith.constant dense<0.000000e+00> : vector<8x96xf32>
    %10 = tpu.matmul %8, %9, %cst {dimension_numbers = #tpu.dot_dimension_numbers<[1], [0], [0], [1], [0, 0, 1, 1], [], []>} : vector<8x32xbf16>, vector<32x96xbf16>, vector<8x96xf32> -> vector<8x96xf32>
    %c0_13 = arith.constant 0 : index
    %c0_14 = arith.constant 0 : index
    %11 = vector.load %arg6[%c0_13, %c0_14] : memref<1x96xf32, #tpu.memory_space<vmem>>, vector<1x96xf32>
    %12 = vector.broadcast %11 : vector<1x96xf32> to vector<8x96xf32>
    %13 = arith.addf %10, %12 : vector<8x96xf32>
    %14 = vector.extract_strided_slice %13 {offsets = [0, 0], sizes = [8, 32], strides = [1, 1]} : vector<8x96xf32> to vector<8x32xf32>
    %15 = vector.extract_strided_slice %13 {offsets = [0, 32], sizes = [8, 32], strides = [1, 1]} : vector<8x96xf32> to vector<8x32xf32>
    %16 = vector.extract_strided_slice %13 {offsets = [0, 64], sizes = [8, 32], strides = [1, 1]} : vector<8x96xf32> to vector<8x32xf32>
    %17 = arith.truncf %14 : vector<8x32xf32> to vector<8x32xbf16>
    %18 = arith.truncf %15 : vector<8x32xf32> to vector<8x32xbf16>
    %19 = arith.truncf %16 : vector<8x32xf32> to vector<8x32xbf16>
    %20 = vector.extract_strided_slice %17 {offsets = [0, 0], sizes = [8, 8], strides = [1, 1]} : vector<8x32xbf16> to vector<8x8xbf16>
    %21 = vector.extract_strided_slice %17 {offsets = [0, 8], sizes = [8, 8], strides = [1, 1]} : vector<8x32xbf16> to vector<8x8xbf16>
    %22 = vector.extract_strided_slice %17 {offsets = [0, 16], sizes = [8, 8], strides = [1, 1]} : vector<8x32xbf16> to vector<8x8xbf16>
    %23 = vector.extract_strided_slice %17 {offsets = [0, 24], sizes = [8, 8], strides = [1, 1]} : vector<8x32xbf16> to vector<8x8xbf16>
    %24 = vector.shape_cast %20 : vector<8x8xbf16> to vector<1x8x8xbf16>
    %25 = vector.shape_cast %21 : vector<8x8xbf16> to vector<1x8x8xbf16>
    %26 = vector.shape_cast %22 : vector<8x8xbf16> to vector<1x8x8xbf16>
    %27 = vector.shape_cast %23 : vector<8x8xbf16> to vector<1x8x8xbf16>
    %28 = tpu.concatenate %24, %25, %26, %27 in 0 : vector<1x8x8xbf16>, vector<1x8x8xbf16>, vector<1x8x8xbf16>, vector<1x8x8xbf16> -> vector<4x8x8xbf16>
    %29 = vector.extract_strided_slice %18 {offsets = [0, 0], sizes = [8, 8], strides = [1, 1]} : vector<8x32xbf16> to vector<8x8xbf16>
    %30 = vector.extract_strided_slice %18 {offsets = [0, 8], sizes = [8, 8], strides = [1, 1]} : vector<8x32xbf16> to vector<8x8xbf16>
    %31 = vector.extract_strided_slice %18 {offsets = [0, 16], sizes = [8, 8], strides = [1, 1]} : vector<8x32xbf16> to vector<8x8xbf16>
    %32 = vector.extract_strided_slice %18 {offsets = [0, 24], sizes = [8, 8], strides = [1, 1]} : vector<8x32xbf16> to vector<8x8xbf16>
    %33 = vector.shape_cast %29 : vector<8x8xbf16> to vector<1x8x8xbf16>
    %34 = vector.shape_cast %30 : vector<8x8xbf16> to vector<1x8x8xbf16>
    %35 = vector.shape_cast %31 : vector<8x8xbf16> to vector<1x8x8xbf16>
    %36 = vector.shape_cast %32 : vector<8x8xbf16> to vector<1x8x8xbf16>
    %37 = tpu.concatenate %33, %34, %35, %36 in 0 : vector<1x8x8xbf16>, vector<1x8x8xbf16>, vector<1x8x8xbf16>, vector<1x8x8xbf16> -> vector<4x8x8xbf16>
    "tpu.trace_start"() <{level = 10 : i32, message = "htd,hsd->hts"}> : () -> ()
    %cst_15 = arith.constant dense<0.000000e+00> : vector<4x8x8xf32>
    %38 = tpu.matmul %28, %37, %cst_15 {dimension_numbers = #tpu.dot_dimension_numbers<[2], [2], [1], [1], [0, 0, 0, 1, 1, 1], [0], [0]>} : vector<4x8x8xbf16>, vector<4x8x8xbf16>, vector<4x8x8xf32> -> vector<4x8x8xf32>
    "tpu.trace_stop"() : () -> ()
    %39 = vector.shape_cast %5 : vector<8x8xf32> to vector<1x8x8xf32>
    %40 = vector.broadcast %39 : vector<1x8x8xf32> to vector<4x8x8xf32>
    %41 = arith.addf %38, %40 : vector<4x8x8xf32>
    %cst_16 = arith.constant dense<0xFF800000> : vector<4x8xf32>
    %42 = vector.multi_reduction <maximumf>, %41, %cst_16 [2] : vector<4x8x8xf32> to vector<4x8xf32>
    %43 = vector.shape_cast %42 : vector<4x8xf32> to vector<4x8x1xf32>
    %44 = vector.broadcast %43 : vector<4x8x1xf32> to vector<4x8x8xf32>
    %45 = arith.subf %41, %44 : vector<4x8x8xf32>
    %46 = math.exp %45 : vector<4x8x8xf32>
    %cst_17 = arith.constant dense<0.000000e+00> : vector<4x8xf32>
    %47 = vector.multi_reduction <add>, %46, %cst_17 [2] : vector<4x8x8xf32> to vector<4x8xf32>
    %48 = vector.shape_cast %47 : vector<4x8xf32> to vector<4x8x1xf32>
    %49 = tpu.reciprocal %48 {approx = true} : vector<4x8x1xf32> -> vector<4x8x1xf32>
    %50 = vector.broadcast %49 : vector<4x8x1xf32> to vector<4x8x8xf32>
    %51 = arith.mulf %46, %50 : vector<4x8x8xf32>
    %52 = arith.truncf %51 : vector<4x8x8xf32> to vector<4x8x8xbf16>
    %53 = vector.extract_strided_slice %19 {offsets = [0, 0], sizes = [8, 8], strides = [1, 1]} : vector<8x32xbf16> to vector<8x8xbf16>
    %54 = vector.extract_strided_slice %19 {offsets = [0, 8], sizes = [8, 8], strides = [1, 1]} : vector<8x32xbf16> to vector<8x8xbf16>
    %55 = vector.extract_strided_slice %19 {offsets = [0, 16], sizes = [8, 8], strides = [1, 1]} : vector<8x32xbf16> to vector<8x8xbf16>
    %56 = vector.extract_strided_slice %19 {offsets = [0, 24], sizes = [8, 8], strides = [1, 1]} : vector<8x32xbf16> to vector<8x8xbf16>
    %57 = vector.shape_cast %53 : vector<8x8xbf16> to vector<1x8x8xbf16>
    %58 = vector.shape_cast %54 : vector<8x8xbf16> to vector<1x8x8xbf16>
    %59 = vector.shape_cast %55 : vector<8x8xbf16> to vector<1x8x8xbf16>
    %60 = vector.shape_cast %56 : vector<8x8xbf16> to vector<1x8x8xbf16>
    %61 = tpu.concatenate %57, %58, %59, %60 in 0 : vector<1x8x8xbf16>, vector<1x8x8xbf16>, vector<1x8x8xbf16>, vector<1x8x8xbf16> -> vector<4x8x8xbf16>
    "tpu.trace_start"() <{level = 10 : i32, message = "hts,hsd->htd"}> : () -> ()
    %cst_18 = arith.constant dense<0.000000e+00> : vector<4x8x8xf32>
    %62 = tpu.matmul %52, %61, %cst_18 {dimension_numbers = #tpu.dot_dimension_numbers<[2], [1], [1], [2], [0, 0, 0, 1, 1, 2], [0], [0]>} : vector<4x8x8xbf16>, vector<4x8x8xbf16>, vector<4x8x8xf32> -> vector<4x8x8xf32>
    "tpu.trace_stop"() : () -> ()
    %63 = vector.extract_strided_slice %62 {offsets = [0, 0, 0], sizes = [1, 8, 8], strides = [1, 1, 1]} : vector<4x8x8xf32> to vector<1x8x8xf32>
    %64 = vector.shape_cast %63 : vector<1x8x8xf32> to vector<8x8xf32>
    %65 = vector.extract_strided_slice %62 {offsets = [1, 0, 0], sizes = [1, 8, 8], strides = [1, 1, 1]} : vector<4x8x8xf32> to vector<1x8x8xf32>
    %66 = vector.shape_cast %65 : vector<1x8x8xf32> to vector<8x8xf32>
    %67 = vector.extract_strided_slice %62 {offsets = [2, 0, 0], sizes = [1, 8, 8], strides = [1, 1, 1]} : vector<4x8x8xf32> to vector<1x8x8xf32>
    %68 = vector.shape_cast %67 : vector<1x8x8xf32> to vector<8x8xf32>
    %69 = vector.extract_strided_slice %62 {offsets = [3, 0, 0], sizes = [1, 8, 8], strides = [1, 1, 1]} : vector<4x8x8xf32> to vector<1x8x8xf32>
    %70 = vector.shape_cast %69 : vector<1x8x8xf32> to vector<8x8xf32>
    %71 = tpu.concatenate %64, %66, %68, %70 in 1 : vector<8x8xf32>, vector<8x8xf32>, vector<8x8xf32>, vector<8x8xf32> -> vector<8x32xf32>
    %72 = arith.truncf %71 : vector<8x32xf32> to vector<8x32xbf16>
    %c0_19 = arith.constant 0 : index
    %c0_20 = arith.constant 0 : index
    %73 = vector.load %arg7[%c0_19, %c0_20] : memref<32x32xbf16, #tpu.memory_space<vmem>>, vector<32x32xbf16>
    %cst_21 = arith.constant dense<0.000000e+00> : vector<8x32xf32>
    %74 = tpu.matmul %72, %73, %cst_21 {dimension_numbers = #tpu.dot_dimension_numbers<[1], [0], [0], [1], [0, 0, 1, 1], [], []>} : vector<8x32xbf16>, vector<32x32xbf16>, vector<8x32xf32> -> vector<8x32xf32>
    %c0_22 = arith.constant 0 : index
    %c0_23 = arith.constant 0 : index
    %75 = vector.load %arg8[%c0_22, %c0_23] : memref<1x32xf32, #tpu.memory_space<vmem>>, vector<1x32xf32>
    %76 = vector.broadcast %75 : vector<1x32xf32> to vector<8x32xf32>
    %77 = arith.addf %74, %76 : vector<8x32xf32>
    %78 = arith.addf %1, %77 : vector<8x32xf32>
    %c0_24 = arith.constant 0 : index
    %c0_25 = arith.constant 0 : index
    %79 = vector.load %arg9[%c0_24, %c0_25] : memref<1x32xf32, #tpu.memory_space<vmem>>, vector<1x32xf32>
    %c0_26 = arith.constant 0 : index
    %c0_27 = arith.constant 0 : index
    %80 = vector.load %arg10[%c0_26, %c0_27] : memref<1x32xf32, #tpu.memory_space<vmem>>, vector<1x32xf32>
    %cst_28 = arith.constant dense<0.000000e+00> : vector<8xf32>
    %81 = vector.multi_reduction <add>, %78, %cst_28 [1] : vector<8x32xf32> to vector<8xf32>
    %82 = vector.shape_cast %81 : vector<8xf32> to vector<8x1xf32>
    %cst_29 = arith.constant 3.200000e+01 : f32
    %83 = vector.broadcast %cst_29 : f32 to vector<8x1xf32>
    %84 = arith.divf %82, %83 : vector<8x1xf32>
    %85 = vector.broadcast %84 : vector<8x1xf32> to vector<8x32xf32>
    %86 = arith.subf %78, %85 : vector<8x32xf32>
    %87 = arith.mulf %86, %86 : vector<8x32xf32>
    %cst_30 = arith.constant dense<0.000000e+00> : vector<8xf32>
    %88 = vector.multi_reduction <add>, %87, %cst_30 [1] : vector<8x32xf32> to vector<8xf32>
    %89 = vector.shape_cast %88 : vector<8xf32> to vector<8x1xf32>
    %cst_31 = arith.constant 3.200000e+01 : f32
    %90 = vector.broadcast %cst_31 : f32 to vector<8x1xf32>
    %91 = arith.divf %89, %90 : vector<8x1xf32>
    %92 = vector.broadcast %84 : vector<8x1xf32> to vector<8x32xf32>
    %93 = arith.subf %78, %92 : vector<8x32xf32>
    %cst_32 = arith.constant 9.99999974E-6 : f32
    %94 = vector.broadcast %cst_32 : f32 to vector<8x1xf32>
    %95 = arith.addf %91, %94 : vector<8x1xf32>
    %96 = math.rsqrt %95 : vector<8x1xf32>
    %97 = vector.broadcast %96 : vector<8x1xf32> to vector<8x32xf32>
    %98 = arith.mulf %93, %97 : vector<8x32xf32>
    %99 = vector.broadcast %79 : vector<1x32xf32> to vector<8x32xf32>
    %100 = arith.mulf %98, %99 : vector<8x32xf32>
    %101 = vector.broadcast %80 : vector<1x32xf32> to vector<8x32xf32>
    %102 = arith.addf %100, %101 : vector<8x32xf32>
    %103 = arith.truncf %102 : vector<8x32xf32> to vector<8x32xbf16>
    %c0_33 = arith.constant 0 : index
    %c0_34 = arith.constant 0 : index
    %104 = vector.load %arg11[%c0_33, %c0_34] : memref<32x32xbf16, #tpu.memory_space<vmem>>, vector<32x32xbf16>
    %cst_35 = arith.constant dense<0.000000e+00> : vector<8x32xf32>
    %105 = tpu.matmul %103, %104, %cst_35 {dimension_numbers = #tpu.dot_dimension_numbers<[1], [0], [0], [1], [0, 0, 1, 1], [], []>} : vector<8x32xbf16>, vector<32x32xbf16>, vector<8x32xf32> -> vector<8x32xf32>
    %c0_36 = arith.constant 0 : index
    %c0_37 = arith.constant 0 : index
    %106 = vector.load %arg12[%c0_36, %c0_37] : memref<1x32xf32, #tpu.memory_space<vmem>>, vector<1x32xf32>
    %107 = vector.broadcast %106 : vector<1x32xf32> to vector<8x32xf32>
    %108 = arith.addf %105, %107 : vector<8x32xf32>
    %109 = arith.truncf %3 : vector<8x32xf32> to vector<8x32xbf16>
    %c0_38 = arith.constant 0 : index
    %c0_39 = arith.constant 0 : index
    %110 = vector.load %arg13[%c0_38, %c0_39] : memref<32x64xbf16, #tpu.memory_space<vmem>>, vector<32x64xbf16>
    %cst_40 = arith.constant dense<0.000000e+00> : vector<8x64xf32>
    %111 = tpu.matmul %109, %110, %cst_40 {dimension_numbers = #tpu.dot_dimension_numbers<[1], [0], [0], [1], [0, 0, 1, 1], [], []>} : vector<8x32xbf16>, vector<32x64xbf16>, vector<8x64xf32> -> vector<8x64xf32>
    %c0_41 = arith.constant 0 : index
    %c0_42 = arith.constant 0 : index
    %112 = vector.load %arg14[%c0_41, %c0_42] : memref<1x64xf32, #tpu.memory_space<vmem>>, vector<1x64xf32>
    %113 = vector.broadcast %112 : vector<1x64xf32> to vector<8x64xf32>
    %114 = arith.addf %111, %113 : vector<8x64xf32>
    %115 = vector.extract_strided_slice %114 {offsets = [0, 0], sizes = [8, 32], strides = [1, 1]} : vector<8x64xf32> to vector<8x32xf32>
    %116 = vector.extract_strided_slice %114 {offsets = [0, 32], sizes = [8, 32], strides = [1, 1]} : vector<8x64xf32> to vector<8x32xf32>
    %117 = arith.truncf %108 : vector<8x32xf32> to vector<8x32xbf16>
    %118 = arith.truncf %115 : vector<8x32xf32> to vector<8x32xbf16>
    %119 = arith.truncf %116 : vector<8x32xf32> to vector<8x32xbf16>
    %120 = vector.extract_strided_slice %117 {offsets = [0, 0], sizes = [8, 8], strides = [1, 1]} : vector<8x32xbf16> to vector<8x8xbf16>
    %121 = vector.extract_strided_slice %117 {offsets = [0, 8], sizes = [8, 8], strides = [1, 1]} : vector<8x32xbf16> to vector<8x8xbf16>
    %122 = vector.extract_strided_slice %117 {offsets = [0, 16], sizes = [8, 8], strides = [1, 1]} : vector<8x32xbf16> to vector<8x8xbf16>
    %123 = vector.extract_strided_slice %117 {offsets = [0, 24], sizes = [8, 8], strides = [1, 1]} : vector<8x32xbf16> to vector<8x8xbf16>
    %124 = vector.shape_cast %120 : vector<8x8xbf16> to vector<1x8x8xbf16>
    %125 = vector.shape_cast %121 : vector<8x8xbf16> to vector<1x8x8xbf16>
    %126 = vector.shape_cast %122 : vector<8x8xbf16> to vector<1x8x8xbf16>
    %127 = vector.shape_cast %123 : vector<8x8xbf16> to vector<1x8x8xbf16>
    %128 = tpu.concatenate %124, %125, %126, %127 in 0 : vector<1x8x8xbf16>, vector<1x8x8xbf16>, vector<1x8x8xbf16>, vector<1x8x8xbf16> -> vector<4x8x8xbf16>
    %129 = vector.extract_strided_slice %118 {offsets = [0, 0], sizes = [8, 8], strides = [1, 1]} : vector<8x32xbf16> to vector<8x8xbf16>
    %130 = vector.extract_strided_slice %118 {offsets = [0, 8], sizes = [8, 8], strides = [1, 1]} : vector<8x32xbf16> to vector<8x8xbf16>
    %131 = vector.extract_strided_slice %118 {offsets = [0, 16], sizes = [8, 8], strides = [1, 1]} : vector<8x32xbf16> to vector<8x8xbf16>
    %132 = vector.extract_strided_slice %118 {offsets = [0, 24], sizes = [8, 8], strides = [1, 1]} : vector<8x32xbf16> to vector<8x8xbf16>
    %133 = vector.shape_cast %129 : vector<8x8xbf16> to vector<1x8x8xbf16>
    %134 = vector.shape_cast %130 : vector<8x8xbf16> to vector<1x8x8xbf16>
    %135 = vector.shape_cast %131 : vector<8x8xbf16> to vector<1x8x8xbf16>
    %136 = vector.shape_cast %132 : vector<8x8xbf16> to vector<1x8x8xbf16>
    %137 = tpu.concatenate %133, %134, %135, %136 in 0 : vector<1x8x8xbf16>, vector<1x8x8xbf16>, vector<1x8x8xbf16>, vector<1x8x8xbf16> -> vector<4x8x8xbf16>
    "tpu.trace_start"() <{level = 10 : i32, message = "htd,hsd->hts"}> : () -> ()
    %cst_43 = arith.constant dense<0.000000e+00> : vector<4x8x8xf32>
    %138 = tpu.matmul %128, %137, %cst_43 {dimension_numbers = #tpu.dot_dimension_numbers<[2], [2], [1], [1], [0, 0, 0, 1, 1, 1], [0], [0]>} : vector<4x8x8xbf16>, vector<4x8x8xbf16>, vector<4x8x8xf32> -> vector<4x8x8xf32>
    "tpu.trace_stop"() : () -> ()
    %139 = vector.shape_cast %7 : vector<1x8xf32> to vector<1x1x8xf32>
    %140 = vector.broadcast %139 : vector<1x1x8xf32> to vector<4x8x8xf32>
    %141 = arith.addf %138, %140 : vector<4x8x8xf32>
    %cst_44 = arith.constant dense<0xFF800000> : vector<4x8xf32>
    %142 = vector.multi_reduction <maximumf>, %141, %cst_44 [2] : vector<4x8x8xf32> to vector<4x8xf32>
    %143 = vector.shape_cast %142 : vector<4x8xf32> to vector<4x8x1xf32>
    %144 = vector.broadcast %143 : vector<4x8x1xf32> to vector<4x8x8xf32>
    %145 = arith.subf %141, %144 : vector<4x8x8xf32>
    %146 = math.exp %145 : vector<4x8x8xf32>
    %cst_45 = arith.constant dense<0.000000e+00> : vector<4x8xf32>
    %147 = vector.multi_reduction <add>, %146, %cst_45 [2] : vector<4x8x8xf32> to vector<4x8xf32>
    %148 = vector.shape_cast %147 : vector<4x8xf32> to vector<4x8x1xf32>
    %149 = tpu.reciprocal %148 {approx = true} : vector<4x8x1xf32> -> vector<4x8x1xf32>
    %150 = vector.broadcast %149 : vector<4x8x1xf32> to vector<4x8x8xf32>
    %151 = arith.mulf %146, %150 : vector<4x8x8xf32>
    %152 = arith.truncf %151 : vector<4x8x8xf32> to vector<4x8x8xbf16>
    %153 = vector.extract_strided_slice %119 {offsets = [0, 0], sizes = [8, 8], strides = [1, 1]} : vector<8x32xbf16> to vector<8x8xbf16>
    %154 = vector.extract_strided_slice %119 {offsets = [0, 8], sizes = [8, 8], strides = [1, 1]} : vector<8x32xbf16> to vector<8x8xbf16>
    %155 = vector.extract_strided_slice %119 {offsets = [0, 16], sizes = [8, 8], strides = [1, 1]} : vector<8x32xbf16> to vector<8x8xbf16>
    %156 = vector.extract_strided_slice %119 {offsets = [0, 24], sizes = [8, 8], strides = [1, 1]} : vector<8x32xbf16> to vector<8x8xbf16>
    %157 = vector.shape_cast %153 : vector<8x8xbf16> to vector<1x8x8xbf16>
    %158 = vector.shape_cast %154 : vector<8x8xbf16> to vector<1x8x8xbf16>
    %159 = vector.shape_cast %155 : vector<8x8xbf16> to vector<1x8x8xbf16>
    %160 = vector.shape_cast %156 : vector<8x8xbf16> to vector<1x8x8xbf16>
    %161 = tpu.concatenate %157, %158, %159, %160 in 0 : vector<1x8x8xbf16>, vector<1x8x8xbf16>, vector<1x8x8xbf16>, vector<1x8x8xbf16> -> vector<4x8x8xbf16>
    "tpu.trace_start"() <{level = 10 : i32, message = "hts,hsd->htd"}> : () -> ()
    %cst_46 = arith.constant dense<0.000000e+00> : vector<4x8x8xf32>
    %162 = tpu.matmul %152, %161, %cst_46 {dimension_numbers = #tpu.dot_dimension_numbers<[2], [1], [1], [2], [0, 0, 0, 1, 1, 2], [0], [0]>} : vector<4x8x8xbf16>, vector<4x8x8xbf16>, vector<4x8x8xf32> -> vector<4x8x8xf32>
    "tpu.trace_stop"() : () -> ()
    %163 = vector.extract_strided_slice %162 {offsets = [0, 0, 0], sizes = [1, 8, 8], strides = [1, 1, 1]} : vector<4x8x8xf32> to vector<1x8x8xf32>
    %164 = vector.shape_cast %163 : vector<1x8x8xf32> to vector<8x8xf32>
    %165 = vector.extract_strided_slice %162 {offsets = [1, 0, 0], sizes = [1, 8, 8], strides = [1, 1, 1]} : vector<4x8x8xf32> to vector<1x8x8xf32>
    %166 = vector.shape_cast %165 : vector<1x8x8xf32> to vector<8x8xf32>
    %167 = vector.extract_strided_slice %162 {offsets = [2, 0, 0], sizes = [1, 8, 8], strides = [1, 1, 1]} : vector<4x8x8xf32> to vector<1x8x8xf32>
    %168 = vector.shape_cast %167 : vector<1x8x8xf32> to vector<8x8xf32>
    %169 = vector.extract_strided_slice %162 {offsets = [3, 0, 0], sizes = [1, 8, 8], strides = [1, 1, 1]} : vector<4x8x8xf32> to vector<1x8x8xf32>
    %170 = vector.shape_cast %169 : vector<1x8x8xf32> to vector<8x8xf32>
    %171 = tpu.concatenate %164, %166, %168, %170 in 1 : vector<8x8xf32>, vector<8x8xf32>, vector<8x8xf32>, vector<8x8xf32> -> vector<8x32xf32>
    %172 = arith.truncf %171 : vector<8x32xf32> to vector<8x32xbf16>
    %c0_47 = arith.constant 0 : index
    %c0_48 = arith.constant 0 : index
    %173 = vector.load %arg15[%c0_47, %c0_48] : memref<32x32xbf16, #tpu.memory_space<vmem>>, vector<32x32xbf16>
    %cst_49 = arith.constant dense<0.000000e+00> : vector<8x32xf32>
    %174 = tpu.matmul %172, %173, %cst_49 {dimension_numbers = #tpu.dot_dimension_numbers<[1], [0], [0], [1], [0, 0, 1, 1], [], []>} : vector<8x32xbf16>, vector<32x32xbf16>, vector<8x32xf32> -> vector<8x32xf32>
    %c0_50 = arith.constant 0 : index
    %c0_51 = arith.constant 0 : index
    %175 = vector.load %arg16[%c0_50, %c0_51] : memref<1x32xf32, #tpu.memory_space<vmem>>, vector<1x32xf32>
    %176 = vector.broadcast %175 : vector<1x32xf32> to vector<8x32xf32>
    %177 = arith.addf %174, %176 : vector<8x32xf32>
    %178 = arith.addf %102, %177 : vector<8x32xf32>
    %c0_52 = arith.constant 0 : index
    %c0_53 = arith.constant 0 : index
    %179 = vector.load %arg17[%c0_52, %c0_53] : memref<1x32xf32, #tpu.memory_space<vmem>>, vector<1x32xf32>
    %c0_54 = arith.constant 0 : index
    %c0_55 = arith.constant 0 : index
    %180 = vector.load %arg18[%c0_54, %c0_55] : memref<1x32xf32, #tpu.memory_space<vmem>>, vector<1x32xf32>
    %cst_56 = arith.constant dense<0.000000e+00> : vector<8xf32>
    %181 = vector.multi_reduction <add>, %178, %cst_56 [1] : vector<8x32xf32> to vector<8xf32>
    %182 = vector.shape_cast %181 : vector<8xf32> to vector<8x1xf32>
    %cst_57 = arith.constant 3.200000e+01 : f32
    %183 = vector.broadcast %cst_57 : f32 to vector<8x1xf32>
    %184 = arith.divf %182, %183 : vector<8x1xf32>
    %185 = vector.broadcast %184 : vector<8x1xf32> to vector<8x32xf32>
    %186 = arith.subf %178, %185 : vector<8x32xf32>
    %187 = arith.mulf %186, %186 : vector<8x32xf32>
    %cst_58 = arith.constant dense<0.000000e+00> : vector<8xf32>
    %188 = vector.multi_reduction <add>, %187, %cst_58 [1] : vector<8x32xf32> to vector<8xf32>
    %189 = vector.shape_cast %188 : vector<8xf32> to vector<8x1xf32>
    %cst_59 = arith.constant 3.200000e+01 : f32
    %190 = vector.broadcast %cst_59 : f32 to vector<8x1xf32>
    %191 = arith.divf %189, %190 : vector<8x1xf32>
    %192 = vector.broadcast %184 : vector<8x1xf32> to vector<8x32xf32>
    %193 = arith.subf %178, %192 : vector<8x32xf32>
    %cst_60 = arith.constant 9.99999974E-6 : f32
    %194 = vector.broadcast %cst_60 : f32 to vector<8x1xf32>
    %195 = arith.addf %191, %194 : vector<8x1xf32>
    %196 = math.rsqrt %195 : vector<8x1xf32>
    %197 = vector.broadcast %196 : vector<8x1xf32> to vector<8x32xf32>
    %198 = arith.mulf %193, %197 : vector<8x32xf32>
    %199 = vector.broadcast %179 : vector<1x32xf32> to vector<8x32xf32>
    %200 = arith.mulf %198, %199 : vector<8x32xf32>
    %201 = vector.broadcast %180 : vector<1x32xf32> to vector<8x32xf32>
    %202 = arith.addf %200, %201 : vector<8x32xf32>
    %c0_61 = arith.constant 0 : index
    %c0_62 = arith.constant 0 : index
    %c0_63 = arith.constant 0 : index
    %c0_64 = arith.constant 0 : index
    %203 = vector.load %arg24[%c0_61, %c0_62, %c0_63, %c0_64] : memref<1x4x8x8xf32, #tpu.memory_space<vmem>>, vector<1x4x8x8xf32>
    %204 = vector.shape_cast %203 : vector<1x4x8x8xf32> to vector<4x8x8xf32>
    %205 = vector.shape_cast %151 : vector<4x8x8xf32> to vector<1x4x8x8xf32>
    tpu.vector_store %arg24[%c0_61, %c0_62, %c0_63, %c0_64], %205 {strides = array<i32>} : memref<1x4x8x8xf32, #tpu.memory_space<vmem>>, vector<1x4x8x8xf32>,
    %206 = arith.truncf %202 : vector<8x32xf32> to vector<8x32xbf16>
    %c0_65 = arith.constant 0 : index
    %c0_66 = arith.constant 0 : index
    %207 = vector.load %arg19[%c0_65, %c0_66] : memref<32x32xbf16, #tpu.memory_space<vmem>>, vector<32x32xbf16>
    %cst_67 = arith.constant dense<0.000000e+00> : vector<8x32xf32>
    %208 = tpu.matmul %206, %207, %cst_67 {dimension_numbers = #tpu.dot_dimension_numbers<[1], [0], [0], [1], [0, 0, 1, 1], [], []>} : vector<8x32xbf16>, vector<32x32xbf16>, vector<8x32xf32> -> vector<8x32xf32>
    %c0_68 = arith.constant 0 : index
    %c0_69 = arith.constant 0 : index
    %209 = vector.load %arg20[%c0_68, %c0_69] : memref<1x32xf32, #tpu.memory_space<vmem>>, vector<1x32xf32>
    %210 = vector.broadcast %209 : vector<1x32xf32> to vector<8x32xf32>
    %211 = arith.addf %208, %210 : vector<8x32xf32>
    %212 = arith.addf %202, %211 : vector<8x32xf32>
    %c0_70 = arith.constant 0 : index
    %c0_71 = arith.constant 0 : index
    %213 = vector.load %arg21[%c0_70, %c0_71] : memref<1x32xf32, #tpu.memory_space<vmem>>, vector<1x32xf32>
    %c0_72 = arith.constant 0 : index
    %c0_73 = arith.constant 0 : index
    %214 = vector.load %arg22[%c0_72, %c0_73] : memref<1x32xf32, #tpu.memory_space<vmem>>, vector<1x32xf32>
    %cst_74 = arith.constant dense<0.000000e+00> : vector<8xf32>
    %215 = vector.multi_reduction <add>, %212, %cst_74 [1] : vector<8x32xf32> to vector<8xf32>
    %216 = vector.shape_cast %215 : vector<8xf32> to vector<8x1xf32>
    %cst_75 = arith.constant 3.200000e+01 : f32
    %217 = vector.broadcast %cst_75 : f32 to vector<8x1xf32>
    %218 = arith.divf %216, %217 : vector<8x1xf32>
    %219 = vector.broadcast %218 : vector<8x1xf32> to vector<8x32xf32>
    %220 = arith.subf %212, %219 : vector<8x32xf32>
    %221 = arith.mulf %220, %220 : vector<8x32xf32>
    %cst_76 = arith.constant dense<0.000000e+00> : vector<8xf32>
    %222 = vector.multi_reduction <add>, %221, %cst_76 [1] : vector<8x32xf32> to vector<8xf32>
    %223 = vector.shape_cast %222 : vector<8xf32> to vector<8x1xf32>
    %cst_77 = arith.constant 3.200000e+01 : f32
    %224 = vector.broadcast %cst_77 : f32 to vector<8x1xf32>
    %225 = arith.divf %223, %224 : vector<8x1xf32>
    %226 = vector.broadcast %218 : vector<8x1xf32> to vector<8x32xf32>
    %227 = arith.subf %212, %226 : vector<8x32xf32>
    %cst_78 = arith.constant 9.99999974E-6 : f32
    %228 = vector.broadcast %cst_78 : f32 to vector<8x1xf32>
    %229 = arith.addf %225, %228 : vector<8x1xf32>
    %230 = math.rsqrt %229 : vector<8x1xf32>
    %231 = vector.broadcast %230 : vector<8x1xf32> to vector<8x32xf32>
    %232 = arith.mulf %227, %231 : vector<8x32xf32>
    %233 = vector.broadcast %213 : vector<1x32xf32> to vector<8x32xf32>
    %234 = arith.mulf %232, %233 : vector<8x32xf32>
    %235 = vector.broadcast %214 : vector<1x32xf32> to vector<8x32xf32>
    %236 = arith.addf %234, %235 : vector<8x32xf32>
    %c0_79 = arith.constant 0 : index
    %c0_80 = arith.constant 0 : index
    %c0_81 = arith.constant 0 : index
    %237 = vector.load %arg23[%c0_79, %c0_80, %c0_81] : memref<1x8x32xf32, #tpu.memory_space<vmem>>, vector<1x8x32xf32>
    %238 = vector.shape_cast %237 : vector<1x8x32xf32> to vector<8x32xf32>
    %239 = vector.shape_cast %236 : vector<8x32xf32> to vector<1x8x32xf32>
    tpu.vector_store %arg23[%c0_79, %c0_80, %c0_81], %239 {strides = array<i32>} : memref<1x8x32xf32, #tpu.memory_space<vmem>>, vector<1x8x32xf32>,
    return
  }
  func.func @transform_0(%arg0: i32) -> (i32, i32, i32) {
    %c0_i32 = arith.constant 0 : i32
    %c0_i32_0 = arith.constant 0 : i32
    %c0_i32_1 = arith.constant 0 : i32
    return %arg0, %c0_i32, %c0_i32_0 : i32, i32, i32
  }
  func.func @transform_1(%arg0: i32) -> (i32, i32, i32) {
    %c0_i32 = arith.constant 0 : i32
    %c0_i32_0 = arith.constant 0 : i32
    %c0_i32_1 = arith.constant 0 : i32
    return %arg0, %c0_i32, %c0_i32_0 : i32, i32, i32
  }
  func.func @transform_2(%arg0: i32) -> (i32, i32, i32) {
    %c0_i32 = arith.constant 0 : i32
    %c0_i32_0 = arith.constant 0 : i32
    %c0_i32_1 = arith.constant 0 : i32
    return %arg0, %c0_i32, %c0_i32_0 : i32, i32, i32
  }
  func.func @transform_3(%arg0: i32) -> (i32, i32, i32) {
    %c0_i32 = arith.constant 0 : i32
    %c0_i32_0 = arith.constant 0 : i32
    %c0_i32_1 = arith.constant 0 : i32
    return %arg0, %c0_i32, %c0_i32_0 : i32, i32, i32
  }
  func.func @transform_4(%arg0: i32) -> (i32, i32) {
    %c0_i32 = arith.constant 0 : i32
    %c0_i32_0 = arith.constant 0 : i32
    %c0_i32_1 = arith.constant 0 : i32
    return %c0_i32, %c0_i32_0 : i32, i32
  }
  func.func @transform_5(%arg0: i32) -> (i32, i32) {
    %c0_i32 = arith.constant 0 : i32
    %c0_i32_0 = arith.constant 0 : i32
    %c0_i32_1 = arith.constant 0 : i32
    return %c0_i32, %c0_i32_0 : i32, i32
  }
  func.func @transform_6(%arg0: i32) -> (i32, i32) {
    %c0_i32 = arith.constant 0 : i32
    %c0_i32_0 = arith.constant 0 : i32
    %c0_i32_1 = arith.constant 0 : i32
    return %c0_i32, %c0_i32_0 : i32, i32
  }
  func.func @transform_7(%arg0: i32) -> (i32, i32) {
    %c0_i32 = arith.constant 0 : i32
    %c0_i32_0 = arith.constant 0 : i32
    %c0_i32_1 = arith.constant 0 : i32
    return %c0_i32, %c0_i32_0 : i32, i32
  }
  func.func @transform_8(%arg0: i32) -> (i32, i32) {
    %c0_i32 = arith.constant 0 : i32
    %c0_i32_0 = arith.constant 0 : i32
    %c0_i32_1 = arith.constant 0 : i32
    return %c0_i32, %c0_i32_0 : i32, i32
  }
  func.func @transform_9(%arg0: i32) -> (i32, i32) {
    %c0_i32 = arith.constant 0 : i32
    %c0_i32_0 = arith.constant 0 : i32
    %c0_i32_1 = arith.constant 0 : i32
    return %c0_i32, %c0_i32_0 : i32, i32
  }
  func.func @transform_10(%arg0: i32) -> (i32, i32) {
    %c0_i32 = arith.constant 0 : i32
    %c0_i32_0 = arith.constant 0 : i32
    %c0_i32_1 = arith.constant 0 : i32
    return %c0_i32, %c0_i32_0 : i32, i32
  }
  func.func @transform_11(%arg0: i32) -> (i32, i32) {
    %c0_i32 = arith.constant 0 : i32
    %c0_i32_0 = arith.constant 0 : i32
    %c0_i32_1 = arith.constant 0 : i32
    return %c0_i32, %c0_i32_0 : i32, i32
  }
  func.func @transform_12(%arg0: i32) -> (i32, i32) {
    %c0_i32 = arith.constant 0 : i32
    %c0_i32_0 = arith.constant 0 : i32
    %c0_i32_1 = arith.constant 0 : i32
    return %c0_i32, %c0_i32_0 : i32, i32
  }
  func.func @transform_13(%arg0: i32) -> (i32, i32) {
    %c0_i32 = arith.constant 0 : i32
    %c0_i32_0 = arith.constant 0 : i32
    %c0_i32_1 = arith.constant 0 : i32
    return %c0_i32, %c0_i32_0 : i32, i32
  }
  func.func @transform_14(%arg0: i32) -> (i32, i32) {
    %c0_i32 = arith.constant 0 : i32
    %c0_i32_0 = arith.constant 0 : i32
    %c0_i32_1 = arith.constant 0 : i32
    return %c0_i32, %c0_i32_0 : i32, i32
  }
  func.func @transform_15(%arg0: i32) -> (i32, i32) {
    %c0_i32 = arith.constant 0 : i32
    %c0_i32_0 = arith.constant 0 : i32
    %c0_i32_1 = arith.constant 0 : i32
    return %c0_i32, %c0_i32_0 : i32, i32
  }
  func.func @transform_16(%arg0: i32) -> (i32, i32) {
    %c0_i32 = arith.constant 0 : i32
    %c0_i32_0 = arith.constant 0 : i32
    %c0_i32_1 = arith.constant 0 : i32
    return %c0_i32, %c0_i32_0 : i32, i32
  }
  func.func @transform_17(%arg0: i32) -> (i32, i32) {
    %c0_i32 = arith.constant 0 : i32
    %c0_i32_0 = arith.constant 0 : i32
    %c0_i32_1 = arith.constant 0 : i32
    return %c0_i32, %c0_i32_0 : i32, i32
  }
  func.func @transform_18(%arg0: i32) -> (i32, i32) {
    %c0_i32 = arith.constant 0 : i32
    %c0_i32_0 = arith.constant 0 : i32
    %c0_i32_1 = arith.constant 0 : i32
    return %c0_i32, %c0_i32_0 : i32, i32
  }
  func.func @transform_19(%arg0: i32) -> (i32, i32) {
    %c0_i32 = arith.constant 0 : i32
    %c0_i32_0 = arith.constant 0 : i32
    %c0_i32_1 = arith.constant 0 : i32
    return %c0_i32, %c0_i32_0 : i32, i32
  }
  func.func @transform_20(%arg0: i32) -> (i32, i32) {
    %c0_i32 = arith.constant 0 : i32
    %c0_i32_0 = arith.constant 0 : i32
    %c0_i32_1 = arith.constant 0 : i32
    return %c0_i32, %c0_i32_0 : i32, i32
  }
  func.func @transform_21(%arg0: i32) -> (i32, i32) {
    %c0_i32 = arith.constant 0 : i32
    %c0_i32_0 = arith.constant 0 : i32
    %c0_i32_1 = arith.constant 0 : i32
    return %c0_i32, %c0_i32_0 : i32, i32
  }
  func.func @transform_22(%arg0: i32) -> (i32, i32, i32) {
    %c0_i32 = arith.constant 0 : i32
    %c0_i32_0 = arith.constant 0 : i32
    %c0_i32_1 = arith.constant 0 : i32
    return %arg0, %c0_i32, %c0_i32_0 : i32, i32, i32
  }
  func.func @transform_23(%arg0: i32) -> (i32, i32, i32, i32) {
    %c0_i32 = arith.constant 0 : i32
    %c0_i32_0 = arith.constant 0 : i32
    %c0_i32_1 = arith.constant 0 : i32
    %c0_i32_2 = arith.constant 0 : i32
    return %arg0, %c0_i32, %c0_i32_0, %c0_i32_1 : i32, i32, i32, i32
  }
}

module attributes {stable_mosaic.version = 11 : i64} {
  func.func @decoder_layer_kernel(%arg0: i32, %arg1: memref<1x8x32xf32, #tpu.memory_space<vmem>>, %arg2: memref<1x8x32xf32, #tpu.memory_space<vmem>>, %arg3: memref<1x8x8xf32, #tpu.memory_space<vmem>>, %arg4: memref<1x1x8xf32, #tpu.memory_space<vmem>>, %arg5: memref<32x96xbf16, #tpu.memory_space<vmem>>, %arg6: memref<1x96xf32, #tpu.memory_space<vmem>>, %arg7: memref<32x32xbf16, #tpu.memory_space<vmem>>, %arg8: memref<1x32xf32, #tpu.memory_space<vmem>>, %arg9: memref<1x32xf32, #tpu.memory_space<vmem>>, %arg10: memref<1x32xf32, #tpu.memory_space<vmem>>, %arg11: memref<32x32xbf16, #tpu.memory_space<vmem>>, %arg12: memref<1x32xf32, #tpu.memory_space<vmem>>, %arg13: memref<32x64xbf16, #tpu.memory_space<vmem>>, %arg14: memref<1x64xf32, #tpu.memory_space<vmem>>, %arg15: memref<32x32xbf16, #tpu.memory_space<vmem>>, %arg16: memref<1x32xf32, #tpu.memory_space<vmem>>, %arg17: memref<1x32xf32, #tpu.memory_space<vmem>>, %arg18: memref<1x32xf32, #tpu.memory_space<vmem>>, %arg19: memref<32x32xbf16, #tpu.memory_space<vmem>>, %arg20: memref<1x32xf32, #tpu.memory_space<vmem>>, %arg21: memref<1x32xf32, #tpu.memory_space<vmem>>, %arg22: memref<1x32xf32, #tpu.memory_space<vmem>>, %arg23: memref<1x8x32xf32, #tpu.memory_space<vmem>>, %arg24: memref<1x4x8x8xf32, #tpu.memory_space<vmem>>) attributes {dimension_semantics = [#tpu.dimension_semantics<parallel>], iteration_bounds = array<i64: 2>, scalar_prefetch = 0 : i64, scratch_operands = 0 : i64, tpu.core_type = #tpu.core_type<tc>, window_params = [{transform_indices = @transform_0, window_bounds = array<i64: 1, 8, 32>}, {transform_indices = @transform_1, window_bounds = array<i64: 1, 8, 32>}, {transform_indices = @transform_2, window_bounds = array<i64: 1, 8, 8>}, {transform_indices = @transform_3, window_bounds = array<i64: 1, 1, 8>}, {pipeline_mode = #tpu.pipeline_mode<synchronous>, transform_indices = @transform_4, window_bounds = array<i64: 32, 96>}, {pipeline_mode = #tpu.pipeline_mode<synchronous>, transform_indices = @transform_5, window_bounds = array<i64: 1, 96>}, {pipeline_mode = #tpu.pipeline_mode<synchronous>, transform_indices = @transform_6, window_bounds = array<i64: 32, 32>}, {pipeline_mode = #tpu.pipeline_mode<synchronous>, transform_indices = @transform_7, window_bounds = array<i64: 1, 32>}, {pipeline_mode = #tpu.pipeline_mode<synchronous>, transform_indices = @transform_8, window_bounds = array<i64: 1, 32>}, {pipeline_mode = #tpu.pipeline_mode<synchronous>, transform_indices = @transform_9, window_bounds = array<i64: 1, 32>}, {pipeline_mode = #tpu.pipeline_mode<synchronous>, transform_indices = @transform_10, window_bounds = array<i64: 32, 32>}, {pipeline_mode = #tpu.pipeline_mode<synchronous>, transform_indices = @transform_11, window_bounds = array<i64: 1, 32>}, {pipeline_mode = #tpu.pipeline_mode<synchronous>, transform_indices = @transform_12, window_bounds = array<i64: 32, 64>}, {pipeline_mode = #tpu.pipeline_mode<synchronous>, transform_indices = @transform_13, window_bounds = array<i64: 1, 64>}, {pipeline_mode = #tpu.pipeline_mode<synchronous>, transform_indices = @transform_14, window_bounds = array<i64: 32, 32>}, {pipeline_mode = #tpu.pipeline_mode<synchronous>, transform_indices = @transform_15, window_bounds = array<i64: 1, 32>}, {pipeline_mode = #tpu.pipeline_mode<synchronous>, transform_indices = @transform_16, window_bounds = array<i64: 1, 32>}, {pipeline_mode = #tpu.pipeline_mode<synchronous>, transform_indices = @transform_17, window_bounds = array<i64: 1, 32>}, {pipeline_mode = #tpu.pipeline_mode<synchronous>, transform_indices = @transform_18, window_bounds = array<i64: 32, 32>}, {pipeline_mode = #tpu.pipeline_mode<synchronous>, transform_indices = @transform_19, window_bounds = array<i64: 1, 32>}, {pipeline_mode = #tpu.pipeline_mode<synchronous>, transform_indices = @transform_20, window_bounds = array<i64: 1, 32>}, {pipeline_mode = #tpu.pipeline_mode<synchronous>, transform_indices = @transform_21, window_bounds = array<i64: 1, 32>}, {transform_indices = @transform_22, window_bounds = array<i64: 1, 8, 32>}, {transform_indices = @transform_23, window_bounds = array<i64: 1, 4, 8, 8>}]} {
    %c0 = arith.constant 0 : index
    %c0_0 = arith.constant 0 : index
    %c0_1 = arith.constant 0 : index
    %0 = vector.load %arg1[%c0, %c0_0, %c0_1] : memref<1x8x32xf32, #tpu.memory_space<vmem>>, vector<1x8x32xf32>
    %1 = vector.shape_cast %0 : vector<1x8x32xf32> to vector<8x32xf32>
    %c0_2 = arith.constant 0 : index
    %c0_3 = arith.constant 0 : index
    %c0_4 = arith.constant 0 : index
    %2 = vector.load %arg2[%c0_2, %c0_3, %c0_4] : memref<1x8x32xf32, #tpu.memory_space<vmem>>, vector<1x8x32xf32>
    %3 = vector.shape_cast %2 : vector<1x8x32xf32> to vector<8x32xf32>
    %c0_5 = arith.constant 0 : index
    %c0_6 = arith.constant 0 : index
    %c0_7 = arith.constant 0 : index
    %4 = vector.load %arg3[%c0_5, %c0_6, %c0_7] : memref<1x8x8xf32, #tpu.memory_space<vmem>>, vector<1x8x8xf32>
    %5 = vector.shape_cast %4 : vector<1x8x8xf32> to vector<8x8xf32>
    %c0_8 = arith.constant 0 : index
    %c0_9 = arith.constant 0 : index
    %c0_10 = arith.constant 0 : index
    %6 = vector.load %arg4[%c0_8, %c0_9, %c0_10] : memref<1x1x8xf32, #tpu.memory_space<vmem>>, vector<1x1x8xf32>
    %7 = vector.shape_cast %6 : vector<1x1x8xf32> to vector<1x8xf32>
    %8 = arith.truncf %1 : vector<8x32xf32> to vector<8x32xbf16>
    %c0_11 = arith.constant 0 : index
    %c0_12 = arith.constant 0 : index
    %9 = vector.load %arg5[%c0_11, %c0_12] : memref<32x96xbf16, #tpu.memory_space<vmem>>, vector<32x96xbf16>
    %cst = arith.constant dense<0.000000e+00> : vector<8x96xf32>
    %10 = tpu.matmul %8, %9, %cst {dimension_numbers = #tpu.dot_dimension_numbers<[1], [0], [0], [1], [0, 0, 1, 1], [], []>} : vector<8x32xbf16>, vector<32x96xbf16>, vector<8x96xf32> -> vector<8x96xf32>
    %c0_13 = arith.constant 0 : index
    %c0_14 = arith.constant 0 : index
    %11 = vector.load %arg6[%c0_13, %c0_14] : memref<1x96xf32, #tpu.memory_space<vmem>>, vector<1x96xf32>
    %12 = vector.broadcast %11 : vector<1x96xf32> to vector<8x96xf32>
    %13 = arith.addf %10, %12 : vector<8x96xf32>
    %14 = vector.extract_strided_slice %13 {offsets = [0, 0], sizes = [8, 32], strides = [1, 1]} : vector<8x96xf32> to vector<8x32xf32>
    %15 = vector.extract_strided_slice %13 {offsets = [0, 32], sizes = [8, 32], strides = [1, 1]} : vector<8x96xf32> to vector<8x32xf32>
    %16 = vector.extract_strided_slice %13 {offsets = [0, 64], sizes = [8, 32], strides = [1, 1]} : vector<8x96xf32> to vector<8x32xf32>
    %17 = arith.truncf %14 : vector<8x32xf32> to vector<8x32xbf16>
    %18 = arith.truncf %15 : vector<8x32xf32> to vector<8x32xbf16>
    %19 = arith.truncf %16 : vector<8x32xf32> to vector<8x32xbf16>
    %20 = vector.extract_strided_slice %17 {offsets = [0, 0], sizes = [8, 8], strides = [1, 1]} : vector<8x32xbf16> to vector<8x8xbf16>
    %21 = vector.extract_strided_slice %17 {offsets = [0, 8], sizes = [8, 8], strides = [1, 1]} : vector<8x32xbf16> to vector<8x8xbf16>
    %22 = vector.extract_strided_slice %17 {offsets = [0, 16], sizes = [8, 8], strides = [1, 1]} : vector<8x32xbf16> to vector<8x8xbf16>
    %23 = vector.extract_strided_slice %17 {offsets = [0, 24], sizes = [8, 8], strides = [1, 1]} : vector<8x32xbf16> to vector<8x8xbf16>
    %24 = vector.shape_cast %20 : vector<8x8xbf16> to vector<1x8x8xbf16>
    %25 = vector.shape_cast %21 : vector<8x8xbf16> to vector<1x8x8xbf16>
    %26 = vector.shape_cast %22 : vector<8x8xbf16> to vector<1x8x8xbf16>
    %27 = vector.shape_cast %23 : vector<8x8xbf16> to vector<1x8x8xbf16>
    %28 = tpu.concatenate %24, %25, %26, %27 in 0 : vector<1x8x8xbf16>, vector<1x8x8xbf16>, vector<1x8x8xbf16>, vector<1x8x8xbf16> -> vector<4x8x8xbf16>
    %29 = vector.extract_strided_slice %18 {offsets = [0, 0], sizes = [8, 8], strides = [1, 1]} : vector<8x32xbf16> to vector<8x8xbf16>
    %30 = vector.extract_strided_slice %18 {offsets = [0, 8], sizes = [8, 8], strides = [1, 1]} : vector<8x32xbf16> to vector<8x8xbf16>
    %31 = vector.extract_strided_slice %18 {offsets = [0, 16], sizes = [8, 8], strides = [1, 1]} : vector<8x32xbf16> to vector<8x8xbf16>
    %32 = vector.extract_strided_slice %18 {offsets = [0, 24], sizes = [8, 8], strides = [1, 1]} : vector<8x32xbf16> to vector<8x8xbf16>
    %33 = vector.shape_cast %29 : vector<8x8xbf16> to vector<1x8x8xbf16>
    %34 = vector.shape_cast %30 : vector<8x8xbf16> to vector<1x8x8xbf16>
    %35 = vector.shape_cast %31 : vector<8x8xbf16> to vector<1x8x8xbf16>
    %36 = vector.shape_cast %32 : vector<8x8xbf16> to vector<1x8x8xbf16>
    %37 = tpu.concatenate %33, %34, %35, %36 in 0 : vector<1x8x8xbf16>, vector<1x8x8xbf16>, vector<1x8x8xbf16>, vector<1x8x8xbf16> -> vector<4x8x8xbf16>
    "tpu.trace_start"() <{level = 10 : i32, message = "htd,hsd->hts"}> : () -> ()
    %cst_15 = arith.constant dense<0.000000e+00> : vector<4x8x8xf32>
    %38 = tpu.matmul %28, %37, %cst_15 {dimension_numbers = #tpu.dot_dimension_numbers<[2], [2], [1], [1], [0, 0, 0, 1, 1, 1], [0], [0]>} : vector<4x8x8xbf16>, vector<4x8x8xbf16>, vector<4x8x8xf32> -> vector<4x8x8xf32>
    "tpu.trace_stop"() : () -> ()
    %39 = vector.shape_cast %5 : vector<8x8xf32> to vector<1x8x8xf32>
    %40 = vector.broadcast %39 : vector<1x8x8xf32> to vector<4x8x8xf32>
    %41 = arith.addf %38, %40 : vector<4x8x8xf32>
    %cst_16 = arith.constant dense<0xFF800000> : vector<4x8xf32>
    %42 = vector.multi_reduction <maximumf>, %41, %cst_16 [2] : vector<4x8x8xf32> to vector<4x8xf32>
    %43 = vector.shape_cast %42 : vector<4x8xf32> to vector<4x8x1xf32>
    %44 = vector.broadcast %43 : vector<4x8x1xf32> to vector<4x8x8xf32>
    %45 = arith.subf %41, %44 : vector<4x8x8xf32>
    %46 = math.exp %45 : vector<4x8x8xf32>
    %cst_17 = arith.constant dense<0.000000e+00> : vector<4x8xf32>
    %47 = vector.multi_reduction <add>, %46, %cst_17 [2] : vector<4x8x8xf32> to vector<4x8xf32>
    %48 = vector.shape_cast %47 : vector<4x8xf32> to vector<4x8x1xf32>
    %49 = tpu.reciprocal %48 {approx = true} : vector<4x8x1xf32> -> vector<4x8x1xf32>
    %50 = vector.broadcast %49 : vector<4x8x1xf32> to vector<4x8x8xf32>
    %51 = arith.mulf %46, %50 : vector<4x8x8xf32>
    %52 = arith.truncf %51 : vector<4x8x8xf32> to vector<4x8x8xbf16>
    %53 = vector.extract_strided_slice %19 {offsets = [0, 0], sizes = [8, 8], strides = [1, 1]} : vector<8x32xbf16> to vector<8x8xbf16>
    %54 = vector.extract_strided_slice %19 {offsets = [0, 8], sizes = [8, 8], strides = [1, 1]} : vector<8x32xbf16> to vector<8x8xbf16>
    %55 = vector.extract_strided_slice %19 {offsets = [0, 16], sizes = [8, 8], strides = [1, 1]} : vector<8x32xbf16> to vector<8x8xbf16>
    %56 = vector.extract_strided_slice %19 {offsets = [0, 24], sizes = [8, 8], strides = [1, 1]} : vector<8x32xbf16> to vector<8x8xbf16>
    %57 = vector.shape_cast %53 : vector<8x8xbf16> to vector<1x8x8xbf16>
    %58 = vector.shape_cast %54 : vector<8x8xbf16> to vector<1x8x8xbf16>
    %59 = vector.shape_cast %55 : vector<8x8xbf16> to vector<1x8x8xbf16>
    %60 = vector.shape_cast %56 : vector<8x8xbf16> to vector<1x8x8xbf16>
    %61 = tpu.concatenate %57, %58, %59, %60 in 0 : vector<1x8x8xbf16>, vector<1x8x8xbf16>, vector<1x8x8xbf16>, vector<1x8x8xbf16> -> vector<4x8x8xbf16>
    "tpu.trace_start"() <{level = 10 : i32, message = "hts,hsd->htd"}> : () -> ()
    %cst_18 = arith.constant dense<0.000000e+00> : vector<4x8x8xf32>
    %62 = tpu.matmul %52, %61, %cst_18 {dimension_numbers = #tpu.dot_dimension_numbers<[2], [1], [1], [2], [0, 0, 0, 1, 1, 2], [0], [0]>} : vector<4x8x8xbf16>, vector<4x8x8xbf16>, vector<4x8x8xf32> -> vector<4x8x8xf32>
    "tpu.trace_stop"() : () -> ()
    %63 = vector.extract_strided_slice %62 {offsets = [0, 0, 0], sizes = [1, 8, 8], strides = [1, 1, 1]} : vector<4x8x8xf32> to vector<1x8x8xf32>
    %64 = vector.shape_cast %63 : vector<1x8x8xf32> to vector<8x8xf32>
    %65 = vector.extract_strided_slice %62 {offsets = [1, 0, 0], sizes = [1, 8, 8], strides = [1, 1, 1]} : vector<4x8x8xf32> to vector<1x8x8xf32>
    %66 = vector.shape_cast %65 : vector<1x8x8xf32> to vector<8x8xf32>
    %67 = vector.extract_strided_slice %62 {offsets = [2, 0, 0], sizes = [1, 8, 8], strides = [1, 1, 1]} : vector<4x8x8xf32> to vector<1x8x8xf32>
    %68 = vector.shape_cast %67 : vector<1x8x8xf32> to vector<8x8xf32>
    %69 = vector.extract_strided_slice %62 {offsets = [3, 0, 0], sizes = [1, 8, 8], strides = [1, 1, 1]} : vector<4x8x8xf32> to vector<1x8x8xf32>
    %70 = vector.shape_cast %69 : vector<1x8x8xf32> to vector<8x8xf32>
    %71 = tpu.concatenate %64, %66, %68, %70 in 1 : vector<8x8xf32>, vector<8x8xf32>, vector<8x8xf32>, vector<8x8xf32> -> vector<8x32xf32>
    %72 = arith.truncf %71 : vector<8x32xf32> to vector<8x32xbf16>
    %c0_19 = arith.constant 0 : index
    %c0_20 = arith.constant 0 : index
    %73 = vector.load %arg7[%c0_19, %c0_20] : memref<32x32xbf16, #tpu.memory_space<vmem>>, vector<32x32xbf16>
    %cst_21 = arith.constant dense<0.000000e+00> : vector<8x32xf32>
    %74 = tpu.matmul %72, %73, %cst_21 {dimension_numbers = #tpu.dot_dimension_numbers<[1], [0], [0], [1], [0, 0, 1, 1], [], []>} : vector<8x32xbf16>, vector<32x32xbf16>, vector<8x32xf32> -> vector<8x32xf32>
    %c0_22 = arith.constant 0 : index
    %c0_23 = arith.constant 0 : index
    %75 = vector.load %arg8[%c0_22, %c0_23] : memref<1x32xf32, #tpu.memory_space<vmem>>, vector<1x32xf32>
    %76 = vector.broadcast %75 : vector<1x32xf32> to vector<8x32xf32>
    %77 = arith.addf %74, %76 : vector<8x32xf32>
    %78 = arith.addf %1, %77 : vector<8x32xf32>
    %c0_24 = arith.constant 0 : index
    %c0_25 = arith.constant 0 : index
    %79 = vector.load %arg9[%c0_24, %c0_25] : memref<1x32xf32, #tpu.memory_space<vmem>>, vector<1x32xf32>
    %c0_26 = arith.constant 0 : index
    %c0_27 = arith.constant 0 : index
    %80 = vector.load %arg10[%c0_26, %c0_27] : memref<1x32xf32, #tpu.memory_space<vmem>>, vector<1x32xf32>
    %cst_28 = arith.constant dense<0.000000e+00> : vector<8xf32>
    %81 = vector.multi_reduction <add>, %78, %cst_28 [1] : vector<8x32xf32> to vector<8xf32>
    %82 = vector.shape_cast %81 : vector<8xf32> to vector<8x1xf32>
    %cst_29 = arith.constant 3.200000e+01 : f32
    %83 = vector.broadcast %cst_29 : f32 to vector<8x1xf32>
    %84 = arith.divf %82, %83 : vector<8x1xf32>
    %85 = vector.broadcast %84 : vector<8x1xf32> to vector<8x32xf32>
    %86 = arith.subf %78, %85 : vector<8x32xf32>
    %87 = arith.mulf %86, %86 : vector<8x32xf32>
    %cst_30 = arith.constant dense<0.000000e+00> : vector<8xf32>
    %88 = vector.multi_reduction <add>, %87, %cst_30 [1] : vector<8x32xf32> to vector<8xf32>
    %89 = vector.shape_cast %88 : vector<8xf32> to vector<8x1xf32>
    %cst_31 = arith.constant 3.200000e+01 : f32
    %90 = vector.broadcast %cst_31 : f32 to vector<8x1xf32>
    %91 = arith.divf %89, %90 : vector<8x1xf32>
    %92 = vector.broadcast %84 : vector<8x1xf32> to vector<8x32xf32>
    %93 = arith.subf %78, %92 : vector<8x32xf32>
    %cst_32 = arith.constant 9.99999974E-6 : f32
    %94 = vector.broadcast %cst_32 : f32 to vector<8x1xf32>
    %95 = arith.addf %91, %94 : vector<8x1xf32>
    %96 = math.rsqrt %95 : vector<8x1xf32>
    %97 = vector.broadcast %96 : vector<8x1xf32> to vector<8x32xf32>
    %98 = arith.mulf %93, %97 : vector<8x32xf32>
    %99 = vector.broadcast %79 : vector<1x32xf32> to vector<8x32xf32>
    %100 = arith.mulf %98, %99 : vector<8x32xf32>
    %101 = vector.broadcast %80 : vector<1x32xf32> to vector<8x32xf32>
    %102 = arith.addf %100, %101 : vector<8x32xf32>
    %103 = arith.truncf %102 : vector<8x32xf32> to vector<8x32xbf16>
    %c0_33 = arith.constant 0 : index
    %c0_34 = arith.constant 0 : index
    %104 = vector.load %arg11[%c0_33, %c0_34] : memref<32x32xbf16, #tpu.memory_space<vmem>>, vector<32x32xbf16>
    %cst_35 = arith.constant dense<0.000000e+00> : vector<8x32xf32>
    %105 = tpu.matmul %103, %104, %cst_35 {dimension_numbers = #tpu.dot_dimension_numbers<[1], [0], [0], [1], [0, 0, 1, 1], [], []>} : vector<8x32xbf16>, vector<32x32xbf16>, vector<8x32xf32> -> vector<8x32xf32>
    %c0_36 = arith.constant 0 : index
    %c0_37 = arith.constant 0 : index
    %106 = vector.load %arg12[%c0_36, %c0_37] : memref<1x32xf32, #tpu.memory_space<vmem>>, vector<1x32xf32>
    %107 = vector.broadcast %106 : vector<1x32xf32> to vector<8x32xf32>
    %108 = arith.addf %105, %107 : vector<8x32xf32>
    %109 = arith.truncf %3 : vector<8x32xf32> to vector<8x32xbf16>
    %c0_38 = arith.constant 0 : index
    %c0_39 = arith.constant 0 : index
    %110 = vector.load %arg13[%c0_38, %c0_39] : memref<32x64xbf16, #tpu.memory_space<vmem>>, vector<32x64xbf16>
    %cst_40 = arith.constant dense<0.000000e+00> : vector<8x64xf32>
    %111 = tpu.matmul %109, %110, %cst_40 {dimension_numbers = #tpu.dot_dimension_numbers<[1], [0], [0], [1], [0, 0, 1, 1], [], []>} : vector<8x32xbf16>, vector<32x64xbf16>, vector<8x64xf32> -> vector<8x64xf32>
    %c0_41 = arith.constant 0 : index
    %c0_42 = arith.constant 0 : index
    %112 = vector.load %arg14[%c0_41, %c0_42] : memref<1x64xf32, #tpu.memory_space<vmem>>, vector<1x64xf32>
    %113 = vector.broadcast %112 : vector<1x64xf32> to vector<8x64xf32>
    %114 = arith.addf %111, %113 : vector<8x64xf32>
    %115 = vector.extract_strided_slice %114 {offsets = [0, 0], sizes = [8, 32], strides = [1, 1]} : vector<8x64xf32> to vector<8x32xf32>
    %116 = vector.extract_strided_slice %114 {offsets = [0, 32], sizes = [8, 32], strides = [1, 1]} : vector<8x64xf32> to vector<8x32xf32>
    %117 = arith.truncf %108 : vector<8x32xf32> to vector<8x32xbf16>
    %118 = arith.truncf %115 : vector<8x32xf32> to vector<8x32xbf16>
    %119 = arith.truncf %116 : vector<8x32xf32> to vector<8x32xbf16>
    %120 = vector.extract_strided_slice %117 {offsets = [0, 0], sizes = [8, 8], strides = [1, 1]} : vector<8x32xbf16> to vector<8x8xbf16>
    %121 = vector.extract_strided_slice %117 {offsets = [0, 8], sizes = [8, 8], strides = [1, 1]} : vector<8x32xbf16> to vector<8x8xbf16>
    %122 = vector.extract_strided_slice %117 {offsets = [0, 16], sizes = [8, 8], strides = [1, 1]} : vector<8x32xbf16> to vector<8x8xbf16>
    %123 = vector.extract_strided_slice %117 {offsets = [0, 24], sizes = [8, 8], strides = [1, 1]} : vector<8x32xbf16> to vector<8x8xbf16>
    %124 = vector.shape_cast %120 : vector<8x8xbf16> to vector<1x8x8xbf16>
    %125 = vector.shape_cast %121 : vector<8x8xbf16> to vector<1x8x8xbf16>
    %126 = vector.shape_cast %122 : vector<8x8xbf16> to vector<1x8x8xbf16>
    %127 = vector.shape_cast %123 : vector<8x8xbf16> to vector<1x8x8xbf16>
    %128 = tpu.concatenate %124, %125, %126, %127 in 0 : vector<1x8x8xbf16>, vector<1x8x8xbf16>, vector<1x8x8xbf16>, vector<1x8x8xbf16> -> vector<4x8x8xbf16>
    %129 = vector.extract_strided_slice %118 {offsets = [0, 0], sizes = [8, 8], strides = [1, 1]} : vector<8x32xbf16> to vector<8x8xbf16>
    %130 = vector.extract_strided_slice %118 {offsets = [0, 8], sizes = [8, 8], strides = [1, 1]} : vector<8x32xbf16> to vector<8x8xbf16>
    %131 = vector.extract_strided_slice %118 {offsets = [0, 16], sizes = [8, 8], strides = [1, 1]} : vector<8x32xbf16> to vector<8x8xbf16>
    %132 = vector.extract_strided_slice %118 {offsets = [0, 24], sizes = [8, 8], strides = [1, 1]} : vector<8x32xbf16> to vector<8x8xbf16>
    %133 = vector.shape_cast %129 : vector<8x8xbf16> to vector<1x8x8xbf16>
    %134 = vector.shape_cast %130 : vector<8x8xbf16> to vector<1x8x8xbf16>
    %135 = vector.shape_cast %131 : vector<8x8xbf16> to vector<1x8x8xbf16>
    %136 = vector.shape_cast %132 : vector<8x8xbf16> to vector<1x8x8xbf16>
    %137 = tpu.concatenate %133, %134, %135, %136 in 0 : vector<1x8x8xbf16>, vector<1x8x8xbf16>, vector<1x8x8xbf16>, vector<1x8x8xbf16> -> vector<4x8x8xbf16>
    "tpu.trace_start"() <{level = 10 : i32, message = "htd,hsd->hts"}> : () -> ()
    %cst_43 = arith.constant dense<0.000000e+00> : vector<4x8x8xf32>
    %138 = tpu.matmul %128, %137, %cst_43 {dimension_numbers = #tpu.dot_dimension_numbers<[2], [2], [1], [1], [0, 0, 0, 1, 1, 1], [0], [0]>} : vector<4x8x8xbf16>, vector<4x8x8xbf16>, vector<4x8x8xf32> -> vector<4x8x8xf32>
    "tpu.trace_stop"() : () -> ()
    %139 = vector.shape_cast %7 : vector<1x8xf32> to vector<1x1x8xf32>
    %140 = vector.broadcast %139 : vector<1x1x8xf32> to vector<4x8x8xf32>
    %141 = arith.addf %138, %140 : vector<4x8x8xf32>
    %cst_44 = arith.constant dense<0xFF800000> : vector<4x8xf32>
    %142 = vector.multi_reduction <maximumf>, %141, %cst_44 [2] : vector<4x8x8xf32> to vector<4x8xf32>
    %143 = vector.shape_cast %142 : vector<4x8xf32> to vector<4x8x1xf32>
    %144 = vector.broadcast %143 : vector<4x8x1xf32> to vector<4x8x8xf32>
    %145 = arith.subf %141, %144 : vector<4x8x8xf32>
    %146 = math.exp %145 : vector<4x8x8xf32>
    %cst_45 = arith.constant dense<0.000000e+00> : vector<4x8xf32>
    %147 = vector.multi_reduction <add>, %146, %cst_45 [2] : vector<4x8x8xf32> to vector<4x8xf32>
    %148 = vector.shape_cast %147 : vector<4x8xf32> to vector<4x8x1xf32>
    %149 = tpu.reciprocal %148 {approx = true} : vector<4x8x1xf32> -> vector<4x8x1xf32>
    %150 = vector.broadcast %149 : vector<4x8x1xf32> to vector<4x8x8xf32>
    %151 = arith.mulf %146, %150 : vector<4x8x8xf32>
    %152 = arith.truncf %151 : vector<4x8x8xf32> to vector<4x8x8xbf16>
    %153 = vector.extract_strided_slice %119 {offsets = [0, 0], sizes = [8, 8], strides = [1, 1]} : vector<8x32xbf16> to vector<8x8xbf16>
    %154 = vector.extract_strided_slice %119 {offsets = [0, 8], sizes = [8, 8], strides = [1, 1]} : vector<8x32xbf16> to vector<8x8xbf16>
    %155 = vector.extract_strided_slice %119 {offsets = [0, 16], sizes = [8, 8], strides = [1, 1]} : vector<8x32xbf16> to vector<8x8xbf16>
    %156 = vector.extract_strided_slice %119 {offsets = [0, 24], sizes = [8, 8], strides = [1, 1]} : vector<8x32xbf16> to vector<8x8xbf16>
    %157 = vector.shape_cast %153 : vector<8x8xbf16> to vector<1x8x8xbf16>
    %158 = vector.shape_cast %154 : vector<8x8xbf16> to vector<1x8x8xbf16>
    %159 = vector.shape_cast %155 : vector<8x8xbf16> to vector<1x8x8xbf16>
    %160 = vector.shape_cast %156 : vector<8x8xbf16> to vector<1x8x8xbf16>
    %161 = tpu.concatenate %157, %158, %159, %160 in 0 : vector<1x8x8xbf16>, vector<1x8x8xbf16>, vector<1x8x8xbf16>, vector<1x8x8xbf16> -> vector<4x8x8xbf16>
    "tpu.trace_start"() <{level = 10 : i32, message = "hts,hsd->htd"}> : () -> ()
    %cst_46 = arith.constant dense<0.000000e+00> : vector<4x8x8xf32>
    %162 = tpu.matmul %152, %161, %cst_46 {dimension_numbers = #tpu.dot_dimension_numbers<[2], [1], [1], [2], [0, 0, 0, 1, 1, 2], [0], [0]>} : vector<4x8x8xbf16>, vector<4x8x8xbf16>, vector<4x8x8xf32> -> vector<4x8x8xf32>
    "tpu.trace_stop"() : () -> ()
    %163 = vector.extract_strided_slice %162 {offsets = [0, 0, 0], sizes = [1, 8, 8], strides = [1, 1, 1]} : vector<4x8x8xf32> to vector<1x8x8xf32>
    %164 = vector.shape_cast %163 : vector<1x8x8xf32> to vector<8x8xf32>
    %165 = vector.extract_strided_slice %162 {offsets = [1, 0, 0], sizes = [1, 8, 8], strides = [1, 1, 1]} : vector<4x8x8xf32> to vector<1x8x8xf32>
    %166 = vector.shape_cast %165 : vector<1x8x8xf32> to vector<8x8xf32>
    %167 = vector.extract_strided_slice %162 {offsets = [2, 0, 0], sizes = [1, 8, 8], strides = [1, 1, 1]} : vector<4x8x8xf32> to vector<1x8x8xf32>
    %168 = vector.shape_cast %167 : vector<1x8x8xf32> to vector<8x8xf32>
    %169 = vector.extract_strided_slice %162 {offsets = [3, 0, 0], sizes = [1, 8, 8], strides = [1, 1, 1]} : vector<4x8x8xf32> to vector<1x8x8xf32>
    %170 = vector.shape_cast %169 : vector<1x8x8xf32> to vector<8x8xf32>
    %171 = tpu.concatenate %164, %166, %168, %170 in 1 : vector<8x8xf32>, vector<8x8xf32>, vector<8x8xf32>, vector<8x8xf32> -> vector<8x32xf32>
    %172 = arith.truncf %171 : vector<8x32xf32> to vector<8x32xbf16>
    %c0_47 = arith.constant 0 : index
    %c0_48 = arith.constant 0 : index
    %173 = vector.load %arg15[%c0_47, %c0_48] : memref<32x32xbf16, #tpu.memory_space<vmem>>, vector<32x32xbf16>
    %cst_49 = arith.constant dense<0.000000e+00> : vector<8x32xf32>
    %174 = tpu.matmul %172, %173, %cst_49 {dimension_numbers = #tpu.dot_dimension_numbers<[1], [0], [0], [1], [0, 0, 1, 1], [], []>} : vector<8x32xbf16>, vector<32x32xbf16>, vector<8x32xf32> -> vector<8x32xf32>
    %c0_50 = arith.constant 0 : index
    %c0_51 = arith.constant 0 : index
    %175 = vector.load %arg16[%c0_50, %c0_51] : memref<1x32xf32, #tpu.memory_space<vmem>>, vector<1x32xf32>
    %176 = vector.broadcast %175 : vector<1x32xf32> to vector<8x32xf32>
    %177 = arith.addf %174, %176 : vector<8x32xf32>
    %178 = arith.addf %102, %177 : vector<8x32xf32>
    %c0_52 = arith.constant 0 : index
    %c0_53 = arith.constant 0 : index
    %179 = vector.load %arg17[%c0_52, %c0_53] : memref<1x32xf32, #tpu.memory_space<vmem>>, vector<1x32xf32>
    %c0_54 = arith.constant 0 : index
    %c0_55 = arith.constant 0 : index
    %180 = vector.load %arg18[%c0_54, %c0_55] : memref<1x32xf32, #tpu.memory_space<vmem>>, vector<1x32xf32>
    %cst_56 = arith.constant dense<0.000000e+00> : vector<8xf32>
    %181 = vector.multi_reduction <add>, %178, %cst_56 [1] : vector<8x32xf32> to vector<8xf32>
    %182 = vector.shape_cast %181 : vector<8xf32> to vector<8x1xf32>
    %cst_57 = arith.constant 3.200000e+01 : f32
    %183 = vector.broadcast %cst_57 : f32 to vector<8x1xf32>
    %184 = arith.divf %182, %183 : vector<8x1xf32>
    %185 = vector.broadcast %184 : vector<8x1xf32> to vector<8x32xf32>
    %186 = arith.subf %178, %185 : vector<8x32xf32>
    %187 = arith.mulf %186, %186 : vector<8x32xf32>
    %cst_58 = arith.constant dense<0.000000e+00> : vector<8xf32>
    %188 = vector.multi_reduction <add>, %187, %cst_58 [1] : vector<8x32xf32> to vector<8xf32>
    %189 = vector.shape_cast %188 : vector<8xf32> to vector<8x1xf32>
    %cst_59 = arith.constant 3.200000e+01 : f32
    %190 = vector.broadcast %cst_59 : f32 to vector<8x1xf32>
    %191 = arith.divf %189, %190 : vector<8x1xf32>
    %192 = vector.broadcast %184 : vector<8x1xf32> to vector<8x32xf32>
    %193 = arith.subf %178, %192 : vector<8x32xf32>
    %cst_60 = arith.constant 9.99999974E-6 : f32
    %194 = vector.broadcast %cst_60 : f32 to vector<8x1xf32>
    %195 = arith.addf %191, %194 : vector<8x1xf32>
    %196 = math.rsqrt %195 : vector<8x1xf32>
    %197 = vector.broadcast %196 : vector<8x1xf32> to vector<8x32xf32>
    %198 = arith.mulf %193, %197 : vector<8x32xf32>
    %199 = vector.broadcast %179 : vector<1x32xf32> to vector<8x32xf32>
    %200 = arith.mulf %198, %199 : vector<8x32xf32>
    %201 = vector.broadcast %180 : vector<1x32xf32> to vector<8x32xf32>
    %202 = arith.addf %200, %201 : vector<8x32xf32>
    %c0_61 = arith.constant 0 : index
    %c0_62 = arith.constant 0 : index
    %c0_63 = arith.constant 0 : index
    %c0_64 = arith.constant 0 : index
    %203 = vector.load %arg24[%c0_61, %c0_62, %c0_63, %c0_64] : memref<1x4x8x8xf32, #tpu.memory_space<vmem>>, vector<1x4x8x8xf32>
    %204 = vector.shape_cast %203 : vector<1x4x8x8xf32> to vector<4x8x8xf32>
    %205 = vector.shape_cast %151 : vector<4x8x8xf32> to vector<1x4x8x8xf32>
    tpu.vector_store %arg24[%c0_61, %c0_62, %c0_63, %c0_64], %205 {strides = array<i32>} : memref<1x4x8x8xf32, #tpu.memory_space<vmem>>, vector<1x4x8x8xf32>,
    %206 = arith.truncf %202 : vector<8x32xf32> to vector<8x32xbf16>
    %c0_65 = arith.constant 0 : index
    %c0_66 = arith.constant 0 : index
    %207 = vector.load %arg19[%c0_65, %c0_66] : memref<32x32xbf16, #tpu.memory_space<vmem>>, vector<32x32xbf16>
    %cst_67 = arith.constant dense<0.000000e+00> : vector<8x32xf32>
    %208 = tpu.matmul %206, %207, %cst_67 {dimension_numbers = #tpu.dot_dimension_numbers<[1], [0], [0], [1], [0, 0, 1, 1], [], []>} : vector<8x32xbf16>, vector<32x32xbf16>, vector<8x32xf32> -> vector<8x32xf32>
    %c0_68 = arith.constant 0 : index
    %c0_69 = arith.constant 0 : index
    %209 = vector.load %arg20[%c0_68, %c0_69] : memref<1x32xf32, #tpu.memory_space<vmem>>, vector<1x32xf32>
    %210 = vector.broadcast %209 : vector<1x32xf32> to vector<8x32xf32>
    %211 = arith.addf %208, %210 : vector<8x32xf32>
    %212 = arith.addf %202, %211 : vector<8x32xf32>
    %c0_70 = arith.constant 0 : index
    %c0_71 = arith.constant 0 : index
    %213 = vector.load %arg21[%c0_70, %c0_71] : memref<1x32xf32, #tpu.memory_space<vmem>>, vector<1x32xf32>
    %c0_72 = arith.constant 0 : index
    %c0_73 = arith.constant 0 : index
    %214 = vector.load %arg22[%c0_72, %c0_73] : memref<1x32xf32, #tpu.memory_space<vmem>>, vector<1x32xf32>
    %cst_74 = arith.constant dense<0.000000e+00> : vector<8xf32>
    %215 = vector.multi_reduction <add>, %212, %cst_74 [1] : vector<8x32xf32> to vector<8xf32>
    %216 = vector.shape_cast %215 : vector<8xf32> to vector<8x1xf32>
    %cst_75 = arith.constant 3.200000e+01 : f32
    %217 = vector.broadcast %cst_75 : f32 to vector<8x1xf32>
    %218 = arith.divf %216, %217 : vector<8x1xf32>
    %219 = vector.broadcast %218 : vector<8x1xf32> to vector<8x32xf32>
    %220 = arith.subf %212, %219 : vector<8x32xf32>
    %221 = arith.mulf %220, %220 : vector<8x32xf32>
    %cst_76 = arith.constant dense<0.000000e+00> : vector<8xf32>
    %222 = vector.multi_reduction <add>, %221, %cst_76 [1] : vector<8x32xf32> to vector<8xf32>
    %223 = vector.shape_cast %222 : vector<8xf32> to vector<8x1xf32>
    %cst_77 = arith.constant 3.200000e+01 : f32
    %224 = vector.broadcast %cst_77 : f32 to vector<8x1xf32>
    %225 = arith.divf %223, %224 : vector<8x1xf32>
    %226 = vector.broadcast %218 : vector<8x1xf32> to vector<8x32xf32>
    %227 = arith.subf %212, %226 : vector<8x32xf32>
    %cst_78 = arith.constant 9.99999974E-6 : f32
    %228 = vector.broadcast %cst_78 : f32 to vector<8x1xf32>
    %229 = arith.addf %225, %228 : vector<8x1xf32>
    %230 = math.rsqrt %229 : vector<8x1xf32>
    %231 = vector.broadcast %230 : vector<8x1xf32> to vector<8x32xf32>
    %232 = arith.mulf %227, %231 : vector<8x32xf32>
    %233 = vector.broadcast %213 : vector<1x32xf32> to vector<8x32xf32>
    %234 = arith.mulf %232, %233 : vector<8x32xf32>
    %235 = vector.broadcast %214 : vector<1x32xf32> to vector<8x32xf32>
    %236 = arith.addf %234, %235 : vector<8x32xf32>
    %c0_79 = arith.constant 0 : index
    %c0_80 = arith.constant 0 : index
    %c0_81 = arith.constant 0 : index
    %237 = vector.load %arg23[%c0_79, %c0_80, %c0_81] : memref<1x8x32xf32, #tpu.memory_space<vmem>>, vector<1x8x32xf32>
    %238 = vector.shape_cast %237 : vector<1x8x32xf32> to vector<8x32xf32>
    %239 = vector.shape_cast %236 : vector<8x32xf32> to vector<1x8x32xf32>
    tpu.vector_store %arg23[%c0_79, %c0_80, %c0_81], %239 {strides = array<i32>} : memref<1x8x32xf32, #tpu.memory_space<vmem>>, vector<1x8x32xf32>,
    return
  }
  func.func @transform_0(%arg0: i32) -> (i32, i32, i32) {
    %c0_i32 = arith.constant 0 : i32
    %c0_i32_0 = arith.constant 0 : i32
    %c0_i32_1 = arith.constant 0 : i32
    return %arg0, %c0_i32, %c0_i32_0 : i32, i32, i32
  }
  func.func @transform_1(%arg0: i32) -> (i32, i32, i32) {
    %c0_i32 = arith.constant 0 : i32
    %c0_i32_0 = arith.constant 0 : i32
    %c0_i32_1 = arith.constant 0 : i32
    return %arg0, %c0_i32, %c0_i32_0 : i32, i32, i32
  }
  func.func @transform_2(%arg0: i32) -> (i32, i32, i32) {
    %c0_i32 = arith.constant 0 : i32
    %c0_i32_0 = arith.constant 0 : i32
    %c0_i32_1 = arith.constant 0 : i32
    return %arg0, %c0_i32, %c0_i32_0 : i32, i32, i32
  }
  func.func @transform_3(%arg0: i32) -> (i32, i32, i32) {
    %c0_i32 = arith.constant 0 : i32
    %c0_i32_0 = arith.constant 0 : i32
    %c0_i32_1 = arith.constant 0 : i32
    return %arg0, %c0_i32, %c0_i32_0 : i32, i32, i32
  }
  func.func @transform_4(%arg0: i32) -> (i32, i32) {
    %c0_i32 = arith.constant 0 : i32
    %c0_i32_0 = arith.constant 0 : i32
    %c0_i32_1 = arith.constant 0 : i32
    return %c0_i32, %c0_i32_0 : i32, i32
  }
  func.func @transform_5(%arg0: i32) -> (i32, i32) {
    %c0_i32 = arith.constant 0 : i32
    %c0_i32_0 = arith.constant 0 : i32
    %c0_i32_1 = arith.constant 0 : i32
    return %c0_i32, %c0_i32_0 : i32, i32
  }
  func.func @transform_6(%arg0: i32) -> (i32, i32) {
    %c0_i32 = arith.constant 0 : i32
    %c0_i32_0 = arith.constant 0 : i32
    %c0_i32_1 = arith.constant 0 : i32
    return %c0_i32, %c0_i32_0 : i32, i32
  }
  func.func @transform_7(%arg0: i32) -> (i32, i32) {
    %c0_i32 = arith.constant 0 : i32
    %c0_i32_0 = arith.constant 0 : i32
    %c0_i32_1 = arith.constant 0 : i32
    return %c0_i32, %c0_i32_0 : i32, i32
  }
  func.func @transform_8(%arg0: i32) -> (i32, i32) {
    %c0_i32 = arith.constant 0 : i32
    %c0_i32_0 = arith.constant 0 : i32
    %c0_i32_1 = arith.constant 0 : i32
    return %c0_i32, %c0_i32_0 : i32, i32
  }
  func.func @transform_9(%arg0: i32) -> (i32, i32) {
    %c0_i32 = arith.constant 0 : i32
    %c0_i32_0 = arith.constant 0 : i32
    %c0_i32_1 = arith.constant 0 : i32
    return %c0_i32, %c0_i32_0 : i32, i32
  }
  func.func @transform_10(%arg0: i32) -> (i32, i32) {
    %c0_i32 = arith.constant 0 : i32
    %c0_i32_0 = arith.constant 0 : i32
    %c0_i32_1 = arith.constant 0 : i32
    return %c0_i32, %c0_i32_0 : i32, i32
  }
  func.func @transform_11(%arg0: i32) -> (i32, i32) {
    %c0_i32 = arith.constant 0 : i32
    %c0_i32_0 = arith.constant 0 : i32
    %c0_i32_1 = arith.constant 0 : i32
    return %c0_i32, %c0_i32_0 : i32, i32
  }
  func.func @transform_12(%arg0: i32) -> (i32, i32) {
    %c0_i32 = arith.constant 0 : i32
    %c0_i32_0 = arith.constant 0 : i32
    %c0_i32_1 = arith.constant 0 : i32
    return %c0_i32, %c0_i32_0 : i32, i32
  }
  func.func @transform_13(%arg0: i32) -> (i32, i32) {
    %c0_i32 = arith.constant 0 : i32
    %c0_i32_0 = arith.constant 0 : i32
    %c0_i32_1 = arith.constant 0 : i32
    return %c0_i32, %c0_i32_0 : i32, i32
  }
  func.func @transform_14(%arg0: i32) -> (i32, i32) {
    %c0_i32 = arith.constant 0 : i32
    %c0_i32_0 = arith.constant 0 : i32
    %c0_i32_1 = arith.constant 0 : i32
    return %c0_i32, %c0_i32_0 : i32, i32
  }
  func.func @transform_15(%arg0: i32) -> (i32, i32) {
    %c0_i32 = arith.constant 0 : i32
    %c0_i32_0 = arith.constant 0 : i32
    %c0_i32_1 = arith.constant 0 : i32
    return %c0_i32, %c0_i32_0 : i32, i32
  }
  func.func @transform_16(%arg0: i32) -> (i32, i32) {
    %c0_i32 = arith.constant 0 : i32
    %c0_i32_0 = arith.constant 0 : i32
    %c0_i32_1 = arith.constant 0 : i32
    return %c0_i32, %c0_i32_0 : i32, i32
  }
  func.func @transform_17(%arg0: i32) -> (i32, i32) {
    %c0_i32 = arith.constant 0 : i32
    %c0_i32_0 = arith.constant 0 : i32
    %c0_i32_1 = arith.constant 0 : i32
    return %c0_i32, %c0_i32_0 : i32, i32
  }
  func.func @transform_18(%arg0: i32) -> (i32, i32) {
    %c0_i32 = arith.constant 0 : i32
    %c0_i32_0 = arith.constant 0 : i32
    %c0_i32_1 = arith.constant 0 : i32
    return %c0_i32, %c0_i32_0 : i32, i32
  }
  func.func @transform_19(%arg0: i32) -> (i32, i32) {
    %c0_i32 = arith.constant 0 : i32
    %c0_i32_0 = arith.constant 0 : i32
    %c0_i32_1 = arith.constant 0 : i32
    return %c0_i32, %c0_i32_0 : i32, i32
  }
  func.func @transform_20(%arg0: i32) -> (i32, i32) {
    %c0_i32 = arith.constant 0 : i32
    %c0_i32_0 = arith.constant 0 : i32
    %c0_i32_1 = arith.constant 0 : i32
    return %c0_i32, %c0_i32_0 : i32, i32
  }
  func.func @transform_21(%arg0: i32) -> (i32, i32) {
    %c0_i32 = arith.constant 0 : i32
    %c0_i32_0 = arith.constant 0 : i32
    %c0_i32_1 = arith.constant 0 : i32
    return %c0_i32, %c0_i32_0 : i32, i32
  }
  func.func @transform_22(%arg0: i32) -> (i32, i32, i32) {
    %c0_i32 = arith.constant 0 : i32
    %c0_i32_0 = arith.constant 0 : i32
    %c0_i32_1 = arith.constant 0 : i32
    return %arg0, %c0_i32, %c0_i32_0 : i32, i32, i32
  }
  func.func @transform_23(%arg0: i32) -> (i32, i32, i32, i32) {
    %c0_i32 = arith.constant 0 : i32
    %c0_i32_0 = arith.constant 0 : i32
    %c0_i32_1 = arith.constant 0 : i32
    %c0_i32_2 = arith.constant 0 : i32
    return %arg0, %c0_i32, %c0_i32_0, %c0_i32_1 : i32, i32, i32, i32
  }
}

</mosaic_0001>

<bundles_post_ra>
// kernel: tpu_custom_call.1
= control target key start
LH: loop header
LB: loop body
LE: loop exit
PB: predicated region body
PF: predicated region fallthrough
CT: control target
= control target key end

     0   :  { %s4716_s0 = inlined_call_operand.hbm [shape: f32[2,8,32], index: 0, kind: input, shape index: {}]   ;;  %s4717_s1 = inlined_call_operand.hbm [shape: f32[2,8,32], index: 1, kind: input, shape index: {}]   ;;  %s4718_s2 = inlined_call_operand.hbm [shape: f32[2,8,8], index: 2, kind: input, shape index: {}]   ;;  %s4719_s3 = inlined_call_operand.hbm [shape: f32[2,1,8], index: 3, kind: input, shape index: {}]   ;;  %s4720_s4 = inlined_call_operand.hbm [shape: bf16[32,96], index: 4, kind: input, shape index: {}]   ;;  %s4721_s5 = inlined_call_operand.hbm [shape: f32[1,96], index: 5, kind: input, shape index: {}]   ;;  %s4722_s6 = inlined_call_operand.hbm [shape: bf16[32,32], index: 6, kind: input, shape index: {}]   ;;  %s4723_s7 = inlined_call_operand.hbm [shape: f32[1,32], index: 7, kind: input, shape index: {}]   ;;  %s4724_s8 = inlined_call_operand.hbm [shape: f32[1,32], index: 8, kind: input, shape index: {}]   ;;  %s4725_s9 = inlined_call_operand.hbm [shape: f32[1,32], index: 9, kind: input, shape index: {}]   ;;  %s4726_s10 = inlined_call_operand.vmem [shape: bf16[32,32], index: 10, kind: input, shape index: {}]   ;;  %s4727_s11 = inlined_call_operand.hbm [shape: f32[1,32], index: 11, kind: input, shape index: {}]   ;;  %s4728_s12 = inlined_call_operand.hbm [shape: bf16[32,64], index: 12, kind: input, shape index: {}]   ;;  %s4729_s13 = inlined_call_operand.hbm [shape: f32[1,64], index: 13, kind: input, shape index: {}]   ;;  %s4730_s14 = inlined_call_operand.hbm [shape: bf16[32,32], index: 14, kind: input, shape index: {}]   ;;  %s4731_s15 = inlined_call_operand.hbm [shape: f32[1,32], index: 15, kind: input, shape index: {}]   ;;  %s4732_s16 = inlined_call_operand.hbm [shape: f32[1,32], index: 16, kind: input, shape index: {}]   ;;  %s4733_s17 = inlined_call_operand.hbm [shape: f32[1,32], index: 17, kind: input, shape index: {}]   ;;  %s4734_s18 = inlined_call_operand.vmem [shape: bf16[32,32], index: 18, kind: input, shape index: {}]   ;;  %s4735_s19 = inlined_call_operand.vmem [shape: f32[1,32], index: 19, kind: input, shape index: {}]   ;;  %s4736_s20 = inlined_call_operand.vmem [shape: f32[1,32], index: 20, kind: input, shape index: {}]   ;;  %s4737_s21 = inlined_call_operand.vmem [shape: f32[1,32], index: 21, kind: input, shape index: {}]   ;;  %s4738_s22 = inlined_call_operand.hbm [shape: f32[2,8,32], index: 22, kind: output, shape index: {0}]   ;;  %s4739_s23 = inlined_call_operand.hbm [shape: f32[2,4,8,8], index: 23, kind: output, shape index: {1}]  }
   0x1   :  { %4771 = sst [smem:[#allocation50_spill]] %s4716_s0 }
   0x2   :  { %4772 = sst [smem:[#allocation51_spill]] %s4717_s1 }
   0x3   :  { %4773 = sst [smem:[#allocation52_spill]] %s4718_s2 }
   0x4   :  { %4774 = sst [smem:[#allocation53_spill]] %s4719_s3 }
   0x5   :  { %4775 = sst [smem:[#allocation54_spill]] %s4720_s4 }
   0x6   :  { %4776 = sst [smem:[#allocation55_spill]] %s4721_s5 }
   0x7   :  { %4777 = sst [smem:[#allocation56_spill]] %s4722_s6 }
   0x8   :  { %4778 = sst [smem:[#allocation57_spill]] %s4723_s7 }
   0x9   :  { %4779 = sst [smem:[#allocation58_spill]] %s4724_s8 }
   0xa   :  { %4780 = sst [smem:[#allocation59_spill]] %s4725_s9 }
   0xb   :  { %4781 = sst [smem:[#allocation60_spill]] %s4726_s10 }
   0xc   :  { %4782 = sst [smem:[#allocation61_spill]] %s4728_s12 }
   0xd   :  { %4783 = sst [smem:[#allocation62_spill]] %s4730_s14 }
   0xe   :  { %4784 = sst [smem:[#allocation63_spill]] %s4732_s16 }
   0xf   :  { %4785 = sst [smem:[#allocation64_spill]] %s4734_s18 }
  0x10   :  { %4786 = sst [smem:[#allocation65_spill]] %s4735_s19 }
  0x11   :  { %4787 = sst [smem:[#allocation66_spill]] %s4736_s20 }
  0x12   :  { %4788 = sst [smem:[#allocation67_spill]] %s4737_s21 }
  0x13   :  { %4789 = sst [smem:[#allocation68_spill]] %s4738_s22 }
  0x14   :  { %4790 = sst [smem:[#allocation69_spill]] %s4739_s23 }
  0x15   :  { %29 = vsyncpa [#allocation3], 0 }
  0x16   :  { %31 = vsyncpa [#allocation3 + $0x1], 0 }
  0x17   :  { %32 = vsyncpa [#allocation6], 0 }
  0x18   :  { %34 = vsyncpa [#allocation6 + $0x1], 0 }
  0x19   :  { %35 = vsyncpa [#allocation9], 0 }
  0x1a   :  { %37 = vsyncpa [#allocation9 + $0x1], 0 }
  0x1b   :  { %38 = vsyncpa [#allocation12], 0 }
  0x1c   :  { %39 = vsyncpa [#allocation15], 0 }
  0x1d   :  { %40 = vsyncpa [#allocation18], 0 }
  0x1e   :  { %41 = vsyncpa [#allocation21], 0 }
  0x1f   :  { %42 = vsyncpa [#allocation24], 0 }
  0x20   :  { %43 = vsyncpa [#allocation27], 0 }
  0x21   :  { %44 = vsyncpa [#allocation4], 0 }
  0x22   :  { %46 = vsyncpa [#allocation4 + $0x1], 0 }
  0x23   :  { %47 = vsyncpa [#allocation31], 0 }
  0x24   :  { %49 = vsyncpa [#allocation31 + $0x1], 0  ;;  %s4044_s4 = smov 0   ;;  %s4046_s30 = smov 0  }
  0x25   :  { %s4048_s24 = smov 0   ;;  %s4050_s25 = smov 0  }
  0x26 LB: > { %4791 = sst [smem:[#allocation44_spill]] %s3878_s4  ;;  %s3892_s5 = smov [#allocation10]   ;;  %s3890_s25 = sphi %s4050_s25, %s4855_s25   ;;  %s3886_s24 = sphi %s4048_s24, %s4857_s24   ;;  %s3882_s30 = sphi %s4046_s30, %s4859_s30   ;;  %s3878_s4 = sphi %s4044_s4, %s4858_s4  }
  0x27   : > { %4792 = sst [smem:[#allocation45_spill]] %s3886_s24  ;;  %s606_s1 = sshll.u32 %s3892_s5, 4  ;;  %s607_s1 = int_to_ptr.vmem [resolvable:$true] %s606_s1 }
  0x28   : > { %s4065_s26 = sadd.s32 4294967295, %s3890_s25   ;;  %p2760_p0 = scmp.ge.s32.totalorder %s3890_s25, 1 }
  0x29   : > { %p4747_p1 = scmp.eq.s32.totalorder %s4065_s26, 0  ;;  %p594_p2 = scmp.lt.s32.totalorder %s3890_s25, 3 }
  0x2a   : > { %s3893_s6 = smov [#allocation11]   ;;  %s3894_s28 = smov [#allocation14]  }
  0x2b   : > { %p4070_p3 = pnand %p2760_p0, %p594_p2  ;;  %s620_s27 = sshll.u32 %s3893_s6, 4  ;;  %s621_s27 = int_to_ptr.vmem [resolvable:$true] %s620_s27 }
  0x2c   : > { %s644_s29 = sshll.u32 %s3894_s28, 4  ;;  %s3321_s0 = scalar_lea.vmem %s607_s1, 256  ;;  %s4083_s29 = int_to_ptr.vmem [resolvable:$true] %s644_s29 }
  0x2d   : > { %s4793_s2 = scalar_select %p4070_p3, 1, 0 }
  0x2e   : > { %p3114_p5 = pneg %p4070_p3  ;;  %p3322_p8 = scmp.ne.s32.totalorder %s607_s1, %s3321_s0 }
  0x2f   : > { %p3329_p11 = scmp.lt.s32.totalorder %s607_s1, %s607_s1  ;;  %p3330_p12 = scmp.lt.s32.totalorder %s3321_s0, %s3321_s0 }
  0x30   : > { %p4079_p6 = pnand %p3114_p5, %p4747_p1 }
  0x31   : > { %p3331_p13 = por %p3330_p12, %p3329_p11 }
  0x32   : > { %s4794_s7 = scalar_select %p4079_p6, 1, 0 }
  0x33   : > { %p4087_p7 = pneg %p4079_p6 }
  0x35   : > { %s4795_s3 = scalar_select %p4087_p7, 1, 0 }
  0x36   : > { %p3324_p9 = pnand %p3322_p8, %p4087_p7 }
  0x38   : > { %p3325_p10 = pneg %p3324_p9 }
  0x3a   : > { %p3332_p0 = pnand %p3331_p13, %p3325_p10 }
  0x3c   : > { %3335 = shalt.err (!%p3332_p0)
}
  0x3d   : > { %s4749_s5 = smov 64   ;;  %s4750_s6 = smov 4  }
  0x3e   : > { %s4796_s21 = sld [smem:[#allocation54_spill]]  ;;  %s3347_s20 = scalar_lea.vmem %s621_s27, 16 }
  0x3f   : > { %p3348_p2 = scmp.ne.s32.totalorder %s621_s27, %s3347_s20  ;;  %s3354_s0 = scalar_lea.vmem %s621_s27, 32 }
  0x40   : > { %p3355_p9 = scmp.lt.s32.totalorder %s621_s27, %s621_s27  ;;  %p3356_p10 = scmp.lt.s32.totalorder %s3354_s0, %s3347_s20 }
  0x41   : > { %p3350_p5 = pnand %p3348_p2, %p4087_p7 }
  0x42   : > { %p3357_p11 = por %p3356_p10, %p3355_p9 }
  0x43   : > { %p3351_p8 = pneg %p3350_p5 }
  0x44   : > { %3117 = dma.hbm_to_vmem [thread:$0]  (!%p4079_p6), %s4796_s21, 256, %s607_s1, [#allocation9], %s4749_s5, %s4749_s5, %s4750_s6  }
  0x45   : > { %p3358_p12 = pnand %p3357_p11, %p3351_p8 }
  0x47   : > { %3361 = shalt.err (!%p3358_p12)
}
  0x48   : > { %s4797_s18 = sld [smem:[#allocation55_spill]]  ;;  %s3373_s21 = scalar_lea.vmem %s4083_s29, 16 }
  0x49   : > { %p3374_p13 = scmp.ne.s32.totalorder %s4083_s29, %s3373_s21  ;;  %s3380_s20 = scalar_lea.vmem %s4083_s29, 32 }
  0x4a   : > { %p3381_p5 = scmp.lt.s32.totalorder %s4083_s29, %s4083_s29  ;;  %p3382_p8 = scmp.lt.s32.totalorder %s3380_s20, %s3373_s21 }
  0x4b   : > { %p3376_p0 = pnand %p3374_p13, %p4087_p7 }
  0x4c   : > { %p3383_p9 = por %p3382_p8, %p3381_p5 }
  0x4d   : > { %p3377_p2 = pneg %p3376_p0 }
  0x4e   : > { %3120 = dma.hbm_to_vmem [thread:$0]  (!%p4079_p6), %s4797_s18, 16, %s621_s27, [#allocation12]  }
  0x4f   : > { %p3384_p10 = pnand %p3383_p9, %p3377_p2 }
  0x51   : > { %3387 = shalt.err (!%p3384_p10)
}
  0x52   : > { %s4798_s23 = sld [smem:[#allocation57_spill]]  ;;  %s3897_s18 = smov [#allocation17]  }
  0x53   : > { %s666_s1 = sshll.u32 %s3897_s18, 4  ;;  %s3898_s27 = smov [#allocation20]   ;;  %s667_s1 = int_to_ptr.vmem [resolvable:$true] %s666_s1 }
  0x54   : > { %s690_s28 = sshll.u32 %s3898_s27, 4  ;;  %s3399_s0 = scalar_lea.vmem %s667_s1, 16  ;;  %s691_s28 = int_to_ptr.vmem [resolvable:$true] %s690_s28 }
  0x55   : > { %p3400_p11 = scmp.ne.s32.totalorder %s667_s1, %s3399_s0  ;;  %s3406_s21 = scalar_lea.vmem %s667_s1, 32 }
  0x56   : > { %p3407_p0 = scmp.lt.s32.totalorder %s667_s1, %s667_s1  ;;  %p3408_p2 = scmp.lt.s32.totalorder %s3406_s21, %s3399_s0 }
  0x57   : > { %p3402_p12 = pnand %p3400_p11, %p4087_p7 }
  0x58   : > { %3126 = dma.hbm_to_vmem [thread:$0]  (!%p4079_p6), %s4798_s23, 16, %s4083_s29, [#allocation15]  }
  0x59   : > { %p3403_p13 = pneg %p3402_p12  ;;  %p3409_p5 = por %p3408_p2, %p3407_p0 }
  0x5b   : > { %p3410_p8 = pnand %p3409_p5, %p3403_p13 }
  0x5d   : > { %3413 = shalt.err (!%p3410_p8)
}
  0x5e   : > { %s4799_s9 = sld [smem:[#allocation59_spill]]  ;;  %s3425_s19 = scalar_lea.vmem %s691_s28, 256 }
  0x5f   : > { %p3426_p9 = scmp.ne.s32.totalorder %s691_s28, %s3425_s19  ;;  %p3433_p12 = scmp.lt.s32.totalorder %s691_s28, %s691_s28 }
  0x60   : > { %p3434_p4 = scmp.lt.s32.totalorder %s3425_s19, %s3425_s19 }
  0x61   : > { %p3428_p10 = pnand %p3426_p9, %p4087_p7 }
  0x62   : > { %p3435_p1 = por %p3434_p4, %p3433_p12 }
  0x63   : > { %p3429_p11 = pneg %p3428_p10 }
  0x64   : > { %3132 = dma.hbm_to_vmem [thread:$0]  (!%p4079_p6), %s4799_s9, 16, %s667_s1, [#allocation18]  }
  0x65   : > { %p3436_p3 = pnand %p3435_p1, %p3429_p11 }
  0x67   : > { %3439 = shalt.err (!%p3436_p3)
}
  0x68   : > { %s4800_s12 = sld [smem:[#allocation61_spill]]  ;;  %s3899_s18 = smov [#allocation23]  }
  0x69   : > { %s714_s1 = sshll.u32 %s3899_s18, 4  ;;  %s3900_s27 = smov [#allocation26]   ;;  %s715_s1 = int_to_ptr.vmem [resolvable:$true] %s714_s1 }
  0x6a   : > { %s739_s0 = sshll.u32 %s3900_s27, 4  ;;  %s3451_s21 = scalar_lea.vmem %s715_s1, 256  ;;  %s740_s0 = int_to_ptr.vmem [resolvable:$true] %s739_s0 }
  0x6b   : > { %p3452_p13 = scmp.ne.s32.totalorder %s715_s1, %s3451_s21  ;;  %p3459_p4 = scmp.lt.s32.totalorder %s715_s1, %s715_s1 }
  0x6c   : > { %p3460_p0 = scmp.lt.s32.totalorder %s3451_s21, %s3451_s21 }
  0x6d   : > { %p3454_p1 = pnand %p3452_p13, %p4087_p7 }
  0x6e   : > { %3138 = dma.hbm_to_vmem [thread:$0]  (!%p4079_p6), %s4800_s12, 256, %s691_s28, [#allocation21], %s4749_s5, %s4749_s5, %s4750_s6  }
  0x6f   : > { %p3455_p3 = pneg %p3454_p1  ;;  %p3461_p2 = por %p3460_p0, %p3459_p4 }
  0x71   : > { %p3462_p5 = pnand %p3461_p2, %p3455_p3 }
  0x73   : > { %3465 = shalt.err (!%p3462_p5)
}
  0x74   : > { %s4801_s14 = sld [smem:[#allocation62_spill]]  ;;  %s3477_s29 = scalar_lea.vmem %s740_s0, 16 }
  0x75   : > { %p3478_p8 = scmp.ne.s32.totalorder %s740_s0, %s3477_s29  ;;  %s3484_s19 = scalar_lea.vmem %s740_s0, 32 }
  0x76   : > { %p3485_p11 = scmp.lt.s32.totalorder %s740_s0, %s740_s0  ;;  %p3486_p12 = scmp.lt.s32.totalorder %s3484_s19, %s3477_s29 }
  0x77   : > { %p3480_p9 = pnand %p3478_p8, %p4087_p7 }
  0x78   : > { %p3487_p13 = por %p3486_p12, %p3485_p11 }
  0x79   : > { %p3481_p10 = pneg %p3480_p9 }
  0x7a   : > { %3144 = dma.hbm_to_vmem [thread:$0]  (!%p4079_p6), %s4801_s14, 256, %s715_s1, [#allocation24], %s4749_s5, %s4749_s5, %s4750_s6  }
  0x7b   : > { %p3488_p1 = pnand %p3487_p13, %p3481_p10 }
  0x7d   : > { %3491 = shalt.err (!%p3488_p1)
}
  0x7e   : > { %s4802_s16 = sld [smem:[#allocation63_spill]]  ;;  %s2759_s18 = sadd.s32 4294967294, %s3890_s25  }
  0x7f   : > { %s4157_s1 = sadd.s32 1, %s3890_s25   ;;  %s62_s27 = sadd.s32 1, %s3886_s24 }
  0x80   : > { %4803 = sst [smem:[#allocation46_spill]] %s4157_s1  ;;  %s59_s21 = ssub.s32 %s3890_s25, %s4157_s1 }
  0x81   : > { %p69_p3 = scmp.ne.s32.totalorder %s3886_s24, %s3882_s30  ;;  %p60_p4 = scmp.eq.s32.totalorder %s59_s21, 0 }
  0x82   : > { %p70_p0 = scmp.eq.s32.totalorder %s3890_s25, 0  ;;  %p75_p2 = scmp.ne.s32.totalorder %s3882_s30, %s3878_s4 }
  0x83   : > { %p555_p5 = scmp.eq.s32.totalorder %s4065_s26, 1  ;;  %p4805_p9 = scmp.eq.s32.totalorder %s4065_s26, 0 }
  0x84   : > { %3150 = dma.hbm_to_vmem [thread:$0]  (!%p4079_p6), %s4802_s16, 16, %s740_s0, [#allocation27]  }
  0x85   : > { %s4169_s28 = scalar_select %p60_p4, %s3886_s24, %s62_s27  }
  0x86   : > { %p71_p8 = por %p70_p0, %p69_p3  ;;  %p4173_p10 = por %p4805_p9, %p75_p2 }
  0x87   : > { %4804 = sst [smem:[#allocation47_spill]] %s4169_s28  ;;  %p4177_p11 = por %p555_p5, %p69_p3 }
  0x88   : > { %s4806_s0 = scalar_select %p4173_p10, 1, 0 }
  0x89   : > { %s4807_s20 = scalar_select %p4177_p11, 1, 0 }
  0x8a   : > { %p561_p12 = scmp.eq.s32.totalorder %s2759_s18, 1  ;;  %p3187_p13 = scmp.lt.s32.totalorder %s3890_s25, 2 }
  0x8b   : > { %4808 = sst [smem:[#allocation48_spill]] %s4807_s20  ;;  %s4183_s29 = sand.u32 1, %s3886_s24  }
  0x8c   : > { %p4185_p1 = por %p561_p12, %p75_p2  ;;  %s4190_s22 = sshll.u32 %s4183_s29, 3 }
  0x8d   : > { %s4193_s23 = sshll.u32 %s3890_s25, 7  ;;  %p4195_p4 = pnand %p3187_p13, %p71_p8 }
  0x8e   : > { %s4809_s19 = scalar_select %p4185_p1, 1, 0 }
  0x8f   : > { %s4811_s27 = scalar_select %p4195_p4, 1, 0 }
  0x90   : > { %4810 = sst [smem:[#allocation49_spill]] %s4809_s19  ;;  %s4755_s18 = sand.u32 1, %s3890_s25  }
  0x91   : > { %s4812_s6 = sld [smem:[#allocation51_spill]]  ;;  %s795_s12 = scalar_lea.vmem [#allocation5], %s4190_s22 }
  0x92   : > { %s802_s14 = sshll.u32 %s795_s12, 4  ;;  %s4209_s16 = scalar_lea.sflag [#allocation6], %s4755_s18  ;;  %s803_s14 = int_to_ptr.vmem [resolvable:$true] %s802_s14 }
  0x93   : > { %p4215_p0 = pneg %p4195_p4 }
  0x95   : > { %s4813_s24 = scalar_select %p4215_p0, 1, 0 }
  0x97   : > { %s4204_s9 = scalar_lea.hbm %s4812_s6, %s4193_s23  ;;  %s3497_s1 = scalar_lea.hbm %s4812_s6, 256 }
  0x98   : > { %s3492_s28 = scalar_lea.hbm %s4204_s9, 128  ;;  %p3498_p8 = scmp.lt.s32.totalorder %s4204_s9, %s4812_s6 }
  0x99   : > { %p3493_p3 = scmp.ne.s32.totalorder %s4204_s9, %s3492_s28  ;;  %p3499_p9 = scmp.lt.s32.totalorder %s3497_s1, %s3492_s28 }
  0x9b   : > { %p3495_p2 = pnand %p4215_p0, %p3493_p3  ;;  %p3500_p12 = por %p3499_p9, %p3498_p8 }
  0x9d   : > { %p3496_p5 = pneg %p3495_p2 }
  0x9f   : > { %p3501_p13 = pnand %p3500_p12, %p3496_p5 }
  0xa1   : > { %3504 = shalt.err (!%p3501_p13)
}
  0xa2   : > { %s3505_s18 = scalar_lea.vmem %s803_s14, 128  ;;  %s3901_s4 = smov [#allocation5]  }
  0xa3   : > { %p3506_p1 = scmp.ne.s32.totalorder %s803_s14, %s3505_s18  ;;  %s3510_s20 = sshll.u32 %s3901_s4, 4  ;;  %s3511_s20 = int_to_ptr.vmem [resolvable:$false] %s3510_s20 }
  0xa4   : > { %s3512_s10 = scalar_lea.vmem %s3511_s20, 256  ;;  %p3513_p3 = scmp.lt.s32.totalorder %s803_s14, %s3511_s20 }
  0xa5   : > { %p3508_p11 = pnand %p3506_p1, %p4215_p0  ;;  %p3514_p2 = scmp.lt.s32.totalorder %s3512_s10, %s3505_s18 }
  0xa7   : > { %p3509_p10 = pneg %p3508_p11  ;;  %p3515_p6 = por %p3514_p2, %p3513_p3 }
  0xa9   : > { %p3516_p7 = pnand %p3515_p6, %p3509_p10 }
  0xab   : > { %3519 = shalt.err (!%p3516_p7)
}
  0xac   : > { %3160 = dma.hbm_to_vmem [thread:$0]  (!%p4195_p4), %s4204_s9, 128, %s803_s14, %s4209_s16  }
  0xad   : > { %s3902_s1 = smov [#allocation13]   ;;  %s3903_s19 = smov [#allocation16]  }
  0xae   : > { %s630_s28 = sshll.u32 %s3902_s1, 4  ;;  %s655_s5 = sshll.u32 %s3903_s19, 4  ;;  %s631_s28 = int_to_ptr.vmem [resolvable:$true] %s630_s28  ;;  %s656_s5 = int_to_ptr.vmem [resolvable:$true] %s655_s5 }
  0xaf   : > { %s3531_s4 = scalar_lea.vmem %s631_s28, 256  ;;  %p4814_p1 = scmp.ne.s32.totalorder %s4795_s3, 0 }
  0xb0   : > { %p3532_p11 = scmp.ne.s32.totalorder %s631_s28, %s3531_s4  ;;  %p3539_p9 = scmp.lt.s32.totalorder %s631_s28, %s631_s28 }
  0xb1   : > { %p3540_p6 = scmp.lt.s32.totalorder %s3531_s4, %s3531_s4 }
  0xb2   : > { %p3534_p5 = pnand %p3532_p11, %p4814_p1 }
  0xb3   : > { %p3541_p7 = por %p3540_p6, %p3539_p9 }
  0xb4   : > { %p3535_p8 = pneg %p3534_p5 }
  0xb6   : > { %p3542_p10 = pnand %p3541_p7, %p3535_p8 }
  0xb8   : > { %3545 = shalt.err (!%p3542_p10)
}
  0xb9   : > { %p4815_p12 = scmp.ne.s32.totalorder %s4794_s7, 0  ;;  %s4816_s10 = smov 4  }
  0xba   : > { %s4817_s9 = smov 64   ;;  %s4818_s18 = sld [smem:[#allocation56_spill]] }
  0xbb   : > { %s3557_s21 = scalar_lea.vmem %s656_s5, 16  ;;  %s3564_s12 = scalar_lea.vmem %s656_s5, 32 }
  0xbc   : > { %p3558_p13 = scmp.ne.s32.totalorder %s656_s5, %s3557_s21  ;;  %p3565_p11 = scmp.lt.s32.totalorder %s656_s5, %s656_s5 }
  0xbd   : > { %p3566_p5 = scmp.lt.s32.totalorder %s3564_s12, %s3557_s21 }
  0xbe   : > { %p3560_p3 = pnand %p3558_p13, %p4814_p1 }
  0xbf   : > { %p3567_p8 = por %p3566_p5, %p3565_p11 }
  0xc0   : > { %3123 = dma.hbm_to_vmem [thread:$0]  (!%p4815_p12), %s4818_s18, 256, %s631_s28, [#allocation12], %s4817_s9, %s4817_s9, %s4816_s10  }
  0xc1   : > { %p3561_p2 = pneg %p3560_p3 }
  0xc3   : > { %p3568_p9 = pnand %p3567_p8, %p3561_p2 }
  0xc5   : > { %3571 = shalt.err (!%p3568_p9)
}
  0xc6   : > { %s4819_s8 = sld [smem:[#allocation58_spill]]  ;;  %s3904_s4 = smov [#allocation19]  }
  0xc7   : > { %s680_s28 = sshll.u32 %s3904_s4, 4  ;;  %s3905_s10 = smov [#allocation22]   ;;  %s681_s28 = int_to_ptr.vmem [resolvable:$true] %s680_s28 }
  0xc8   : > { %s704_s9 = sshll.u32 %s3905_s10, 4  ;;  %s3583_s14 = scalar_lea.vmem %s681_s28, 16  ;;  %s705_s9 = int_to_ptr.vmem [resolvable:$true] %s704_s9 }
  0xc9   : > { %p3584_p6 = scmp.ne.s32.totalorder %s681_s28, %s3583_s14  ;;  %s3590_s20 = scalar_lea.vmem %s681_s28, 32 }
  0xca   : > { %p3591_p13 = scmp.lt.s32.totalorder %s681_s28, %s681_s28  ;;  %p3592_p3 = scmp.lt.s32.totalorder %s3590_s20, %s3583_s14 }
  0xcb   : > { %p3586_p7 = pnand %p3584_p6, %p4814_p1 }
  0xcc   : > { %3129 = dma.hbm_to_vmem [thread:$0]  (!%p4815_p12), %s4819_s8, 16, %s656_s5, [#allocation15]  }
  0xcd   : > { %p3587_p10 = pneg %p3586_p7  ;;  %p3593_p2 = por %p3592_p3, %p3591_p13 }
  0xcf   : > { %p3594_p11 = pnand %p3593_p2, %p3587_p10 }
  0xd1   : > { %3597 = shalt.err (!%p3594_p11)
}
  0xd2   : > { %3135 = dma.hbm_to_vmem [thread:$0]  (!%p4815_p12), %s4727_s11, 16, %s681_s28, [#allocation18]  }
  0xd3   : > { %s3609_s21 = scalar_lea.vmem %s705_s9, 16  ;;  %s3616_s12 = scalar_lea.vmem %s705_s9, 32 }
  0xd4   : > { %p3610_p5 = scmp.ne.s32.totalorder %s705_s9, %s3609_s21  ;;  %p3617_p6 = scmp.lt.s32.totalorder %s705_s9, %s705_s9 }
  0xd5   : > { %p3618_p7 = scmp.lt.s32.totalorder %s3616_s12, %s3609_s21 }
  0xd6   : > { %p3612_p8 = pnand %p3610_p5, %p4814_p1 }
  0xd7   : > { %p3619_p4 = por %p3618_p7, %p3617_p6 }
  0xd8   : > { %p3613_p9 = pneg %p3612_p8 }
  0xda   : > { %p3620_p0 = pnand %p3619_p4, %p3613_p9 }
  0xdc   : > { %3623 = shalt.err (!%p3620_p0)
}
  0xdd   : > { %3141 = dma.hbm_to_vmem [thread:$0]  (!%p4815_p12), %s4729_s13, 16, %s705_s9, [#allocation21]  }
  0xde   : > { %s3906_s4 = smov [#allocation25]   ;;  %s3907_s10 = smov [#allocation28]  }
  0xdf   : > { %s728_s28 = sshll.u32 %s3906_s4, 4  ;;  %s750_s14 = sshll.u32 %s3907_s10, 4  ;;  %s729_s28 = int_to_ptr.vmem [resolvable:$true] %s728_s28  ;;  %s751_s14 = int_to_ptr.vmem [resolvable:$true] %s750_s14 }
  0xe0   : > { %s3635_s20 = scalar_lea.vmem %s729_s28, 16  ;;  %s3642_s5 = scalar_lea.vmem %s729_s28, 32 }
  0xe1   : > { %p3636_p10 = scmp.ne.s32.totalorder %s729_s28, %s3635_s20  ;;  %p3643_p4 = scmp.lt.s32.totalorder %s729_s28, %s729_s28 }
  0xe2   : > { %p3644_p0 = scmp.lt.s32.totalorder %s3642_s5, %s3635_s20 }
  0xe3   : > { %p3638_p13 = pnand %p3636_p10, %p4814_p1 }
  0xe4   : > { %p3645_p2 = por %p3644_p0, %p3643_p4 }
  0xe5   : > { %p3639_p3 = pneg %p3638_p13 }
  0xe7   : > { %p3646_p11 = pnand %p3645_p2, %p3639_p3 }
  0xe9   : > { %3649 = shalt.err (!%p3646_p11)
}
  0xea   : > { %3147 = dma.hbm_to_vmem [thread:$0]  (!%p4815_p12), %s4731_s15, 16, %s729_s28, [#allocation24]  }
  0xeb   : > { %s3661_s21 = scalar_lea.vmem %s751_s14, 16  ;;  %s3668_s12 = scalar_lea.vmem %s751_s14, 32 }
  0xec   : > { %p3662_p5 = scmp.ne.s32.totalorder %s751_s14, %s3661_s21  ;;  %p3669_p6 = scmp.lt.s32.totalorder %s751_s14, %s751_s14 }
  0xed   : > { %p3670_p7 = scmp.lt.s32.totalorder %s3668_s12, %s3661_s21 }
  0xee   : > { %p3664_p8 = pnand %p3662_p5, %p4814_p1 }
  0xef   : > { %p3671_p10 = por %p3670_p7, %p3669_p6 }
  0xf0   : > { %p3665_p9 = pneg %p3664_p8 }
  0xf2   : > { %p3672_p13 = pnand %p3671_p10, %p3665_p9 }
  0xf4   : > { %3675 = shalt.err (!%p3672_p13)
}
  0xf5   : > { %3153 = dma.hbm_to_vmem [thread:$0]  (!%p4815_p12), %s4733_s17, 16, %s751_s14, [#allocation27]  }
  0xf6   : > { %s4820_s28 = sld [smem:[#allocation50_spill]]  ;;  %s777_s20 = scalar_lea.vmem [#allocation2], %s4190_s22 }
  0xf7   : > { %s784_s5 = sshll.u32 %s777_s20, 4  ;;  %s774_s7 = scalar_lea.sflag [#allocation3], %s4183_s29  ;;  %s785_s5 = int_to_ptr.vmem [resolvable:$true] %s784_s5 }
  0xf8   : > { %p4821_p3 = scmp.ne.s32.totalorder %s4813_s24, 0 }
  0xfc   : > { %s4283_s10 = scalar_lea.hbm %s4820_s28, %s4193_s23  ;;  %s3681_s14 = scalar_lea.hbm %s4820_s28, 256 }
  0xfd   : > { %s3676_s9 = scalar_lea.hbm %s4283_s10, 128  ;;  %p3682_p12 = scmp.lt.s32.totalorder %s4283_s10, %s4820_s28 }
  0xfe   : > { %p3677_p1 = scmp.ne.s32.totalorder %s4283_s10, %s3676_s9  ;;  %p3683_p2 = scmp.lt.s32.totalorder %s3681_s14, %s3676_s9 }
 0x100   : > { %p3679_p4 = pnand %p3677_p1, %p4821_p3  ;;  %p3684_p11 = por %p3683_p2, %p3682_p12 }
 0x102   : > { %p3680_p0 = pneg %p3679_p4 }
 0x104   : > { %p3685_p5 = pnand %p3684_p11, %p3680_p0 }
 0x106   : > { %3688 = shalt.err (!%p3685_p5)
}
 0x107   : > { %s3689_s19 = scalar_lea.vmem %s785_s5, 128  ;;  %s3908_s4 = smov [#allocation2]  }
 0x108   : > { %p3690_p8 = scmp.ne.s32.totalorder %s785_s5, %s3689_s19  ;;  %s3694_s3 = sshll.u32 %s3908_s4, 4  ;;  %s3695_s3 = int_to_ptr.vmem [resolvable:$false] %s3694_s3 }
 0x109   : > { %s3696_s20 = scalar_lea.vmem %s3695_s3, 256  ;;  %p3697_p7 = scmp.lt.s32.totalorder %s785_s5, %s3695_s3 }
 0x10a   : > { %p3692_p9 = pnand %p3690_p8, %p4821_p3  ;;  %p3698_p10 = scmp.lt.s32.totalorder %s3696_s20, %s3689_s19 }
 0x10c   : > { %p3693_p6 = pneg %p3692_p9  ;;  %p3699_p13 = por %p3698_p10, %p3697_p7 }
 0x10e   : > { %p3700_p1 = pnand %p3699_p13, %p3693_p6 }
 0x110   : > { %3703 = shalt.err (!%p3700_p1)
}
 0x111   : > { %p4822_p4 = scmp.ne.s32.totalorder %s4811_s27, 0  ;;  %s4823_s21 = sld [smem:[#allocation52_spill]] }
 0x112   : > { %s813_s12 = scalar_lea.vmem [#allocation7], %s4190_s22 }
 0x113   : > { %3157 = dma.hbm_to_vmem [thread:$0]  (!%p4822_p4), %s4283_s10, 128, %s785_s5, %s774_s7  }
 0x114   : > { %s820_s1 = sshll.u32 %s813_s12, 4  ;;  %s821_s1 = int_to_ptr.vmem [resolvable:$true] %s820_s1 }
 0x117   : > { %s818_s14 = scalar_lea.hbm %s4823_s21, %s4193_s23  ;;  %s3709_s20 = scalar_lea.hbm %s4823_s21, 256 }
 0x118   : > { %s3704_s4 = scalar_lea.hbm %s818_s14, 128  ;;  %p3710_p11 = scmp.lt.s32.totalorder %s818_s14, %s4823_s21 }
 0x119   : > { %p3705_p0 = scmp.ne.s32.totalorder %s818_s14, %s3704_s4  ;;  %p3711_p5 = scmp.lt.s32.totalorder %s3709_s20, %s3704_s4 }
 0x11b   : > { %p3707_p12 = pnand %p3705_p0, %p4821_p3  ;;  %p3712_p8 = por %p3711_p5, %p3710_p11 }
 0x11d   : > { %p3708_p2 = pneg %p3707_p12 }
 0x11f   : > { %p3713_p9 = pnand %p3712_p8, %p3708_p2 }
 0x121   : > { %3716 = shalt.err (!%p3713_p9)
}
 0x122   : > { %s3717_s22 = scalar_lea.vmem %s821_s1, 128  ;;  %s3909_s23 = smov [#allocation7]  }
 0x123   : > { %p3718_p6 = scmp.ne.s32.totalorder %s821_s1, %s3717_s22  ;;  %s3722_s10 = sshll.u32 %s3909_s23, 4  ;;  %s3723_s10 = int_to_ptr.vmem [resolvable:$false] %s3722_s10 }
 0x124   : > { %s3724_s5 = scalar_lea.vmem %s3723_s10, 256  ;;  %p3725_p13 = scmp.lt.s32.totalorder %s821_s1, %s3723_s10 }
 0x125   : > { %p3720_p7 = pnand %p3718_p6, %p4821_p3  ;;  %p3726_p1 = scmp.lt.s32.totalorder %s3724_s5, %s3717_s22 }
 0x127   : > { %p3721_p10 = pneg %p3720_p7  ;;  %p3727_p0 = por %p3726_p1, %p3725_p13 }
 0x129   : > { %p3728_p12 = pnand %p3727_p0, %p3721_p10 }
 0x12b   : > { %3731 = shalt.err (!%p3728_p12)
}
 0x12c   : > { %3163 = dma.hbm_to_vmem [thread:$0]  (!%p4822_p4), %s818_s14, 128, %s821_s1, %s4209_s16  }
 0x12d   : > { %s2781_s8 = sshll.u32 %s3890_s25, 4  ;;  %s830_s6 = scalar_lea.vmem [#allocation8], %s4183_s29 }
 0x12e   : > { %s837_s7 = sshll.u32 %s830_s6, 4  ;;  %s4824_s12 = sld [smem:[#allocation53_spill]]  ;;  %s838_s7 = int_to_ptr.vmem [resolvable:$true] %s837_s7 }
 0x12f   : > { %s4825_s19 = sand.u32 1, %s3890_s25  }
 0x130   : > { %s828_s3 = scalar_lea.sflag [#allocation9], %s4825_s19 }
 0x134   : > { %s835_s4 = scalar_lea.hbm %s4824_s12, %s2781_s8  ;;  %s3737_s10 = scalar_lea.hbm %s4824_s12, 32 }
 0x135   : > { %s3732_s20 = scalar_lea.hbm %s835_s4, 16  ;;  %p3738_p8 = scmp.lt.s32.totalorder %s835_s4, %s4824_s12 }
 0x136   : > { %p3733_p2 = scmp.ne.s32.totalorder %s835_s4, %s3732_s20  ;;  %p3739_p9 = scmp.lt.s32.totalorder %s3737_s10, %s3732_s20 }
 0x138   : > { %p3735_p11 = pnand %p3733_p2, %p4821_p3  ;;  %p3740_p6 = por %p3739_p9, %p3738_p8 }
 0x13a   : > { %p3736_p5 = pneg %p3735_p11 }
 0x13c   : > { %p3741_p7 = pnand %p3740_p6, %p3736_p5 }
 0x13e   : > { %3744 = shalt.err (!%p3741_p7)
}
 0x13f   : > { %s3745_s29 = scalar_lea.vmem %s838_s7, 16  ;;  %s3910_s1 = smov [#allocation8]  }
 0x140   : > { %p3746_p10 = scmp.ne.s32.totalorder %s838_s7, %s3745_s29  ;;  %s3750_s5 = sshll.u32 %s3910_s1, 4  ;;  %s3751_s5 = int_to_ptr.vmem [resolvable:$false] %s3750_s5 }
 0x141   : > { %s3752_s8 = scalar_lea.vmem %s3751_s5, 32  ;;  %p3753_p0 = scmp.lt.s32.totalorder %s838_s7, %s3751_s5 }
 0x142   : > { %p3748_p13 = pnand %p3746_p10, %p4821_p3  ;;  %p3754_p12 = scmp.lt.s32.totalorder %s3752_s8, %s3745_s29 }
 0x144   : > { %p3749_p1 = pneg %p3748_p13  ;;  %p3755_p2 = por %p3754_p12, %p3753_p0 }
 0x146   : > { %p3756_p11 = pnand %p3755_p2, %p3749_p1 }
 0x148   : > { %3759 = shalt.err (!%p3756_p11)
}
 0x149   : > { %3166 = dma.hbm_to_vmem [thread:$0]  (!%p4822_p4), %s835_s4, 16, %s838_s7, %s828_s3  }
 0x14a   : > { %p4826_p5 = scmp.ne.s32.totalorder %s4793_s2, 0 }
 0x14b   : > { %s4343_s24 = sand.u32 (!%p4826_p5), 1, %s3882_s30   ;;  %p4827_p3 = scmp.ne.s32.totalorder (!%p4826_p5), %s4806_s0, 0 }
 0x14c   : > { %846 = sbr.rel (%p4826_p5) target bundleno = 4311 (0x10d7), region = 108  ;;  %s4346_s6 = sshll.u32 (!%p4826_p5), %s4343_s24, 3 }
 0x14d   : > { %s849_s9 = scalar_lea.sflag (!%p4826_p5), [#allocation3], %s4343_s24  ;;  %s852_s18 = scalar_lea.vmem (!%p4826_p5), [#allocation2], %s4346_s6 }
 0x151   : > { %3829 = dma.done.wait (%p4827_p3), %s849_s9, 128  }
 0x152   : > { %3831 = vsyncadd (%p4827_p3), %s849_s9, 4294967168  ;;  %s857_s2 = sand.u32 1, %s4065_s26   ;;  %s861_s7 = scalar_lea.vmem [#allocation5], %s4346_s6 }
 0x153   : > { %s858_s27 = scalar_lea.sflag [#allocation6], %s857_s2 }
 0x154   : > { %3833 = dma.done.wait (%p4827_p3), %s858_s27, 256  }
 0x155   : > { %3835 = vsyncadd (%p4827_p3), %s858_s27, 4294967040  ;;  %s870_s4 = scalar_lea.vmem [#allocation7], %s4346_s6  ;;  %s876_s19 = scalar_lea.sflag [#allocation9], %s857_s2 }
 0x156   : > { %s878_s3 = scalar_lea.vmem [#allocation8], %s4343_s24 }
 0x157   : > { %3837 = dma.done.wait (%p4827_p3), %s876_s19, 16  }
 0x158   : > { %3839 = vsyncadd (%p4827_p3), %s876_s19, 4294967280  ;;  %p4828_p4 = scmp.eq.s32.totalorder %s4065_s26, 0 }
 0x15a   : > { %3841 = dma.done.wait (%p4828_p4), [#allocation9], 256   ;;  %p4829_p8 = pmov %p4828_p4 }
 0x15b   : > { %p4830_p9 = pmov %p4828_p4 }
 0x15c   : > { %3843 = vsyncadd (%p4829_p8), [#allocation9], 4294967040 }
 0x15d   : > { %3845 = dma.done.wait (%p4830_p9), [#allocation12], 272   ;;  %p4831_p6 = pmov %p4828_p4 }
 0x15e   : > { %p4832_p7 = pmov %p4828_p4 }
 0x15f   : > { %3847 = vsyncadd (%p4831_p6), [#allocation12], 4294967024 }
 0x160   : > { %3849 = dma.done.wait (%p4832_p7), [#allocation15], 32   ;;  %p4833_p10 = pmov %p4828_p4 }
 0x161   : > { %p4834_p13 = pmov %p4828_p4 }
 0x162   : > { %3851 = vsyncadd (%p4833_p10), [#allocation15], 4294967264 }
 0x163   : > { %3853 = dma.done.wait (%p4834_p13), [#allocation18], 32   ;;  %p4835_p1 = pmov %p4828_p4 }
 0x165   : > { %3855 = vsyncadd (%p4835_p1), [#allocation18], 4294967264  ;;  %p4836_p0 = pmov %p4835_p1 }
 0x167   : > { %3857 = dma.done.wait (%p4836_p0), [#allocation21], 272   ;;  %p4837_p12 = pmov %p4836_p0 }
 0x168   : > { %p4838_p2 = pmov %p4836_p0 }
 0x169   : > { %3859 = vsyncadd (%p4837_p12), [#allocation21], 4294967024 }
 0x16a   : > { %3861 = dma.done.wait (%p4838_p2), [#allocation24], 272   ;;  %p4839_p11 = pmov %p4836_p0 }
 0x16b   : > { %p4840_p5 = pmov %p4836_p0 }
 0x16c   : > { %3863 = vsyncadd (%p4839_p11), [#allocation24], 4294967024 }
 0x16d   : > { %3865 = dma.done.wait (%p4840_p5), [#allocation27], 32   ;;  %p4841_p3 = pmov %p4836_p0 }
 0x16e   : > { %v3911_v0 = vmov 0.0   ;;  %vm3912_vm0 = vmmov 0   ;;  %v3260_v1 = vld [vmem:[#allocation10 + $0x8] sm:$0xff]   ;;  %v3261_v2 = vld [vmem:[#allocation10] sm:$0xff]   ;;  %vm1041_vm1 = vcmask 261120   ;;  %s3913_s0 = smov 104  }
 0x16f   : > { %3867 = vsyncadd (%p4841_p3), [#allocation27], 4294967264  ;;  %2906 = vmatprep.subr.bf16.mxu0 %v3911_v0  ;;  %2910 = vmatprep.mubr.msk.bf16.mxu0 %vm3912_vm0, %v3911_v0  ;;  %v4402_v3 = vld [vmem:[%s852_s18] sm:$0xff]  ;;  %s3914_s20 = smov 120   ;;  %s3915_s22 = smov 96   ;;  %vm1095_vm2 = vcmask 64512  }
 0x170   : > { %2914 = vmatprep.subr.bf16.mxu1 %v3911_v0  ;;  %2916 = vmatprep.mubr.msk.bf16.mxu1 %vm3912_vm0, %v3911_v0  ;;  %v1017_v4 = vpack.c.bf16 %v4402_v3, %v4402_v3  ;;  %v2801_v5 = vld [vmem:[#allocation11] ss:$0 sm:$0xff]  ;;  %s3916_s23 = smov 112   ;;  %s3917_s10 = smov 64   ;;  %vm1339_vm3 = vcmask 1043456   ;;  %vm1540_vm4 = vcmask 130048  }
 0x171   : > { %2907 = vmatpush3.bf16.msra.mxu0 %v3260_v1  ;;  %v1015_v23 = vld [vmem:[%s870_s4] sm:$0xff]  ;;  %s3918_s16 = smov 8   ;;  %s3919_s14 = smov 16   ;;  %vm1542_vm5 = vcmask 195584  }
 0x172   : > { %2908 = vmatprep.subr.bf16.mxu0 %v3911_v0  ;;  %s3920_s29 = smov 24   ;;  %s4842_s8 = sld [smem:[#allocation60_spill]] }
 0x173   : > { %s2800_s2 = sshll.u32 %s4343_s24, 5  ;;  %s4843_s19 = sld [smem:[#allocation64_spill]] }
 0x174   : > { %s4588_s27 = scalar_lea.vmem [#allocation30], %s2800_s2  ;;  %s4846_s9 = sld [smem:[#allocation69_spill]] }
 0x175   : > { %2909 = vmatpush3.bf16.msra.mxu0 %v3261_v2  ;;  %s2442_s2 = scalar_lea.sflag [#allocation31], %s4343_s24  ;;  %s3921_s4 = smov [#allocation30]  }
 0x176   : > { %2920 = vmatprep.subr.bf16.mxu0 %v3911_v0 }
 0x178   : > { %2911 = vmatmul.mubr.msk.bf16.vlgmr.msra.gmra.mxu0 %vm1041_vm1, %v1017_v4 }
 0x179   : > { %2922 = vmatprep.mubr.msk.bf16.mxu0 %vm3912_vm0, %v3911_v0 }
 0x238   : > { %v1079_v6 = vpop.f32.mrf.mxu0 }
 0x239   : > { %v1080_v7 = vadd.f32 %v2801_v5, %v1079_v6 }
 0x23a   : > { %v2912_v8 = vpop.f32.mrf.mxu0 }
 0x23b   : > { %v4411_v9 = vpack.c.bf16 %v1080_v7, %v1080_v7 }
 0x23c   : > { %v1082_v10 = vpop.f32.mrf.mxu0 }
 0x23d   : > { %1091 = vrot.lane.b32.xlu1 %v4411_v9, %s3913_s0  ;;  %1087 = vrot.lane.b32.xlu0 %v4411_v9, %s3914_s20 }
 0x23e   : > { %v2913_v11 = vpop.f32.mrf.mxu0 }
 0x241   : > { %1093 = vrot.lane.b32.xlu1 %v4411_v9, %s3915_s22  ;;  %1089 = vrot.lane.b32.xlu0 %v4411_v9, %s3916_s23 }
 0x2af   : > { %v4421_v12 = vpop.permute.xlu1 %1091  ;;  %v1088_v13 = vpop.permute.xlu0 %1087 }
 0x2b0   : > { %1142 = vrot.lane.b32.xlu0 %v1088_v13, %s3915_s22 }
 0x2b3   : > { %v1094_v14 = vpop.permute.xlu1 %1093  ;;  %v4424_v15 = vpop.permute.xlu0 %1089 }
 0x2b4   : > { %1238 = vrot.lane.b32.xlu0 %v4421_v12, %s3915_s22  ;;  %1190 = vrot.lane.b32.xlu1 %v4424_v15, %s3915_s22  ;;  %v1100_v16 = vsel %vm1095_vm2, %v1094_v14, 0 }
 0x2b5   : > { %2915 = vmatpush3.bf16.xpose.msra.mxu1 %v1100_v16 }
 0x2b6   : > { %2926 = vmatprep.subr.bf16.mxu1 %v3911_v0 }
 0x2bc   : > { %2917 = vmatmul.mubr.msk.bf16.vlgmr.msra.gmra.mxu1 %vm1095_vm2, %v4411_v9 }
 0x2bd   : > { %2928 = vmatprep.mubr.msk.bf16.mxu1 %vm3912_vm0, %v3911_v0 }
 0x322   : > { %v1143_v17 = vpop.permute.xlu0 %1142 }
 0x323   : > { %v1148_v18 = vsel %vm1095_vm2, %v1143_v17, 0 }
 0x324   : > { %2921 = vmatpush3.bf16.xpose.msra.mxu0 %v1148_v18 }
 0x325   : > { %2932 = vmatprep.subr.bf16.mxu0 %v3911_v0 }
 0x326   : > { %v1191_v19 = vpop.permute.xlu1 %1190  ;;  %v1239_v21 = vpop.permute.xlu0 %1238 }
 0x327   : > { %v1196_v20 = vsel %vm1095_vm2, %v1191_v19, 0  ;;  %v1244_v22 = vsel %vm1095_vm2, %v1239_v21, 0 }
 0x328   : > { %2927 = vmatpush3.bf16.xpose.msra.mxu1 %v1196_v20 }
 0x329   : > { %2938 = vmatprep.subr.bf16.mxu1 %v3911_v0 }
 0x32b   : > { %2923 = vmatmul.mubr.msk.bf16.vlgmr.msra.gmra.mxu0 %vm1095_vm2, %v1088_v13 }
 0x32c   : > { %2933 = vmatpush3.bf16.xpose.msra.mxu0 %v1244_v22  ;;  %2934 = vmatprep.mubr.msk.bf16.mxu0 %vm3912_vm0, %v3911_v0 }
 0x32d   : > { %2944 = vmatprep.subr.bf16.mxu0 %v3911_v0 }
 0x32f   : > { %2929 = vmatmul.mubr.msk.bf16.vlgmr.msra.gmra.mxu1 %vm1095_vm2, %v4424_v15 }
 0x330   : > { %2940 = vmatprep.mubr.msk.bf16.mxu1 %vm3912_vm0, %v3911_v0 }
 0x333   : > { %2935 = vmatmul.mubr.msk.bf16.vlgmr.msra.gmra.mxu0 %vm1095_vm2, %v4421_v12 }
 0x334   : > { %2946 = vmatprep.mubr.msk.bf16.mxu0 %vm3912_vm0, %v3911_v0 }
 0x37c   : > { %v1136_v24 = vpop.f32.mrf.mxu1 }
 0x37d   : > { %v1137_v25 = vadd.f32 %v1136_v24, %v1015_v23 }
 0x37e   : > { %v2918_v26 = vpop.f32.mrf.mxu1 }
 0x37f   : > { %v1286_v27 = vsel %vm1095_vm2, %v1137_v25, -inf }
 0x380   : > { %v1139_v28 = vpop.f32.mrf.mxu1  ;;  %1287 = vmax.xlane.f32.xlu1 %v1286_v27 }
 0x382   : > { %v2919_v29 = vpop.f32.mrf.mxu1 }
 0x3eb   : > { %v1184_v30 = vpop.f32.mrf.mxu0 }
 0x3ec   : > { %v1185_v31 = vadd.f32 %v1184_v30, %v1015_v23 }
 0x3ed   : > { %v2924_v32 = vpop.f32.mrf.mxu0 }
 0x3ee   : > { %v1289_v33 = vsel %vm1095_vm2, %v1185_v31, -inf }
 0x3ef   : > { %v1232_v34 = vpop.f32.mrf.mxu1  ;;  %1290 = vmax.xlane.f32.xlu0 %v1289_v33  ;;  %v1187_v35 = vpop.f32.mrf.mxu0 }
 0x3f0   : > { %v1233_v36 = vadd.f32 %v1232_v34, %v1015_v23  ;;  %v3262_v34 = vld [vmem:[#allocation13 + $0x8] sm:$0xff]   ;;  %v3263_v35 = vld [vmem:[#allocation13] sm:$0xff]  }
 0x3f1   : > { %v2925_v37 = vpop.f32.mrf.mxu0  ;;  %v2930_v38 = vpop.f32.mrf.mxu1 }
 0x3f2   : > { %v1292_v39 = vsel %vm1095_vm2, %v1233_v36, -inf }
 0x3f3   : > { %v1235_v40 = vpop.f32.mrf.mxu1  ;;  %1293 = vmax.xlane.f32.xlu0 %v1292_v39  ;;  %v1280_v41 = vpop.f32.mrf.mxu0 }
 0x3f4   : > { %v1281_v42 = vadd.f32 %v1280_v41, %v1015_v23 }
 0x3f5   : > { %v2931_v43 = vpop.f32.mrf.mxu1  ;;  %v2936_v44 = vpop.f32.mrf.mxu0 }
 0x3f6   : > { %v1295_v45 = vsel %vm1095_vm2, %v1281_v42, -inf }
 0x3f7   : > { %1296 = vmax.xlane.f32.xlu1 %v1295_v45  ;;  %v1283_v46 = vpop.f32.mrf.mxu0 }
 0x3f9   : > { %v2937_v47 = vpop.f32.mrf.mxu0 }
 0x408   : > { %1383 = vrot.lane.b32.xlu1 %v1088_v13, %s3917_s10 }
 0x409   : > { %1334 = vrot.lane.b32.xlu0 %v4411_v9, %s3917_s10  ;;  %v1288_v48 = vpop.xlane.xlu1 %1287 }
 0x40a   : > { %v1298_v49 = vsub.f32 %v1137_v25, %v1288_v48 }
 0x40c   : > { %v1302_v50 = vmul.f32 1.442695, %v1298_v49 }
 0x40e   : > { %3272 = vpow2.f32 %v1302_v50 }
 0x41b   : > { %v3273_v51 = vpop.eup %3272 }
 0x41c   : > { %v1310_v52 = vsel %vm1095_vm2, %v3273_v51, 0.0 }
 0x428   : > { %1311 = vadd.xlane.f32.xlu0 %v1310_v52 }
 0x478   : > { %v1291_v53 = vpop.xlane.xlu0 %1290 }
 0x479   : > { %v1299_v54 = vsub.f32 %v1185_v31, %v1291_v53 }
 0x47b   : > { %v1304_v55 = vmul.f32 1.442695, %v1299_v54 }
 0x47c   : > { %v1294_v56 = vpop.xlane.xlu0 %1293 }
 0x47d   : > { %3274 = vpow2.f32 %v1304_v55  ;;  %v1300_v57 = vsub.f32 %v1233_v36, %v1294_v56  ;;  %v2813_v55 = vld [vmem:[#allocation14] ss:$0 sm:$0xff] }
 0x47f   : > { %v1306_v58 = vmul.f32 1.442695, %v1300_v57 }
 0x480   : > { %v1335_v59 = vpop.permute.xlu0 %1334  ;;  %v1297_v60 = vpop.xlane.xlu1 %1296 }
 0x481   : > { %3276 = vpow2.f32 %v1306_v58  ;;  %v1341_v61 = vsel %vm1339_vm3, %v1335_v59, 0  ;;  %v1301_v62 = vsub.f32 %v1281_v42, %v1297_v60 }
 0x482   : > { %2939 = vmatpush3.bf16.msra.mxu1 %v1341_v61 }
 0x483   : > { %v1308_v63 = vmul.f32 1.442695, %v1301_v62  ;;  %2950 = vmatprep.subr.bf16.mxu1 %v3911_v0 }
 0x484   : > { %v1384_v1 = vpop.permute.xlu1 %1383 }
 0x485   : > { %3278 = vpow2.f32 %v1308_v63  ;;  %v1389_v2 = vsel %vm1339_vm3, %v1384_v1, 0 }
 0x486   : > { %2945 = vmatpush3.bf16.msra.mxu0 %v1389_v2 }
 0x487   : > { %2956 = vmatprep.subr.bf16.mxu0 %v3911_v0 }
 0x48a   : > { %v3275_v4 = vpop.eup %3274 }
 0x48b   : > { %v1313_v5 = vsel %vm1095_vm2, %v3275_v4, 0.0 }
 0x48c   : > { %1314 = vadd.xlane.f32.xlu1 %v1313_v5 }
 0x48e   : > { %v3277_v6 = vpop.eup %3276 }
 0x48f   : > { %v1316_v7 = vsel %vm1095_vm2, %v3277_v6, 0.0 }
 0x490   : > { %1317 = vadd.xlane.f32.xlu0 %v1316_v7  ;;  %v3265_v7 = vld [vmem:[#allocation20] sm:$0xff]  }
 0x492   : > { %v3279_v8 = vpop.eup %3278 }
 0x493   : > { %v1319_v9 = vsel %vm1095_vm2, %v3279_v8, 0.0 }
 0x494   : > { %1320 = vadd.xlane.f32.xlu1 %v1319_v9  ;;  %v3266_v9 = vld [vmem:[%s4842_s8 + $0x8] sm:$0xff]  }
 0x4a5   : > { %1431 = vrot.lane.b32.xlu1 %v4424_v15, %s3917_s10 }
 0x4a6   : > { %1479 = vrot.lane.b32.xlu0 %v4421_v12, %s3917_s10  ;;  %s4845_s10 = sld [smem:[#allocation48_spill]] }
 0x4ac   : > { %p4847_p8 = scmp.ne.s32.totalorder %s4845_s10, 0 }
 0x4b1   : > { %v1312_v10 = vpop.xlane.xlu0 %1311 }
 0x4b2   : > { %3280 = vrcp.f32 %v1312_v10  ;;  %v3267_v10 = vld [vmem:[%s4842_s8] sm:$0xff]  }
 0x4bf   : > { %v3281_v11 = vpop.eup %3280 }
 0x4c0   : > { %v1326_v13 = vmul.f32 %v3281_v11, %v3273_v51 }
 0x4c2   : > { %v1330_v14 = vpack.c.bf16 %v1326_v13, %v1326_v13 }
 0x4c4   : > { %2941 = vmatmul.mubr.msk.bf16.vlgmr.msra.gmra.mxu1 %vm1095_vm2, %v1330_v14 }
 0x4c5   : > { %2952 = vmatprep.mubr.msk.bf16.mxu1 %vm3912_vm0, %v3911_v0 }
 0x515   : > { %v1315_v16 = vpop.xlane.xlu1 %1314 }
 0x516   : > { %3282 = vrcp.f32 %v1315_v16 }
 0x519   : > { %v1318_v17 = vpop.xlane.xlu0 %1317 }
 0x51a   : > { %3284 = vrcp.f32 %v1318_v17  ;;  %v2817_v17 = vld [vmem:[#allocation16] ss:$0 sm:$0xff] }
 0x51d   : > { %v1321_v18 = vpop.xlane.xlu1 %1320  ;;  %v1480_v21 = vpop.permute.xlu0 %1479 }
 0x51e   : > { %3286 = vrcp.f32 %v1321_v18  ;;  %v1485_v24 = vsel %vm1339_vm3, %v1480_v21, 0  ;;  %v2823_v21 = vld [vmem:[#allocation22] ss:$0 sm:$0xff] }
 0x521   : > { %v1432_v15 = vpop.permute.xlu1 %1431 }
 0x522   : > { %v1437_v19 = vsel %vm1339_vm3, %v1432_v15, 0  ;;  %v2818_v15 = vld [vmem:[#allocation17] ss:$0 sm:$0xff] }
 0x523   : > { %v3283_v12 = vpop.eup %3282  ;;  %2951 = vmatpush3.bf16.msra.mxu1 %v1437_v19 }
 0x524   : > { %v1327_v20 = vmul.f32 %v3283_v12, %v3275_v4  ;;  %2962 = vmatprep.subr.bf16.mxu1 %v3911_v0 }
 0x526   : > { %v1331_v22 = vpack.c.bf16 %v1327_v20, %v1327_v20 }
 0x527   : > { %v3285_v23 = vpop.eup %3284 }
 0x528   : > { %2947 = vmatmul.mubr.msk.bf16.vlgmr.msra.gmra.mxu0 %vm1095_vm2, %v1331_v22  ;;  %v1328_v25 = vmul.f32 %v3285_v23, %v3277_v6  ;;  %v3264_v6 = vld [vmem:[#allocation20 + $0x8] sm:$0xff]  }
 0x529   : > { %2957 = vmatpush3.bf16.msra.mxu0 %v1485_v24  ;;  %2958 = vmatprep.mubr.msk.bf16.mxu0 %vm3912_vm0, %v3911_v0 }
 0x52a   : > { %v1332_v26 = vpack.c.bf16 %v1328_v25, %v1328_v25  ;;  %2970 = vmatprep.subr.bf16.mxu0 %v3911_v0 }
 0x52b   : > { %v3287_v27 = vpop.eup %3286 }
 0x52c   : > { %2953 = vmatmul.mubr.msk.bf16.vlgmr.msra.gmra.mxu1 %vm1095_vm2, %v1332_v26  ;;  %v1329_v28 = vmul.f32 %v3287_v27, %v3279_v8 }
 0x52d   : > { %2966 = vmatprep.mubr.msk.bf16.mxu1 %vm3912_vm0, %v3911_v0  ;;  %2963 = vmatpush3.bf16.msra.mxu1 %v3262_v34 }
 0x52e   : > { %v1333_v29 = vpack.c.bf16 %v1329_v28, %v1329_v28  ;;  %2964 = vmatprep.subr.bf16.mxu1 %v3911_v0 }
 0x530   : > { %2959 = vmatmul.mubr.msk.bf16.vlgmr.msra.gmra.mxu0 %vm1095_vm2, %v1333_v29 }
 0x531   : > { %2974 = vmatprep.mubr.msk.bf16.mxu0 %vm3912_vm0, %v3911_v0  ;;  %2965 = vmatpush3.bf16.msra.mxu1 %v3263_v35 }
 0x532   : > { %2978 = vmatprep.subr.bf16.mxu1 %v3911_v0  ;;  %2971 = vmatpush3.bf16.msra.mxu0 %v3266_v9 }
 0x533   : > { %2972 = vmatprep.subr.bf16.mxu0 %v3911_v0 }
 0x536   : > { %2973 = vmatpush3.bf16.msra.mxu0 %v3267_v10 }
 0x537   : > { %2986 = vmatprep.subr.bf16.mxu0 %v3911_v0 }
 0x584   : > { %v1377_v30 = vpop.f32.mrf.mxu1 }
 0x586   : > { %v2942_v31 = vpop.f32.mrf.mxu1 }
 0x587   : > { %v2819_v31 = vld [vmem:[#allocation19] ss:$0 sm:$0xff] }
 0x588   : > { %v1380_v32 = vpop.f32.mrf.mxu1 }
 0x58a   : > { %v2943_v33 = vpop.f32.mrf.mxu1 }
 0x5e8   : > { %v1425_v36 = vpop.f32.mrf.mxu0 }
 0x5e9   : > { %1528 = vrot.lane.b32.xlu1 %v1425_v36, %s3918_s16 }
 0x5ea   : > { %v2948_v37 = vpop.f32.mrf.mxu0 }
 0x5ec   : > { %v1428_v38 = vpop.f32.mrf.mxu0  ;;  %v1473_v39 = vpop.f32.mrf.mxu1 }
 0x5ed   : > { %1532 = vrot.lane.b32.xlu0 %v1473_v39, %s3919_s14 }
 0x5ee   : > { %v2949_v40 = vpop.f32.mrf.mxu0  ;;  %v2954_v41 = vpop.f32.mrf.mxu1 }
 0x5f0   : > { %v1476_v42 = vpop.f32.mrf.mxu1  ;;  %v1521_v43 = vpop.f32.mrf.mxu0 }
 0x5f1   : > { %1536 = vrot.lane.b32.xlu1 %v1521_v43, %s3920_s29 }
 0x5f2   : > { %v2955_v44 = vpop.f32.mrf.mxu1  ;;  %v2960_v45 = vpop.f32.mrf.mxu0 }
 0x5f3   : > { %v2827_v45 = vld [vmem:[%s878_s3] ss:$0 sm:$0xff]  ;;  %s3764_s3 = sshll.u32 %s3921_s4, 4  ;;  %s3765_s3 = int_to_ptr.vmem [resolvable:$false] %s3764_s3 }
 0x5f4   : > { %v1524_v46 = vpop.f32.mrf.mxu0 }
 0x5f6   : > { %v2961_v47 = vpop.f32.mrf.mxu0 }
 0x65b   : > { %v1529_v48 = vpop.permute.xlu1 %1528 }
 0x65c   : > { %v1539_v50 = vsel %vm1095_vm2, %v1377_v30, %v1529_v48 }
 0x65f   : > { %v1533_v49 = vpop.permute.xlu0 %1532 }
 0x660   : > { %v1541_v51 = vsel %vm1540_vm4, %v1539_v50, %v1533_v49 }
 0x663   : > { %v1537_v52 = vpop.permute.xlu1 %1536 }
 0x664   : > { %v1543_v53 = vsel %vm1542_vm5, %v1541_v51, %v1537_v52 }
 0x665   : > { %v1544_v54 = vpack.c.bf16 %v1543_v53, %v1543_v53 }
 0x667   : > { %2967 = vmatmul.mubr.msk.bf16.vlgmr.msra.gmra.mxu1 %vm1041_vm1, %v1544_v54 }
 0x668   : > { %2982 = vmatprep.mubr.msk.bf16.mxu1 %vm3912_vm0, %v3911_v0  ;;  %2979 = vmatpush3.bf16.msra.mxu1 %v3264_v6 }
 0x669   : > { %2980 = vmatprep.subr.bf16.mxu1 %v3911_v0 }
 0x66c   : > { %2981 = vmatpush3.bf16.msra.mxu1 %v3265_v7 }
 0x66d   : > { %2992 = vmatprep.subr.bf16.mxu1 %v3911_v0 }
 0x727   : > { %v1605_v56 = vpop.f32.mrf.mxu1 }
 0x728   : > { %v1606_v57 = vadd.f32 %v2813_v55, %v1605_v56 }
 0x729   : > { %v2968_v58 = vpop.f32.mrf.mxu1 }
 0x72a   : > { %v1611_v59 = vadd.f32 %v1606_v57, %v4402_v3  ;;  %v1014_v3 = vld [vmem:[%s861_s7] sm:$0xff] }
 0x72b   : > { %v1608_v60 = vpop.f32.mrf.mxu1  ;;  %v1709_v8 = vpack.c.bf16 %v1014_v3, %v1014_v3 }
 0x72c   : > { %v1614_v61 = vsel %vm1041_vm1, %v1611_v59, 0.0 }
 0x72d   : > { %1615 = vadd.xlane.f32.xlu0 %v1614_v61  ;;  %v2969_v62 = vpop.f32.mrf.mxu1  ;;  %2983 = vmatmul.mubr.msk.bf16.vlgmr.msra.gmra.mxu1 %vm1041_vm1, %v1709_v8 }
 0x72e   : > { %2994 = vmatprep.mubr.msk.bf16.mxu1 %vm3912_vm0, %v3911_v0 }
 0x7b6   : > { %v1616_v63 = vpop.xlane.xlu0 %1615 }
 0x7b7   : > { %v1618_v1 = vmul.f32 0.03125, %v1616_v63 }
 0x7b9   : > { %v1619_v2 = vsub.f32 %v1611_v59, %v1618_v1 }
 0x7bb   : > { %v1620_v4 = vmul.f32 %v1619_v2, %v1619_v2 }
 0x7bd   : > { %v1621_v5 = vsel %vm1041_vm1, %v1620_v4, 0.0 }
 0x7be   : > { %1622 = vadd.xlane.f32.xlu1 %v1621_v5 }
 0x7ed   : > { %v1770_v22 = vpop.f32.mrf.mxu1 }
 0x7ee   : > { %v1771_v23 = vadd.f32 %v2823_v21, %v1770_v22 }
 0x7ef   : > { %v2984_v24 = vpop.f32.mrf.mxu1 }
 0x7f0   : > { %v4526_v25 = vpack.c.bf16 %v1771_v23, %v1771_v23 }
 0x7f1   : > { %v1773_v26 = vpop.f32.mrf.mxu1 }
 0x7f2   : > { %1788 = vrot.lane.b32.xlu1 %v4526_v25, %s3916_s23  ;;  %1786 = vrot.lane.b32.xlu0 %v4526_v25, %s3914_s20  ;;  %v1802_v27 = vsel %vm1095_vm2, %v4526_v25, 0 }
 0x7f3   : > { %v2985_v28 = vpop.f32.mrf.mxu1 }
 0x7f6   : > { %1790 = vrot.lane.b32.xlu1 %v4526_v25, %s3913_s0 }
 0x847   : > { %v1623_v11 = vpop.xlane.xlu1 %1622 }
 0x848   : > { %v1624_v13 = vmul.f32 0.03125, %v1623_v11 }
 0x84a   : > { %v1625_v14 = vadd.f32 1e-05, %v1624_v13 }
 0x84c   : > { %3288 = vrsqrt.f32 %v1625_v14 }
 0x859   : > { %v3289_v16 = vpop.eup %3288 }
 0x85a   : > { %v1627_v18 = vmul.f32 %v3289_v16, %v1619_v2 }
 0x85c   : > { %v1634_v19 = vmul.f32 %v2817_v17, %v1627_v18 }
 0x85e   : > { %v4519_v12 = vadd.f32 %v2818_v15, %v1634_v19 }
 0x860   : > { %v1642_v20 = vpack.c.bf16 %v4519_v12, %v4519_v12 }
 0x862   : > { %2975 = vmatmul.mubr.msk.bf16.vlgmr.msra.gmra.mxu0 %vm1041_vm1, %v1642_v20 }
 0x863   : > { %2988 = vmatprep.mubr.msk.bf16.mxu0 %vm3912_vm0, %v3911_v0  ;;  %2987 = vmatpush3.bf16.xpose.msra.mxu0 %v1802_v27 }
 0x864   : > { %2998 = vmatprep.subr.bf16.mxu0 %v3911_v0  ;;  %v4537_v29 = vpop.permute.xlu0 %1786  ;;  %v4542_v36 = vpop.permute.xlu1 %1788 }
 0x865   : > { %v1848_v30 = vsel %vm1095_vm2, %v4537_v29, 0  ;;  %v1894_v38 = vsel %vm1095_vm2, %v4542_v36, 0 }
 0x866   : > { %2993 = vmatpush3.bf16.xpose.msra.mxu1 %v1848_v30 }
 0x867   : > { %3004 = vmatprep.subr.bf16.mxu1 %v3911_v0 }
 0x868   : > { %v4553_v40 = vpop.permute.xlu1 %1790 }
 0x869   : > { %v1940_v42 = vsel %vm1095_vm2, %v4553_v40, 0 }
 0x922   : > { %v1703_v32 = vpop.f32.mrf.mxu0 }
 0x923   : > { %v1704_v33 = vadd.f32 %v2819_v31, %v1703_v32 }
 0x924   : > { %v2976_v34 = vpop.f32.mrf.mxu0 }
 0x925   : > { %v1776_v35 = vpack.c.bf16 %v1704_v33, %v1704_v33 }
 0x926   : > { %v1706_v37 = vpop.f32.mrf.mxu0 }
 0x927   : > { %1783 = vrot.lane.b32.xlu1 %v1776_v35, %s3913_s0  ;;  %1779 = vrot.lane.b32.xlu0 %v1776_v35, %s3914_s20 }
 0x928   : > { %2989 = vmatmul.mubr.msk.bf16.vlgmr.msra.gmra.mxu0 %vm1095_vm2, %v1776_v35  ;;  %v2977_v39 = vpop.f32.mrf.mxu0 }
 0x929   : > { %2999 = vmatpush3.bf16.xpose.msra.mxu0 %v1894_v38  ;;  %3000 = vmatprep.mubr.msk.bf16.mxu0 %vm3912_vm0, %v3911_v0 }
 0x92a   : > { %3010 = vmatprep.subr.bf16.mxu0 %v3911_v0 }
 0x92b   : > { %1781 = vrot.lane.b32.xlu0 %v1776_v35, %s3916_s23  ;;  %s4844_s23 = sld [smem:[#allocation65_spill]] }
 0x999   : > { %v1780_v41 = vpop.permute.xlu0 %1779  ;;  %v1784_v44 = vpop.permute.xlu1 %1783 }
 0x99a   : > { %2995 = vmatmul.mubr.msk.bf16.vlgmr.msra.gmra.mxu1 %vm1095_vm2, %v1780_v41 }
 0x99b   : > { %3005 = vmatpush3.bf16.xpose.msra.mxu1 %v1940_v42  ;;  %3006 = vmatprep.mubr.msk.bf16.mxu1 %vm3912_vm0, %v3911_v0 }
 0x99c   : > { %3016 = vmatprep.subr.bf16.mxu1 %v3911_v0 }
 0x99d   : > { %v1782_v43 = vpop.permute.xlu0 %1781 }
 0x99e   : > { %3001 = vmatmul.mubr.msk.bf16.vlgmr.msra.gmra.mxu0 %vm1095_vm2, %v1782_v43 }
 0x99f   : > { %3012 = vmatprep.mubr.msk.bf16.mxu0 %vm3912_vm0, %v3911_v0 }
 0x9a2   : > { %3007 = vmatmul.mubr.msk.bf16.vlgmr.msra.gmra.mxu1 %vm1095_vm2, %v1784_v44 }
 0x9a3   : > { %3018 = vmatprep.mubr.msk.bf16.mxu1 %vm3912_vm0, %v3911_v0 }
 0x9e8   : > { %v1838_v46 = vpop.f32.mrf.mxu0 }
 0x9e9   : > { %v1839_v47 = vadd.f32 %v2827_v45, %v1838_v46 }
 0x9ea   : > { %v2990_v48 = vpop.f32.mrf.mxu0 }
 0x9eb   : > { %v1982_v49 = vsel %vm1095_vm2, %v1839_v47, -inf }
 0x9ec   : > { %1983 = vmax.xlane.f32.xlu0 %v1982_v49  ;;  %v1841_v50 = vpop.f32.mrf.mxu0 }
 0x9ee   : > { %v2991_v51 = vpop.f32.mrf.mxu0 }
 0xa5a   : > { %v1884_v52 = vpop.f32.mrf.mxu1 }
 0xa5b   : > { %v1885_v53 = vadd.f32 %v2827_v45, %v1884_v52 }
 0xa5c   : > { %v2996_v54 = vpop.f32.mrf.mxu1 }
 0xa5d   : > { %v1985_v55 = vsel %vm1095_vm2, %v1885_v53, -inf }
 0xa5e   : > { %1986 = vmax.xlane.f32.xlu1 %v1985_v55  ;;  %v1887_v56 = vpop.f32.mrf.mxu1  ;;  %v1930_v57 = vpop.f32.mrf.mxu0 }
 0xa5f   : > { %v1931_v58 = vadd.f32 %v2827_v45, %v1930_v57  ;;  %v3268_v56 = vld [vmem:[#allocation23 + $0x8] sm:$0xff]   ;;  %v3269_v57 = vld [vmem:[#allocation23] sm:$0xff]  }
 0xa60   : > { %v2997_v59 = vpop.f32.mrf.mxu1  ;;  %v3002_v60 = vpop.f32.mrf.mxu0 }
 0xa61   : > { %v1988_v61 = vsel %vm1095_vm2, %v1931_v58, -inf }
 0xa62   : > { %v1976_v62 = vpop.f32.mrf.mxu1  ;;  %1989 = vmax.xlane.f32.xlu0 %v1988_v61  ;;  %v1933_v63 = vpop.f32.mrf.mxu0 }
 0xa63   : > { %v1977_v1 = vadd.f32 %v2827_v45, %v1976_v62 }
 0xa64   : > { %v3003_v2 = vpop.f32.mrf.mxu0  ;;  %v3008_v4 = vpop.f32.mrf.mxu1 }
 0xa65   : > { %v1991_v5 = vsel %vm1095_vm2, %v1977_v1, -inf }
 0xa66   : > { %v1979_v6 = vpop.f32.mrf.mxu1  ;;  %1992 = vmax.xlane.f32.xlu0 %v1991_v5 }
 0xa68   : > { %v3009_v7 = vpop.f32.mrf.mxu1 }
 0xa6f   : > { %2030 = vrot.lane.b32.xlu1 %v4526_v25, %s3915_s22 }
 0xa75   : > { %v1984_v3 = vpop.xlane.xlu0 %1983 }
 0xa76   : > { %v1994_v8 = vsub.f32 %v1839_v47, %v1984_v3 }
 0xa78   : > { %v1998_v9 = vmul.f32 1.442695, %v1994_v8 }
 0xa7a   : > { %3290 = vpow2.f32 %v1998_v9 }
 0xa87   : > { %v3291_v10 = vpop.eup %3290 }
 0xa88   : > { %v2006_v11 = vsel %vm1095_vm2, %v3291_v10, 0.0 }
 0xa93   : > { %2007 = vadd.xlane.f32.xlu1 %v2006_v11 }
 0xae7   : > { %v1987_v13 = vpop.xlane.xlu1 %1986 }
 0xae8   : > { %v1995_v14 = vsub.f32 %v1885_v53, %v1987_v13 }
 0xaea   : > { %v2000_v16 = vmul.f32 1.442695, %v1995_v14 }
 0xaeb   : > { %v2031_v17 = vpop.permute.xlu1 %2030  ;;  %v1990_v18 = vpop.xlane.xlu0 %1989 }
 0xaec   : > { %3292 = vpow2.f32 %v2000_v16  ;;  %v2036_v15 = vsel %vm1339_vm3, %v2031_v17, 0  ;;  %v1996_v19 = vsub.f32 %v1931_v58, %v1990_v18  ;;  %v2836_v16 = vld [vmem:[#allocation25] ss:$0 sm:$0xff] }
 0xaed   : > { %3011 = vmatpush3.bf16.msra.mxu0 %v2036_v15 }
 0xaee   : > { %v2002_v20 = vmul.f32 1.442695, %v1996_v19  ;;  %3022 = vmatprep.subr.bf16.mxu0 %v3911_v0 }
 0xaef   : > { %v1993_v21 = vpop.xlane.xlu0 %1992 }
 0xaf0   : > { %3294 = vpow2.f32 %v2002_v20  ;;  %v1997_v22 = vsub.f32 %v1977_v1, %v1993_v21 }
 0xaf2   : > { %v2004_v23 = vmul.f32 1.442695, %v1997_v22 }
 0xaf4   : > { %3296 = vpow2.f32 %v2004_v23 }
 0xaf9   : > { %v3293_v24 = vpop.eup %3292 }
 0xafa   : > { %v2009_v25 = vsel %vm1095_vm2, %v3293_v24, 0.0 }
 0xafb   : > { %2010 = vadd.xlane.f32.xlu0 %v2009_v25 }
 0xafd   : > { %v3295_v26 = vpop.eup %3294 }
 0xafe   : > { %v2012_v27 = vsel %vm1095_vm2, %v3295_v26, 0.0 }
 0xaff   : > { %2013 = vadd.xlane.f32.xlu1 %v2012_v27 }
 0xb01   : > { %v3297_v28 = vpop.eup %3296 }
 0xb02   : > { %v2015_v30 = vsel %vm1095_vm2, %v3297_v28, 0.0 }
 0xb03   : > { %2016 = vadd.xlane.f32.xlu0 %v2015_v30 }
 0xb10   : > { %2126 = vrot.lane.b32.xlu1 %v4542_v36, %s3915_s22 }
 0xb14   : > { %2174 = vrot.lane.b32.xlu1 %v4553_v40, %s3915_s22 }
 0xb19   : > { %2078 = vrot.lane.b32.xlu0 %v4537_v29, %s3915_s22 }
 0xb1c   : > { %v2008_v31 = vpop.xlane.xlu1 %2007 }
 0xb1d   : > { %3298 = vrcp.f32 %v2008_v31 }
 0xb2a   : > { %v3299_v32 = vpop.eup %3298 }
 0xb2b   : > { %v2022_v33 = vmul.f32 %v3299_v32, %v3291_v10 }
 0xb2d   : > { %v2026_v34 = vpack.c.bf16 %v2022_v33, %v2022_v33  ;;  %2334 = vst.msk [vmem:[%s4588_s27] sm:$0xff] %vm1095_vm2, %v2022_v33 }
 0xb2f   : > { %3013 = vmatmul.mubr.msk.bf16.vlgmr.msra.gmra.mxu0 %vm1095_vm2, %v2026_v34  ;;  %v2840_v34 = vld [vmem:[#allocation26] ss:$0 sm:$0xff] }
 0xb30   : > { %3024 = vmatprep.mubr.msk.bf16.mxu0 %vm3912_vm0, %v3911_v0 }
 0xb84   : > { %v2011_v35 = vpop.xlane.xlu0 %2010 }
 0xb85   : > { %3300 = vrcp.f32 %v2011_v35 }
 0xb88   : > { %v2014_v36 = vpop.xlane.xlu1 %2013 }
 0xb89   : > { %3302 = vrcp.f32 %v2014_v36  ;;  %v2841_v36 = vld [vmem:[#allocation28] ss:$0 sm:$0xff] }
 0xb8c   : > { %v2127_v29 = vpop.permute.xlu1 %2126  ;;  %v2017_v37 = vpop.xlane.xlu0 %2016 }
 0xb8d   : > { %v2132_v38 = vsel %vm1339_vm3, %v2127_v29, 0  ;;  %3304 = vrcp.f32 %v2017_v37 }
 0xb8e   : > { %3023 = vmatpush3.bf16.msra.mxu0 %v2132_v38 }
 0xb8f   : > { %3034 = vmatprep.subr.bf16.mxu0 %v3911_v0 }
 0xb90   : > { %v2079_v39 = vpop.permute.xlu0 %2078  ;;  %v2175_v43 = vpop.permute.xlu1 %2174 }
 0xb91   : > { %v2084_v40 = vsel %vm1339_vm3, %v2079_v39, 0  ;;  %v2180_v46 = vsel %vm1339_vm3, %v2175_v43, 0  ;;  %v2842_v39 = vld [vmem:[%s4844_s23] ss:$0 sm:$0xff] }
 0xb92   : > { %v3301_v41 = vpop.eup %3300  ;;  %3017 = vmatpush3.bf16.msra.mxu1 %v2084_v40 }
 0xb93   : > { %3028 = vmatprep.subr.bf16.mxu1 %v3911_v0  ;;  %v2023_v42 = vmul.f32 %v3301_v41, %v3293_v24 }
 0xb95   : > { %v2027_v44 = vpack.c.bf16 %v2023_v42, %v2023_v42  ;;  %2335 = vst.msk [vmem:[%s4588_s27 + $0x8] sm:$0xff] %vm1095_vm2, %v2023_v42 }
 0xb96   : > { %v3303_v45 = vpop.eup %3302 }
 0xb97   : > { %3019 = vmatmul.mubr.msk.bf16.vlgmr.msra.gmra.mxu1 %vm1095_vm2, %v2027_v44  ;;  %v2024_v47 = vmul.f32 %v3303_v45, %v3295_v26 }
 0xb98   : > { %3029 = vmatpush3.bf16.msra.mxu1 %v2180_v46  ;;  %3030 = vmatprep.mubr.msk.bf16.mxu1 %vm3912_vm0, %v3911_v0 }
 0xb99   : > { %v2028_v48 = vpack.c.bf16 %v2024_v47, %v2024_v47  ;;  %2336 = vst.msk [vmem:[%s4588_s27 + $0x10] sm:$0xff] %vm1095_vm2, %v2024_v47  ;;  %3042 = vmatprep.subr.bf16.mxu1 %v3911_v0 }
 0xb9a   : > { %v3305_v49 = vpop.eup %3304 }
 0xb9b   : > { %3025 = vmatmul.mubr.msk.bf16.vlgmr.msra.gmra.mxu0 %vm1095_vm2, %v2028_v48  ;;  %v2025_v50 = vmul.f32 %v3305_v49, %v3297_v28  ;;  %v3270_v28 = vld [vmem:[%s4843_s19 + $0x8] sm:$0xff]  }
 0xb9c   : > { %3038 = vmatprep.mubr.msk.bf16.mxu0 %vm3912_vm0, %v3911_v0  ;;  %3035 = vmatpush3.bf16.msra.mxu0 %v3268_v56 }
 0xb9d   : > { %v2029_v51 = vpack.c.bf16 %v2025_v50, %v2025_v50  ;;  %2337 = vst.msk [vmem:[%s4588_s27 + $0x18] sm:$0xff] %vm1095_vm2, %v2025_v50  ;;  %3036 = vmatprep.subr.bf16.mxu0 %v3911_v0 }
 0xb9f   : > { %3031 = vmatmul.mubr.msk.bf16.vlgmr.msra.gmra.mxu1 %vm1095_vm2, %v2029_v51 }
 0xba0   : > { %3046 = vmatprep.mubr.msk.bf16.mxu1 %vm3912_vm0, %v3911_v0  ;;  %3037 = vmatpush3.bf16.msra.mxu0 %v3269_v57 }
 0xba1   : > { %3043 = vmatpush3.bf16.msra.mxu1 %v3270_v28 }
 0xba2   : > { %3044 = vmatprep.subr.bf16.mxu1 %v3911_v0 }
 0xbef   : > { %v2072_v52 = vpop.f32.mrf.mxu0 }
 0xbf1   : > { %v3014_v53 = vpop.f32.mrf.mxu0 }
 0xbf3   : > { %v2075_v54 = vpop.f32.mrf.mxu0 }
 0xbf5   : > { %v3015_v55 = vpop.f32.mrf.mxu0 }
 0xc57   : > { %v2120_v58 = vpop.f32.mrf.mxu1 }
 0xc58   : > { %2223 = vrot.lane.b32.xlu0 %v2120_v58, %s3918_s16 }
 0xc59   : > { %v3020_v59 = vpop.f32.mrf.mxu1 }
 0xc5b   : > { %v2123_v60 = vpop.f32.mrf.mxu1  ;;  %v2168_v61 = vpop.f32.mrf.mxu0 }
 0xc5c   : > { %2227 = vrot.lane.b32.xlu1 %v2168_v61, %s3919_s14  ;;  %s2855_s14 = sshll.u32 %s4065_s26, 9 }
 0xc5d   : > { %v3021_v62 = vpop.f32.mrf.mxu1  ;;  %v3026_v63 = vpop.f32.mrf.mxu0  ;;  %s4645_s18 = scalar_lea.hbm %s4846_s9, %s2855_s14 }
 0xc5f   : > { %v2171_v1 = vpop.f32.mrf.mxu0  ;;  %v2216_v2 = vpop.f32.mrf.mxu1 }
 0xc60   : > { %2231 = vrot.lane.b32.xlu0 %v2216_v2, %s3920_s29  ;;  %s2468_s29 = sshll.u32 %s4588_s27, 4  ;;  %s3766_s27 = scalar_lea.vmem %s3765_s3, 1024  ;;  %s4647_s29 = int_to_ptr.vmem [resolvable:$true] %s2468_s29 }
 0xc61   : > { %v3027_v4 = vpop.f32.mrf.mxu0  ;;  %v3032_v5 = vpop.f32.mrf.mxu1  ;;  %s3760_s7 = scalar_lea.vmem %s4647_s29, 512  ;;  %p3767_p7 = scmp.lt.s32.totalorder %s4647_s29, %s3765_s3 }
 0xc62   : > { %p3761_p4 = scmp.ne.s32.totalorder %s4647_s29, %s3760_s7  ;;  %p3768_p10 = scmp.lt.s32.totalorder %s3766_s27, %s3760_s7 }
 0xc63   : > { %v2219_v6 = vpop.f32.mrf.mxu1 }
 0xc64   : > { %p3762_p9 = pnand %p3761_p4, %p4847_p8  ;;  %p3769_p13 = por %p3768_p10, %p3767_p7 }
 0xc65   : > { %v3033_v7 = vpop.f32.mrf.mxu1 }
 0xc66   : > { %p3763_p6 = pneg %p3762_p9 }
 0xc68   : > { %p3770_p1 = pnand %p3769_p13, %p3763_p6 }
 0xcca   : > { %v2224_v3 = vpop.permute.xlu0 %2223 }
 0xccb   : > { %v2234_v9 = vsel %vm1095_vm2, %v2072_v52, %v2224_v3 }
 0xcce   : > { %v2228_v8 = vpop.permute.xlu1 %2227 }
 0xccf   : > { %v2235_v10 = vsel %vm1540_vm4, %v2234_v9, %v2228_v8 }
 0xcd2   : > { %v2232_v11 = vpop.permute.xlu0 %2231 }
 0xcd3   : > { %v2236_v13 = vsel %vm1542_vm5, %v2235_v10, %v2232_v11 }
 0xcd4   : > { %v2237_v14 = vpack.c.bf16 %v2236_v13, %v2236_v13 }
 0xcd6   : > { %3039 = vmatmul.mubr.msk.bf16.vlgmr.msra.gmra.mxu0 %vm1041_vm1, %v2237_v14 }
 0xd96   : > { %v2298_v17 = vpop.f32.mrf.mxu0 }
 0xd97   : > { %v2299_v18 = vadd.f32 %v2836_v16, %v2298_v17 }
 0xd98   : > { %v3040_v15 = vpop.f32.mrf.mxu0 }
 0xd99   : > { %v2304_v19 = vadd.f32 %v2299_v18, %v4519_v12  ;;  %v3271_v12 = vld [vmem:[%s4843_s19] sm:$0xff]  }
 0xd9a   : > { %v2301_v20 = vpop.f32.mrf.mxu0  ;;  %3045 = vmatpush3.bf16.msra.mxu1 %v3271_v12 }
 0xd9b   : > { %v2307_v21 = vsel %vm1041_vm1, %v2304_v19, 0.0 }
 0xd9c   : > { %2308 = vadd.xlane.f32.xlu1 %v2307_v21  ;;  %v3041_v22 = vpop.f32.mrf.mxu0 }
 0xe25   : > { %v2309_v23 = vpop.xlane.xlu1 %2308 }
 0xe26   : > { %v2310_v24 = vmul.f32 0.03125, %v2309_v23 }
 0xe28   : > { %v2311_v25 = vsub.f32 %v2304_v19, %v2310_v24 }
 0xe2a   : > { %v2312_v26 = vmul.f32 %v2311_v25, %v2311_v25 }
 0xe2c   : > { %v2313_v27 = vsel %vm1041_vm1, %v2312_v26, 0.0 }
 0xe2d   : > { %2314 = vadd.xlane.f32.xlu0 %v2313_v27 }
 0xeb6   : > { %v2315_v30 = vpop.xlane.xlu0 %2314 }
 0xeb7   : > { %v2316_v31 = vmul.f32 0.03125, %v2315_v30 }
 0xeb9   : > { %v2317_v32 = vadd.f32 1e-05, %v2316_v31 }
 0xebb   : > { %3306 = vrsqrt.f32 %v2317_v32 }
 0xec8   : > { %v3307_v33 = vpop.eup %3306 }
 0xec9   : > { %v2319_v35 = vmul.f32 %v3307_v33, %v2311_v25 }
 0xecb   : > { %v2326_v29 = vmul.f32 %v2840_v34, %v2319_v35 }
 0xecd   : > { %v2333_v37 = vadd.f32 %v2841_v36, %v2326_v29 }
 0xecf   : > { %v2338_v38 = vpack.c.bf16 %v2333_v37, %v2333_v37 }
 0xed1   : > { %3047 = vmatmul.mubr.msk.bf16.vlgmr.msra.gmra.mxu1 %vm1041_vm1, %v2338_v38 }
 0xf91   : > { %v2399_v0 = vpop.f32.mrf.mxu1 }
 0xf92   : > { %v2400_v40 = vadd.f32 %v2842_v39, %v2399_v0 }
 0xf93   : > { %v3048_v41 = vpop.f32.mrf.mxu1 }
 0xf94   : > { %v2405_v42 = vadd.f32 %v2400_v40, %v2333_v37 }
 0xf95   : > { %v2402_v43 = vpop.f32.mrf.mxu1 }
 0xf96   : > { %v2408_v44 = vsel %vm1041_vm1, %v2405_v42, 0.0 }
 0xf97   : > { %2409 = vadd.xlane.f32.xlu0 %v2408_v44  ;;  %v3049_v45 = vpop.f32.mrf.mxu1 }
0x1020   : > { %v2410_v46 = vpop.xlane.xlu0 %2409 }
0x1021   : > { %v2411_v47 = vmul.f32 0.03125, %v2410_v46 }
0x1023   : > { %v2412_v48 = vsub.f32 %v2405_v42, %v2411_v47 }
0x1025   : > { %v2413_v49 = vmul.f32 %v2412_v48, %v2412_v48 }
0x1027   : > { %v2414_v50 = vsel %vm1041_vm1, %v2413_v49, 0.0 }
0x1028   : > { %2415 = vadd.xlane.f32.xlu1 %v2414_v50 }
0x1029   : > { %3773 = shalt.err (!%p3770_p1)
}
0x102a   : > { %s3774_s0 = scalar_lea.hbm %s4645_s18, 512  ;;  %s3778_s23 = scalar_lea.hbm %s4846_s9, 1024 }
0x102b   : > { %p3775_p0 = scmp.ne.s32.totalorder %s4645_s18, %s3774_s0  ;;  %p3779_p11 = scmp.lt.s32.totalorder %s4645_s18, %s4846_s9 }
0x102c   : > { %p3780_p5 = scmp.lt.s32.totalorder %s3778_s23, %s3774_s0 }
0x102d   : > { %p3776_p12 = pnand %p3775_p0, %p4847_p8 }
0x102e   : > { %p3781_p3 = por %p3780_p5, %p3779_p11 }
0x102f   : > { %p3777_p2 = pneg %p3776_p12 }
0x1031   : > { %p3782_p4 = pnand %p3781_p3, %p3777_p2 }
0x1033   : > { %3785 = shalt.err (!%p3782_p4)
}
0x1034   : > { %s3922_s5 = smov 128   ;;  %s4848_s3 = sld [smem:[#allocation66_spill]] }
0x1035   : > { %3111 = dma.vmem_to_hbm [thread:$0]  (%p4847_p8), %s4647_s29, 512, %s4645_s18, %s2442_s2, %s3922_s5, %s3922_s5, %s3918_s16  }
0x1036   : > { %s4849_s20 = sld [smem:[#allocation67_spill]]  ;;  %s2850_s22 = sshll.u32 %s4065_s26, 7 }
0x1037   : > { %s1004_s23 = scalar_lea.vmem [#allocation29], %s4346_s6  ;;  %s4850_s18 = sld [smem:[#allocation68_spill]] }
0x1038   : > { %s2455_s14 = sshll.u32 %s1004_s23, 4  ;;  %s2437_s1 = scalar_lea.sflag [#allocation4], %s4343_s24  ;;  %s2456_s14 = int_to_ptr.vmem [resolvable:$true] %s2455_s14 }
0x1039   : > { %s3786_s5 = scalar_lea.vmem %s2456_s14, 128  ;;  %s3923_s7 = smov [#allocation29]  }
0x103a   : > { %v2846_v55 = vld [vmem:[%s4848_s3] ss:$0 sm:$0xff]  ;;  %p3787_p9 = scmp.ne.s32.totalorder %s2456_s14, %s3786_s5  ;;  %s3790_s4 = sshll.u32 %s3923_s7, 4  ;;  %s3791_s4 = int_to_ptr.vmem [resolvable:$false] %s3790_s4 }
0x103b   : > { %s3792_s26 = scalar_lea.vmem %s3791_s4, 256  ;;  %p3793_p10 = scmp.lt.s32.totalorder %s2456_s14, %s3791_s4 }
0x103c   : > { %v2847_v57 = vld [vmem:[%s4849_s20] ss:$0 sm:$0xff]  ;;  %p3788_p6 = pnand %p3787_p9, %p4847_p8  ;;  %p3794_p13 = scmp.lt.s32.totalorder %s3792_s26, %s3786_s5 }
0x103d   : > { %s2453_s2 = scalar_lea.hbm %s4850_s18, %s2850_s22 }
0x103e   : > { %p3789_p7 = pneg %p3788_p6  ;;  %p3795_p1 = por %p3794_p13, %p3793_p10 }
0x1040   : > { %p3796_p0 = pnand %p3795_p1, %p3789_p7 }
0x10b1   : > { %v2416_v51 = vpop.xlane.xlu1 %2415 }
0x10b2   : > { %v2417_v52 = vmul.f32 0.03125, %v2416_v51 }
0x10b4   : > { %v2418_v53 = vadd.f32 1e-05, %v2417_v52 }
0x10b6   : > { %3308 = vrsqrt.f32 %v2418_v53 }
0x10c3   : > { %v3309_v54 = vpop.eup %3308 }
0x10c4   : > { %v2420_v56 = vmul.f32 %v3309_v54, %v2412_v48 }
0x10c6   : > { %v2427_v58 = vmul.f32 %v2846_v55, %v2420_v56 }
0x10c8   : > { %v2434_v59 = vadd.f32 %v2847_v57, %v2427_v58 }
0x10ca   : > { %2435 = vst.msk [vmem:[%s1004_s23] sm:$0xff] %vm1041_vm1, %v2434_v59 }
0x10cb   : > { %3799 = shalt.err (!%p3796_p0)
}
0x10cc   : > { %s3800_s6 = scalar_lea.hbm %s2453_s2, 128  ;;  %s3804_s27 = scalar_lea.hbm %s4850_s18, 256 }
0x10cd   : > { %p3801_p12 = scmp.ne.s32.totalorder %s2453_s2, %s3800_s6  ;;  %p3805_p5 = scmp.lt.s32.totalorder %s2453_s2, %s4850_s18 }
0x10ce   : > { %p3806_p3 = scmp.lt.s32.totalorder %s3804_s27, %s3800_s6 }
0x10cf   : > { %p3802_p2 = pnand %p3801_p12, %p4847_p8 }
0x10d0   : > { %p3807_p4 = por %p3806_p3, %p3805_p5 }
0x10d1   : > { %p3803_p11 = pneg %p3802_p2 }
0x10d3   : > { %p3808_p9 = pnand %p3807_p4, %p3803_p11 }
0x10d5   : > { %3811 = shalt.err (!%p3808_p9)
}
0x10d6   : > { %3110 = dma.vmem_to_hbm [thread:$0]  (%p4847_p8), %s2456_s14, 128, %s2453_s2, %s2437_s1  }
0x10d7 PF: > { %s4851_s22 = sld [smem:[#allocation44_spill]]  ;;  %p4854_p7 = scmp.ge.s32.totalorder %s3890_s25, 2 }
0x10d8   : > { %s4852_s23 = sld [smem:[#allocation49_spill]] }
0x10dd   : > { %s2483_s16 = sand.u32 1, %s4851_s22  }
0x10de   : > { %p4853_p6 = scmp.ne.s32.totalorder %s4852_s23, 0  ;;  %s2484_s29 = scalar_lea.sflag [#allocation4], %s2483_s16 }
0x10e0   : > { %p3168_p10 = pnand %p4854_p7, %p4853_p6 }
0x10e2   : > { %p3169_p13 = pneg %p3168_p10 }
0x10e4   : > { %3869 = dma.done.wait (%p3169_p13), %s2484_s29, 128  }
0x10e5   : > { %3871 = vsyncadd (%p3169_p13), %s2484_s29, 4294967168  ;;  %s2493_s5 = scalar_lea.sflag [#allocation31], %s2483_s16 }
0x10e6   : > { %3873 = dma.done.wait (%p3169_p13), %s2493_s5, 512  }
0x10e7   : > { %3875 = vsyncadd (%p3169_p13), %s2493_s5, 4294966784  ;;  %s4855_s25 = sld [smem:[#allocation46_spill]]  ;;  %s4858_s4 = smov %s3882_s30 }
0x10e8   : > { %s4856_s7 = sld [smem:[#allocation45_spill]] }
0x10e9   : > { %s4857_s24 = sld [smem:[#allocation47_spill]] }
0x10ed   : > { %p52_p8 = scmp.ge.s32.totalorder %s4855_s25, 4  }
0x10ee   : > { %s4859_s30 = smov %s4856_s7 }
0x10ef   :  { %54 = sbr.rel (!%p52_p8) target bundleno = 38 (0x26), region = 259 }
0x10f4   :  { %2498 = vsyncpa [#allocation3], 1 }
0x10f5   :  { %2500 = vsyncpa [#allocation3 + $0x1], 1 }
0x10f6   :  { %2501 = vsyncpa [#allocation6], 1 }
0x10f7   :  { %2503 = vsyncpa [#allocation6 + $0x1], 1 }
0x10f8   :  { %2504 = vsyncpa [#allocation9], 1 }
0x10f9   :  { %2506 = vsyncpa [#allocation9 + $0x1], 1 }
0x10fa   :  { %2507 = vsyncpa [#allocation12], 1 }
0x10fb   :  { %2508 = vsyncpa [#allocation15], 1 }
0x10fc   :  { %2509 = vsyncpa [#allocation18], 1 }
0x10fd   :  { %2510 = vsyncpa [#allocation21], 1 }
0x10fe   :  { %2511 = vsyncpa [#allocation24], 1 }
0x10ff   :  { %2512 = vsyncpa [#allocation27], 1 }
0x1100   :  { %2513 = vsyncpa [#allocation4], 1 }
0x1101   :  { %2515 = vsyncpa [#allocation4 + $0x1], 1 }
0x1102   :  { %2516 = vsyncpa [#allocation31], 1 }
0x1103   :  { %2518 = vsyncpa [#allocation31 + $0x1], 1 }

// kernel: tpu_custom_call.1
= control target key start
LH: loop header
LB: loop body
LE: loop exit
PB: predicated region body
PF: predicated region fallthrough
CT: control target
= control target key end

     0   :  { %s4716_s0 = inlined_call_operand.hbm [shape: f32[2,8,32], index: 0, kind: input, shape index: {}]   ;;  %s4717_s1 = inlined_call_operand.hbm [shape: f32[2,8,32], index: 1, kind: input, shape index: {}]   ;;  %s4718_s2 = inlined_call_operand.hbm [shape: f32[2,8,8], index: 2, kind: input, shape index: {}]   ;;  %s4719_s3 = inlined_call_operand.hbm [shape: f32[2,1,8], index: 3, kind: input, shape index: {}]   ;;  %s4720_s4 = inlined_call_operand.hbm [shape: bf16[32,96], index: 4, kind: input, shape index: {}]   ;;  %s4721_s5 = inlined_call_operand.hbm [shape: f32[1,96], index: 5, kind: input, shape index: {}]   ;;  %s4722_s6 = inlined_call_operand.hbm [shape: bf16[32,32], index: 6, kind: input, shape index: {}]   ;;  %s4723_s7 = inlined_call_operand.hbm [shape: f32[1,32], index: 7, kind: input, shape index: {}]   ;;  %s4724_s8 = inlined_call_operand.hbm [shape: f32[1,32], index: 8, kind: input, shape index: {}]   ;;  %s4725_s9 = inlined_call_operand.hbm [shape: f32[1,32], index: 9, kind: input, shape index: {}]   ;;  %s4726_s10 = inlined_call_operand.vmem [shape: bf16[32,32], index: 10, kind: input, shape index: {}]   ;;  %s4727_s11 = inlined_call_operand.hbm [shape: f32[1,32], index: 11, kind: input, shape index: {}]   ;;  %s4728_s12 = inlined_call_operand.hbm [shape: bf16[32,64], index: 12, kind: input, shape index: {}]   ;;  %s4729_s13 = inlined_call_operand.hbm [shape: f32[1,64], index: 13, kind: input, shape index: {}]   ;;  %s4730_s14 = inlined_call_operand.hbm [shape: bf16[32,32], index: 14, kind: input, shape index: {}]   ;;  %s4731_s15 = inlined_call_operand.hbm [shape: f32[1,32], index: 15, kind: input, shape index: {}]   ;;  %s4732_s16 = inlined_call_operand.hbm [shape: f32[1,32], index: 16, kind: input, shape index: {}]   ;;  %s4733_s17 = inlined_call_operand.hbm [shape: f32[1,32], index: 17, kind: input, shape index: {}]   ;;  %s4734_s18 = inlined_call_operand.vmem [shape: bf16[32,32], index: 18, kind: input, shape index: {}]   ;;  %s4735_s19 = inlined_call_operand.vmem [shape: f32[1,32], index: 19, kind: input, shape index: {}]   ;;  %s4736_s20 = inlined_call_operand.vmem [shape: f32[1,32], index: 20, kind: input, shape index: {}]   ;;  %s4737_s21 = inlined_call_operand.vmem [shape: f32[1,32], index: 21, kind: input, shape index: {}]   ;;  %s4738_s22 = inlined_call_operand.hbm [shape: f32[2,8,32], index: 22, kind: output, shape index: {0}]   ;;  %s4739_s23 = inlined_call_operand.hbm [shape: f32[2,4,8,8], index: 23, kind: output, shape index: {1}]  }
   0x1   :  { %4771 = sst [smem:[#allocation50_spill]] %s4716_s0 }
   0x2   :  { %4772 = sst [smem:[#allocation51_spill]] %s4717_s1 }
   0x3   :  { %4773 = sst [smem:[#allocation52_spill]] %s4718_s2 }
   0x4   :  { %4774 = sst [smem:[#allocation53_spill]] %s4719_s3 }
   0x5   :  { %4775 = sst [smem:[#allocation54_spill]] %s4720_s4 }
   0x6   :  { %4776 = sst [smem:[#allocation55_spill]] %s4721_s5 }
   0x7   :  { %4777 = sst [smem:[#allocation56_spill]] %s4722_s6 }
   0x8   :  { %4778 = sst [smem:[#allocation57_spill]] %s4723_s7 }
   0x9   :  { %4779 = sst [smem:[#allocation58_spill]] %s4724_s8 }
   0xa   :  { %4780 = sst [smem:[#allocation59_spill]] %s4725_s9 }
   0xb   :  { %4781 = sst [smem:[#allocation60_spill]] %s4726_s10 }
   0xc   :  { %4782 = sst [smem:[#allocation61_spill]] %s4728_s12 }
   0xd   :  { %4783 = sst [smem:[#allocation62_spill]] %s4730_s14 }
   0xe   :  { %4784 = sst [smem:[#allocation63_spill]] %s4732_s16 }
   0xf   :  { %4785 = sst [smem:[#allocation64_spill]] %s4734_s18 }
  0x10   :  { %4786 = sst [smem:[#allocation65_spill]] %s4735_s19 }
  0x11   :  { %4787 = sst [smem:[#allocation66_spill]] %s4736_s20 }
  0x12   :  { %4788 = sst [smem:[#allocation67_spill]] %s4737_s21 }
  0x13   :  { %4789 = sst [smem:[#allocation68_spill]] %s4738_s22 }
  0x14   :  { %4790 = sst [smem:[#allocation69_spill]] %s4739_s23 }
  0x15   :  { %29 = vsyncpa [#allocation3], 0 }
  0x16   :  { %31 = vsyncpa [#allocation3 + $0x1], 0 }
  0x17   :  { %32 = vsyncpa [#allocation6], 0 }
  0x18   :  { %34 = vsyncpa [#allocation6 + $0x1], 0 }
  0x19   :  { %35 = vsyncpa [#allocation9], 0 }
  0x1a   :  { %37 = vsyncpa [#allocation9 + $0x1], 0 }
  0x1b   :  { %38 = vsyncpa [#allocation12], 0 }
  0x1c   :  { %39 = vsyncpa [#allocation15], 0 }
  0x1d   :  { %40 = vsyncpa [#allocation18], 0 }
  0x1e   :  { %41 = vsyncpa [#allocation21], 0 }
  0x1f   :  { %42 = vsyncpa [#allocation24], 0 }
  0x20   :  { %43 = vsyncpa [#allocation27], 0 }
  0x21   :  { %44 = vsyncpa [#allocation4], 0 }
  0x22   :  { %46 = vsyncpa [#allocation4 + $0x1], 0 }
  0x23   :  { %47 = vsyncpa [#allocation31], 0 }
  0x24   :  { %49 = vsyncpa [#allocation31 + $0x1], 0  ;;  %s4044_s4 = smov 0   ;;  %s4046_s30 = smov 0  }
  0x25   :  { %s4048_s24 = smov 0   ;;  %s4050_s25 = smov 0  }
  0x26 LB: > { %4791 = sst [smem:[#allocation44_spill]] %s3878_s4  ;;  %s3892_s5 = smov [#allocation10]   ;;  %s3890_s25 = sphi %s4050_s25, %s4855_s25   ;;  %s3886_s24 = sphi %s4048_s24, %s4857_s24   ;;  %s3882_s30 = sphi %s4046_s30, %s4859_s30   ;;  %s3878_s4 = sphi %s4044_s4, %s4858_s4  }
  0x27   : > { %4792 = sst [smem:[#allocation45_spill]] %s3886_s24  ;;  %s606_s1 = sshll.u32 %s3892_s5, 4  ;;  %s607_s1 = int_to_ptr.vmem [resolvable:$true] %s606_s1 }
  0x28   : > { %s4065_s26 = sadd.s32 4294967295, %s3890_s25   ;;  %p2760_p0 = scmp.ge.s32.totalorder %s3890_s25, 1 }
  0x29   : > { %p4747_p1 = scmp.eq.s32.totalorder %s4065_s26, 0  ;;  %p594_p2 = scmp.lt.s32.totalorder %s3890_s25, 3 }
  0x2a   : > { %s3893_s6 = smov [#allocation11]   ;;  %s3894_s28 = smov [#allocation14]  }
  0x2b   : > { %p4070_p3 = pnand %p2760_p0, %p594_p2  ;;  %s620_s27 = sshll.u32 %s3893_s6, 4  ;;  %s621_s27 = int_to_ptr.vmem [resolvable:$true] %s620_s27 }
  0x2c   : > { %s644_s29 = sshll.u32 %s3894_s28, 4  ;;  %s3321_s0 = scalar_lea.vmem %s607_s1, 256  ;;  %s4083_s29 = int_to_ptr.vmem [resolvable:$true] %s644_s29 }
  0x2d   : > { %s4793_s2 = scalar_select %p4070_p3, 1, 0 }
  0x2e   : > { %p3114_p5 = pneg %p4070_p3  ;;  %p3322_p8 = scmp.ne.s32.totalorder %s607_s1, %s3321_s0 }
  0x2f   : > { %p3329_p11 = scmp.lt.s32.totalorder %s607_s1, %s607_s1  ;;  %p3330_p12 = scmp.lt.s32.totalorder %s3321_s0, %s3321_s0 }
  0x30   : > { %p4079_p6 = pnand %p3114_p5, %p4747_p1 }
  0x31   : > { %p3331_p13 = por %p3330_p12, %p3329_p11 }
  0x32   : > { %s4794_s7 = scalar_select %p4079_p6, 1, 0 }
  0x33   : > { %p4087_p7 = pneg %p4079_p6 }
  0x35   : > { %s4795_s3 = scalar_select %p4087_p7, 1, 0 }
  0x36   : > { %p3324_p9 = pnand %p3322_p8, %p4087_p7 }
  0x38   : > { %p3325_p10 = pneg %p3324_p9 }
  0x3a   : > { %p3332_p0 = pnand %p3331_p13, %p3325_p10 }
  0x3c   : > { %3335 = shalt.err (!%p3332_p0)
}
  0x3d   : > { %s4749_s5 = smov 64   ;;  %s4750_s6 = smov 4  }
  0x3e   : > { %s4796_s21 = sld [smem:[#allocation54_spill]]  ;;  %s3347_s20 = scalar_lea.vmem %s621_s27, 16 }
  0x3f   : > { %p3348_p2 = scmp.ne.s32.totalorder %s621_s27, %s3347_s20  ;;  %s3354_s0 = scalar_lea.vmem %s621_s27, 32 }
  0x40   : > { %p3355_p9 = scmp.lt.s32.totalorder %s621_s27, %s621_s27  ;;  %p3356_p10 = scmp.lt.s32.totalorder %s3354_s0, %s3347_s20 }
  0x41   : > { %p3350_p5 = pnand %p3348_p2, %p4087_p7 }
  0x42   : > { %p3357_p11 = por %p3356_p10, %p3355_p9 }
  0x43   : > { %p3351_p8 = pneg %p3350_p5 }
  0x44   : > { %3117 = dma.hbm_to_vmem [thread:$0]  (!%p4079_p6), %s4796_s21, 256, %s607_s1, [#allocation9], %s4749_s5, %s4749_s5, %s4750_s6  }
  0x45   : > { %p3358_p12 = pnand %p3357_p11, %p3351_p8 }
  0x47   : > { %3361 = shalt.err (!%p3358_p12)
}
  0x48   : > { %s4797_s18 = sld [smem:[#allocation55_spill]]  ;;  %s3373_s21 = scalar_lea.vmem %s4083_s29, 16 }
  0x49   : > { %p3374_p13 = scmp.ne.s32.totalorder %s4083_s29, %s3373_s21  ;;  %s3380_s20 = scalar_lea.vmem %s4083_s29, 32 }
  0x4a   : > { %p3381_p5 = scmp.lt.s32.totalorder %s4083_s29, %s4083_s29  ;;  %p3382_p8 = scmp.lt.s32.totalorder %s3380_s20, %s3373_s21 }
  0x4b   : > { %p3376_p0 = pnand %p3374_p13, %p4087_p7 }
  0x4c   : > { %p3383_p9 = por %p3382_p8, %p3381_p5 }
  0x4d   : > { %p3377_p2 = pneg %p3376_p0 }
  0x4e   : > { %3120 = dma.hbm_to_vmem [thread:$0]  (!%p4079_p6), %s4797_s18, 16, %s621_s27, [#allocation12]  }
  0x4f   : > { %p3384_p10 = pnand %p3383_p9, %p3377_p2 }
  0x51   : > { %3387 = shalt.err (!%p3384_p10)
}
  0x52   : > { %s4798_s23 = sld [smem:[#allocation57_spill]]  ;;  %s3897_s18 = smov [#allocation17]  }
  0x53   : > { %s666_s1 = sshll.u32 %s3897_s18, 4  ;;  %s3898_s27 = smov [#allocation20]   ;;  %s667_s1 = int_to_ptr.vmem [resolvable:$true] %s666_s1 }
  0x54   : > { %s690_s28 = sshll.u32 %s3898_s27, 4  ;;  %s3399_s0 = scalar_lea.vmem %s667_s1, 16  ;;  %s691_s28 = int_to_ptr.vmem [resolvable:$true] %s690_s28 }
  0x55   : > { %p3400_p11 = scmp.ne.s32.totalorder %s667_s1, %s3399_s0  ;;  %s3406_s21 = scalar_lea.vmem %s667_s1, 32 }
  0x56   : > { %p3407_p0 = scmp.lt.s32.totalorder %s667_s1, %s667_s1  ;;  %p3408_p2 = scmp.lt.s32.totalorder %s3406_s21, %s3399_s0 }
  0x57   : > { %p3402_p12 = pnand %p3400_p11, %p4087_p7 }
  0x58   : > { %3126 = dma.hbm_to_vmem [thread:$0]  (!%p4079_p6), %s4798_s23, 16, %s4083_s29, [#allocation15]  }
  0x59   : > { %p3403_p13 = pneg %p3402_p12  ;;  %p3409_p5 = por %p3408_p2, %p3407_p0 }
  0x5b   : > { %p3410_p8 = pnand %p3409_p5, %p3403_p13 }
  0x5d   : > { %3413 = shalt.err (!%p3410_p8)
}
  0x5e   : > { %s4799_s9 = sld [smem:[#allocation59_spill]]  ;;  %s3425_s19 = scalar_lea.vmem %s691_s28, 256 }
  0x5f   : > { %p3426_p9 = scmp.ne.s32.totalorder %s691_s28, %s3425_s19  ;;  %p3433_p12 = scmp.lt.s32.totalorder %s691_s28, %s691_s28 }
  0x60   : > { %p3434_p4 = scmp.lt.s32.totalorder %s3425_s19, %s3425_s19 }
  0x61   : > { %p3428_p10 = pnand %p3426_p9, %p4087_p7 }
  0x62   : > { %p3435_p1 = por %p3434_p4, %p3433_p12 }
  0x63   : > { %p3429_p11 = pneg %p3428_p10 }
  0x64   : > { %3132 = dma.hbm_to_vmem [thread:$0]  (!%p4079_p6), %s4799_s9, 16, %s667_s1, [#allocation18]  }
  0x65   : > { %p3436_p3 = pnand %p3435_p1, %p3429_p11 }
  0x67   : > { %3439 = shalt.err (!%p3436_p3)
}
  0x68   : > { %s4800_s12 = sld [smem:[#allocation61_spill]]  ;;  %s3899_s18 = smov [#allocation23]  }
  0x69   : > { %s714_s1 = sshll.u32 %s3899_s18, 4  ;;  %s3900_s27 = smov [#allocation26]   ;;  %s715_s1 = int_to_ptr.vmem [resolvable:$true] %s714_s1 }
  0x6a   : > { %s739_s0 = sshll.u32 %s3900_s27, 4  ;;  %s3451_s21 = scalar_lea.vmem %s715_s1, 256  ;;  %s740_s0 = int_to_ptr.vmem [resolvable:$true] %s739_s0 }
  0x6b   : > { %p3452_p13 = scmp.ne.s32.totalorder %s715_s1, %s3451_s21  ;;  %p3459_p4 = scmp.lt.s32.totalorder %s715_s1, %s715_s1 }
  0x6c   : > { %p3460_p0 = scmp.lt.s32.totalorder %s3451_s21, %s3451_s21 }
  0x6d   : > { %p3454_p1 = pnand %p3452_p13, %p4087_p7 }
  0x6e   : > { %3138 = dma.hbm_to_vmem [thread:$0]  (!%p4079_p6), %s4800_s12, 256, %s691_s28, [#allocation21], %s4749_s5, %s4749_s5, %s4750_s6  }
  0x6f   : > { %p3455_p3 = pneg %p3454_p1  ;;  %p3461_p2 = por %p3460_p0, %p3459_p4 }
  0x71   : > { %p3462_p5 = pnand %p3461_p2, %p3455_p3 }
  0x73   : > { %3465 = shalt.err (!%p3462_p5)
}
  0x74   : > { %s4801_s14 = sld [smem:[#allocation62_spill]]  ;;  %s3477_s29 = scalar_lea.vmem %s740_s0, 16 }
  0x75   : > { %p3478_p8 = scmp.ne.s32.totalorder %s740_s0, %s3477_s29  ;;  %s3484_s19 = scalar_lea.vmem %s740_s0, 32 }
  0x76   : > { %p3485_p11 = scmp.lt.s32.totalorder %s740_s0, %s740_s0  ;;  %p3486_p12 = scmp.lt.s32.totalorder %s3484_s19, %s3477_s29 }
  0x77   : > { %p3480_p9 = pnand %p3478_p8, %p4087_p7 }
  0x78   : > { %p3487_p13 = por %p3486_p12, %p3485_p11 }
  0x79   : > { %p3481_p10 = pneg %p3480_p9 }
  0x7a   : > { %3144 = dma.hbm_to_vmem [thread:$0]  (!%p4079_p6), %s4801_s14, 256, %s715_s1, [#allocation24], %s4749_s5, %s4749_s5, %s4750_s6  }
  0x7b   : > { %p3488_p1 = pnand %p3487_p13, %p3481_p10 }
  0x7d   : > { %3491 = shalt.err (!%p3488_p1)
}
  0x7e   : > { %s4802_s16 = sld [smem:[#allocation63_spill]]  ;;  %s2759_s18 = sadd.s32 4294967294, %s3890_s25  }
  0x7f   : > { %s4157_s1 = sadd.s32 1, %s3890_s25   ;;  %s62_s27 = sadd.s32 1, %s3886_s24 }
  0x80   : > { %4803 = sst [smem:[#allocation46_spill]] %s4157_s1  ;;  %s59_s21 = ssub.s32 %s3890_s25, %s4157_s1 }
  0x81   : > { %p69_p3 = scmp.ne.s32.totalorder %s3886_s24, %s3882_s30  ;;  %p60_p4 = scmp.eq.s32.totalorder %s59_s21, 0 }
  0x82   : > { %p70_p0 = scmp.eq.s32.totalorder %s3890_s25, 0  ;;  %p75_p2 = scmp.ne.s32.totalorder %s3882_s30, %s3878_s4 }
  0x83   : > { %p555_p5 = scmp.eq.s32.totalorder %s4065_s26, 1  ;;  %p4805_p9 = scmp.eq.s32.totalorder %s4065_s26, 0 }
  0x84   : > { %3150 = dma.hbm_to_vmem [thread:$0]  (!%p4079_p6), %s4802_s16, 16, %s740_s0, [#allocation27]  }
  0x85   : > { %s4169_s28 = scalar_select %p60_p4, %s3886_s24, %s62_s27  }
  0x86   : > { %p71_p8 = por %p70_p0, %p69_p3  ;;  %p4173_p10 = por %p4805_p9, %p75_p2 }
  0x87   : > { %4804 = sst [smem:[#allocation47_spill]] %s4169_s28  ;;  %p4177_p11 = por %p555_p5, %p69_p3 }
  0x88   : > { %s4806_s0 = scalar_select %p4173_p10, 1, 0 }
  0x89   : > { %s4807_s20 = scalar_select %p4177_p11, 1, 0 }
  0x8a   : > { %p561_p12 = scmp.eq.s32.totalorder %s2759_s18, 1  ;;  %p3187_p13 = scmp.lt.s32.totalorder %s3890_s25, 2 }
  0x8b   : > { %4808 = sst [smem:[#allocation48_spill]] %s4807_s20  ;;  %s4183_s29 = sand.u32 1, %s3886_s24  }
  0x8c   : > { %p4185_p1 = por %p561_p12, %p75_p2  ;;  %s4190_s22 = sshll.u32 %s4183_s29, 3 }
  0x8d   : > { %s4193_s23 = sshll.u32 %s3890_s25, 7  ;;  %p4195_p4 = pnand %p3187_p13, %p71_p8 }
  0x8e   : > { %s4809_s19 = scalar_select %p4185_p1, 1, 0 }
  0x8f   : > { %s4811_s27 = scalar_select %p4195_p4, 1, 0 }
  0x90   : > { %4810 = sst [smem:[#allocation49_spill]] %s4809_s19  ;;  %s4755_s18 = sand.u32 1, %s3890_s25  }
  0x91   : > { %s4812_s6 = sld [smem:[#allocation51_spill]]  ;;  %s795_s12 = scalar_lea.vmem [#allocation5], %s4190_s22 }
  0x92   : > { %s802_s14 = sshll.u32 %s795_s12, 4  ;;  %s4209_s16 = scalar_lea.sflag [#allocation6], %s4755_s18  ;;  %s803_s14 = int_to_ptr.vmem [resolvable:$true] %s802_s14 }
  0x93   : > { %p4215_p0 = pneg %p4195_p4 }
  0x95   : > { %s4813_s24 = scalar_select %p4215_p0, 1, 0 }
  0x97   : > { %s4204_s9 = scalar_lea.hbm %s4812_s6, %s4193_s23  ;;  %s3497_s1 = scalar_lea.hbm %s4812_s6, 256 }
  0x98   : > { %s3492_s28 = scalar_lea.hbm %s4204_s9, 128  ;;  %p3498_p8 = scmp.lt.s32.totalorder %s4204_s9, %s4812_s6 }
  0x99   : > { %p3493_p3 = scmp.ne.s32.totalorder %s4204_s9, %s3492_s28  ;;  %p3499_p9 = scmp.lt.s32.totalorder %s3497_s1, %s3492_s28 }
  0x9b   : > { %p3495_p2 = pnand %p4215_p0, %p3493_p3  ;;  %p3500_p12 = por %p3499_p9, %p3498_p8 }
  0x9d   : > { %p3496_p5 = pneg %p3495_p2 }
  0x9f   : > { %p3501_p13 = pnand %p3500_p12, %p3496_p5 }
  0xa1   : > { %3504 = shalt.err (!%p3501_p13)
}
  0xa2   : > { %s3505_s18 = scalar_lea.vmem %s803_s14, 128  ;;  %s3901_s4 = smov [#allocation5]  }
  0xa3   : > { %p3506_p1 = scmp.ne.s32.totalorder %s803_s14, %s3505_s18  ;;  %s3510_s20 = sshll.u32 %s3901_s4, 4  ;;  %s3511_s20 = int_to_ptr.vmem [resolvable:$false] %s3510_s20 }
  0xa4   : > { %s3512_s10 = scalar_lea.vmem %s3511_s20, 256  ;;  %p3513_p3 = scmp.lt.s32.totalorder %s803_s14, %s3511_s20 }
  0xa5   : > { %p3508_p11 = pnand %p3506_p1, %p4215_p0  ;;  %p3514_p2 = scmp.lt.s32.totalorder %s3512_s10, %s3505_s18 }
  0xa7   : > { %p3509_p10 = pneg %p3508_p11  ;;  %p3515_p6 = por %p3514_p2, %p3513_p3 }
  0xa9   : > { %p3516_p7 = pnand %p3515_p6, %p3509_p10 }
  0xab   : > { %3519 = shalt.err (!%p3516_p7)
}
  0xac   : > { %3160 = dma.hbm_to_vmem [thread:$0]  (!%p4195_p4), %s4204_s9, 128, %s803_s14, %s4209_s16  }
  0xad   : > { %s3902_s1 = smov [#allocation13]   ;;  %s3903_s19 = smov [#allocation16]  }
  0xae   : > { %s630_s28 = sshll.u32 %s3902_s1, 4  ;;  %s655_s5 = sshll.u32 %s3903_s19, 4  ;;  %s631_s28 = int_to_ptr.vmem [resolvable:$true] %s630_s28  ;;  %s656_s5 = int_to_ptr.vmem [resolvable:$true] %s655_s5 }
  0xaf   : > { %s3531_s4 = scalar_lea.vmem %s631_s28, 256  ;;  %p4814_p1 = scmp.ne.s32.totalorder %s4795_s3, 0 }
  0xb0   : > { %p3532_p11 = scmp.ne.s32.totalorder %s631_s28, %s3531_s4  ;;  %p3539_p9 = scmp.lt.s32.totalorder %s631_s28, %s631_s28 }
  0xb1   : > { %p3540_p6 = scmp.lt.s32.totalorder %s3531_s4, %s3531_s4 }
  0xb2   : > { %p3534_p5 = pnand %p3532_p11, %p4814_p1 }
  0xb3   : > { %p3541_p7 = por %p3540_p6, %p3539_p9 }
  0xb4   : > { %p3535_p8 = pneg %p3534_p5 }
  0xb6   : > { %p3542_p10 = pnand %p3541_p7, %p3535_p8 }
  0xb8   : > { %3545 = shalt.err (!%p3542_p10)
}
  0xb9   : > { %p4815_p12 = scmp.ne.s32.totalorder %s4794_s7, 0  ;;  %s4816_s10 = smov 4  }
  0xba   : > { %s4817_s9 = smov 64   ;;  %s4818_s18 = sld [smem:[#allocation56_spill]] }
  0xbb   : > { %s3557_s21 = scalar_lea.vmem %s656_s5, 16  ;;  %s3564_s12 = scalar_lea.vmem %s656_s5, 32 }
  0xbc   : > { %p3558_p13 = scmp.ne.s32.totalorder %s656_s5, %s3557_s21  ;;  %p3565_p11 = scmp.lt.s32.totalorder %s656_s5, %s656_s5 }
  0xbd   : > { %p3566_p5 = scmp.lt.s32.totalorder %s3564_s12, %s3557_s21 }
  0xbe   : > { %p3560_p3 = pnand %p3558_p13, %p4814_p1 }
  0xbf   : > { %p3567_p8 = por %p3566_p5, %p3565_p11 }
  0xc0   : > { %3123 = dma.hbm_to_vmem [thread:$0]  (!%p4815_p12), %s4818_s18, 256, %s631_s28, [#allocation12], %s4817_s9, %s4817_s9, %s4816_s10  }
  0xc1   : > { %p3561_p2 = pneg %p3560_p3 }
  0xc3   : > { %p3568_p9 = pnand %p3567_p8, %p3561_p2 }
  0xc5   : > { %3571 = shalt.err (!%p3568_p9)
}
  0xc6   : > { %s4819_s8 = sld [smem:[#allocation58_spill]]  ;;  %s3904_s4 = smov [#allocation19]  }
  0xc7   : > { %s680_s28 = sshll.u32 %s3904_s4, 4  ;;  %s3905_s10 = smov [#allocation22]   ;;  %s681_s28 = int_to_ptr.vmem [resolvable:$true] %s680_s28 }
  0xc8   : > { %s704_s9 = sshll.u32 %s3905_s10, 4  ;;  %s3583_s14 = scalar_lea.vmem %s681_s28, 16  ;;  %s705_s9 = int_to_ptr.vmem [resolvable:$true] %s704_s9 }
  0xc9   : > { %p3584_p6 = scmp.ne.s32.totalorder %s681_s28, %s3583_s14  ;;  %s3590_s20 = scalar_lea.vmem %s681_s28, 32 }
  0xca   : > { %p3591_p13 = scmp.lt.s32.totalorder %s681_s28, %s681_s28  ;;  %p3592_p3 = scmp.lt.s32.totalorder %s3590_s20, %s3583_s14 }
  0xcb   : > { %p3586_p7 = pnand %p3584_p6, %p4814_p1 }
  0xcc   : > { %3129 = dma.hbm_to_vmem [thread:$0]  (!%p4815_p12), %s4819_s8, 16, %s656_s5, [#allocation15]  }
  0xcd   : > { %p3587_p10 = pneg %p3586_p7  ;;  %p3593_p2 = por %p3592_p3, %p3591_p13 }
  0xcf   : > { %p3594_p11 = pnand %p3593_p2, %p3587_p10 }
  0xd1   : > { %3597 = shalt.err (!%p3594_p11)
}
  0xd2   : > { %3135 = dma.hbm_to_vmem [thread:$0]  (!%p4815_p12), %s4727_s11, 16, %s681_s28, [#allocation18]  }
  0xd3   : > { %s3609_s21 = scalar_lea.vmem %s705_s9, 16  ;;  %s3616_s12 = scalar_lea.vmem %s705_s9, 32 }
  0xd4   : > { %p3610_p5 = scmp.ne.s32.totalorder %s705_s9, %s3609_s21  ;;  %p3617_p6 = scmp.lt.s32.totalorder %s705_s9, %s705_s9 }
  0xd5   : > { %p3618_p7 = scmp.lt.s32.totalorder %s3616_s12, %s3609_s21 }
  0xd6   : > { %p3612_p8 = pnand %p3610_p5, %p4814_p1 }
  0xd7   : > { %p3619_p4 = por %p3618_p7, %p3617_p6 }
  0xd8   : > { %p3613_p9 = pneg %p3612_p8 }
  0xda   : > { %p3620_p0 = pnand %p3619_p4, %p3613_p9 }
  0xdc   : > { %3623 = shalt.err (!%p3620_p0)
}
  0xdd   : > { %3141 = dma.hbm_to_vmem [thread:$0]  (!%p4815_p12), %s4729_s13, 16, %s705_s9, [#allocation21]  }
  0xde   : > { %s3906_s4 = smov [#allocation25]   ;;  %s3907_s10 = smov [#allocation28]  }
  0xdf   : > { %s728_s28 = sshll.u32 %s3906_s4, 4  ;;  %s750_s14 = sshll.u32 %s3907_s10, 4  ;;  %s729_s28 = int_to_ptr.vmem [resolvable:$true] %s728_s28  ;;  %s751_s14 = int_to_ptr.vmem [resolvable:$true] %s750_s14 }
  0xe0   : > { %s3635_s20 = scalar_lea.vmem %s729_s28, 16  ;;  %s3642_s5 = scalar_lea.vmem %s729_s28, 32 }
  0xe1   : > { %p3636_p10 = scmp.ne.s32.totalorder %s729_s28, %s3635_s20  ;;  %p3643_p4 = scmp.lt.s32.totalorder %s729_s28, %s729_s28 }
  0xe2   : > { %p3644_p0 = scmp.lt.s32.totalorder %s3642_s5, %s3635_s20 }
  0xe3   : > { %p3638_p13 = pnand %p3636_p10, %p4814_p1 }
  0xe4   : > { %p3645_p2 = por %p3644_p0, %p3643_p4 }
  0xe5   : > { %p3639_p3 = pneg %p3638_p13 }
  0xe7   : > { %p3646_p11 = pnand %p3645_p2, %p3639_p3 }
  0xe9   : > { %3649 = shalt.err (!%p3646_p11)
}
  0xea   : > { %3147 = dma.hbm_to_vmem [thread:$0]  (!%p4815_p12), %s4731_s15, 16, %s729_s28, [#allocation24]  }
  0xeb   : > { %s3661_s21 = scalar_lea.vmem %s751_s14, 16  ;;  %s3668_s12 = scalar_lea.vmem %s751_s14, 32 }
  0xec   : > { %p3662_p5 = scmp.ne.s32.totalorder %s751_s14, %s3661_s21  ;;  %p3669_p6 = scmp.lt.s32.totalorder %s751_s14, %s751_s14 }
  0xed   : > { %p3670_p7 = scmp.lt.s32.totalorder %s3668_s12, %s3661_s21 }
  0xee   : > { %p3664_p8 = pnand %p3662_p5, %p4814_p1 }
  0xef   : > { %p3671_p10 = por %p3670_p7, %p3669_p6 }
  0xf0   : > { %p3665_p9 = pneg %p3664_p8 }
  0xf2   : > { %p3672_p13 = pnand %p3671_p10, %p3665_p9 }
  0xf4   : > { %3675 = shalt.err (!%p3672_p13)
}
  0xf5   : > { %3153 = dma.hbm_to_vmem [thread:$0]  (!%p4815_p12), %s4733_s17, 16, %s751_s14, [#allocation27]  }
  0xf6   : > { %s4820_s28 = sld [smem:[#allocation50_spill]]  ;;  %s777_s20 = scalar_lea.vmem [#allocation2], %s4190_s22 }
  0xf7   : > { %s784_s5 = sshll.u32 %s777_s20, 4  ;;  %s774_s7 = scalar_lea.sflag [#allocation3], %s4183_s29  ;;  %s785_s5 = int_to_ptr.vmem [resolvable:$true] %s784_s5 }
  0xf8   : > { %p4821_p3 = scmp.ne.s32.totalorder %s4813_s24, 0 }
  0xfc   : > { %s4283_s10 = scalar_lea.hbm %s4820_s28, %s4193_s23  ;;  %s3681_s14 = scalar_lea.hbm %s4820_s28, 256 }
  0xfd   : > { %s3676_s9 = scalar_lea.hbm %s4283_s10, 128  ;;  %p3682_p12 = scmp.lt.s32.totalorder %s4283_s10, %s4820_s28 }
  0xfe   : > { %p3677_p1 = scmp.ne.s32.totalorder %s4283_s10, %s3676_s9  ;;  %p3683_p2 = scmp.lt.s32.totalorder %s3681_s14, %s3676_s9 }
 0x100   : > { %p3679_p4 = pnand %p3677_p1, %p4821_p3  ;;  %p3684_p11 = por %p3683_p2, %p3682_p12 }
 0x102   : > { %p3680_p0 = pneg %p3679_p4 }
 0x104   : > { %p3685_p5 = pnand %p3684_p11, %p3680_p0 }
 0x106   : > { %3688 = shalt.err (!%p3685_p5)
}
 0x107   : > { %s3689_s19 = scalar_lea.vmem %s785_s5, 128  ;;  %s3908_s4 = smov [#allocation2]  }
 0x108   : > { %p3690_p8 = scmp.ne.s32.totalorder %s785_s5, %s3689_s19  ;;  %s3694_s3 = sshll.u32 %s3908_s4, 4  ;;  %s3695_s3 = int_to_ptr.vmem [resolvable:$false] %s3694_s3 }
 0x109   : > { %s3696_s20 = scalar_lea.vmem %s3695_s3, 256  ;;  %p3697_p7 = scmp.lt.s32.totalorder %s785_s5, %s3695_s3 }
 0x10a   : > { %p3692_p9 = pnand %p3690_p8, %p4821_p3  ;;  %p3698_p10 = scmp.lt.s32.totalorder %s3696_s20, %s3689_s19 }
 0x10c   : > { %p3693_p6 = pneg %p3692_p9  ;;  %p3699_p13 = por %p3698_p10, %p3697_p7 }
 0x10e   : > { %p3700_p1 = pnand %p3699_p13, %p3693_p6 }
 0x110   : > { %3703 = shalt.err (!%p3700_p1)
}
 0x111   : > { %p4822_p4 = scmp.ne.s32.totalorder %s4811_s27, 0  ;;  %s4823_s21 = sld [smem:[#allocation52_spill]] }
 0x112   : > { %s813_s12 = scalar_lea.vmem [#allocation7], %s4190_s22 }
 0x113   : > { %3157 = dma.hbm_to_vmem [thread:$0]  (!%p4822_p4), %s4283_s10, 128, %s785_s5, %s774_s7  }
 0x114   : > { %s820_s1 = sshll.u32 %s813_s12, 4  ;;  %s821_s1 = int_to_ptr.vmem [resolvable:$true] %s820_s1 }
 0x117   : > { %s818_s14 = scalar_lea.hbm %s4823_s21, %s4193_s23  ;;  %s3709_s20 = scalar_lea.hbm %s4823_s21, 256 }
 0x118   : > { %s3704_s4 = scalar_lea.hbm %s818_s14, 128  ;;  %p3710_p11 = scmp.lt.s32.totalorder %s818_s14, %s4823_s21 }
 0x119   : > { %p3705_p0 = scmp.ne.s32.totalorder %s818_s14, %s3704_s4  ;;  %p3711_p5 = scmp.lt.s32.totalorder %s3709_s20, %s3704_s4 }
 0x11b   : > { %p3707_p12 = pnand %p3705_p0, %p4821_p3  ;;  %p3712_p8 = por %p3711_p5, %p3710_p11 }
 0x11d   : > { %p3708_p2 = pneg %p3707_p12 }
 0x11f   : > { %p3713_p9 = pnand %p3712_p8, %p3708_p2 }
 0x121   : > { %3716 = shalt.err (!%p3713_p9)
}
 0x122   : > { %s3717_s22 = scalar_lea.vmem %s821_s1, 128  ;;  %s3909_s23 = smov [#allocation7]  }
 0x123   : > { %p3718_p6 = scmp.ne.s32.totalorder %s821_s1, %s3717_s22  ;;  %s3722_s10 = sshll.u32 %s3909_s23, 4  ;;  %s3723_s10 = int_to_ptr.vmem [resolvable:$false] %s3722_s10 }
 0x124   : > { %s3724_s5 = scalar_lea.vmem %s3723_s10, 256  ;;  %p3725_p13 = scmp.lt.s32.totalorder %s821_s1, %s3723_s10 }
 0x125   : > { %p3720_p7 = pnand %p3718_p6, %p4821_p3  ;;  %p3726_p1 = scmp.lt.s32.totalorder %s3724_s5, %s3717_s22 }
 0x127   : > { %p3721_p10 = pneg %p3720_p7  ;;  %p3727_p0 = por %p3726_p1, %p3725_p13 }
 0x129   : > { %p3728_p12 = pnand %p3727_p0, %p3721_p10 }
 0x12b   : > { %3731 = shalt.err (!%p3728_p12)
}
 0x12c   : > { %3163 = dma.hbm_to_vmem [thread:$0]  (!%p4822_p4), %s818_s14, 128, %s821_s1, %s4209_s16  }
 0x12d   : > { %s2781_s8 = sshll.u32 %s3890_s25, 4  ;;  %s830_s6 = scalar_lea.vmem [#allocation8], %s4183_s29 }
 0x12e   : > { %s837_s7 = sshll.u32 %s830_s6, 4  ;;  %s4824_s12 = sld [smem:[#allocation53_spill]]  ;;  %s838_s7 = int_to_ptr.vmem [resolvable:$true] %s837_s7 }
 0x12f   : > { %s4825_s19 = sand.u32 1, %s3890_s25  }
 0x130   : > { %s828_s3 = scalar_lea.sflag [#allocation9], %s4825_s19 }
 0x134   : > { %s835_s4 = scalar_lea.hbm %s4824_s12, %s2781_s8  ;;  %s3737_s10 = scalar_lea.hbm %s4824_s12, 32 }
 0x135   : > { %s3732_s20 = scalar_lea.hbm %s835_s4, 16  ;;  %p3738_p8 = scmp.lt.s32.totalorder %s835_s4, %s4824_s12 }
 0x136   : > { %p3733_p2 = scmp.ne.s32.totalorder %s835_s4, %s3732_s20  ;;  %p3739_p9 = scmp.lt.s32.totalorder %s3737_s10, %s3732_s20 }
 0x138   : > { %p3735_p11 = pnand %p3733_p2, %p4821_p3  ;;  %p3740_p6 = por %p3739_p9, %p3738_p8 }
 0x13a   : > { %p3736_p5 = pneg %p3735_p11 }
 0x13c   : > { %p3741_p7 = pnand %p3740_p6, %p3736_p5 }
 0x13e   : > { %3744 = shalt.err (!%p3741_p7)
}
 0x13f   : > { %s3745_s29 = scalar_lea.vmem %s838_s7, 16  ;;  %s3910_s1 = smov [#allocation8]  }
 0x140   : > { %p3746_p10 = scmp.ne.s32.totalorder %s838_s7, %s3745_s29  ;;  %s3750_s5 = sshll.u32 %s3910_s1, 4  ;;  %s3751_s5 = int_to_ptr.vmem [resolvable:$false] %s3750_s5 }
 0x141   : > { %s3752_s8 = scalar_lea.vmem %s3751_s5, 32  ;;  %p3753_p0 = scmp.lt.s32.totalorder %s838_s7, %s3751_s5 }
 0x142   : > { %p3748_p13 = pnand %p3746_p10, %p4821_p3  ;;  %p3754_p12 = scmp.lt.s32.totalorder %s3752_s8, %s3745_s29 }
 0x144   : > { %p3749_p1 = pneg %p3748_p13  ;;  %p3755_p2 = por %p3754_p12, %p3753_p0 }
 0x146   : > { %p3756_p11 = pnand %p3755_p2, %p3749_p1 }
 0x148   : > { %3759 = shalt.err (!%p3756_p11)
}
 0x149   : > { %3166 = dma.hbm_to_vmem [thread:$0]  (!%p4822_p4), %s835_s4, 16, %s838_s7, %s828_s3  }
 0x14a   : > { %p4826_p5 = scmp.ne.s32.totalorder %s4793_s2, 0 }
 0x14b   : > { %s4343_s24 = sand.u32 (!%p4826_p5), 1, %s3882_s30   ;;  %p4827_p3 = scmp.ne.s32.totalorder (!%p4826_p5), %s4806_s0, 0 }
 0x14c   : > { %846 = sbr.rel (%p4826_p5) target bundleno = 4311 (0x10d7), region = 108  ;;  %s4346_s6 = sshll.u32 (!%p4826_p5), %s4343_s24, 3 }
 0x14d   : > { %s849_s9 = scalar_lea.sflag (!%p4826_p5), [#allocation3], %s4343_s24  ;;  %s852_s18 = scalar_lea.vmem (!%p4826_p5), [#allocation2], %s4346_s6 }
 0x151   : > { %3829 = dma.done.wait (%p4827_p3), %s849_s9, 128  }
 0x152   : > { %3831 = vsyncadd (%p4827_p3), %s849_s9, 4294967168  ;;  %s857_s2 = sand.u32 1, %s4065_s26   ;;  %s861_s7 = scalar_lea.vmem [#allocation5], %s4346_s6 }
 0x153   : > { %s858_s27 = scalar_lea.sflag [#allocation6], %s857_s2 }
 0x154   : > { %3833 = dma.done.wait (%p4827_p3), %s858_s27, 256  }
 0x155   : > { %3835 = vsyncadd (%p4827_p3), %s858_s27, 4294967040  ;;  %s870_s4 = scalar_lea.vmem [#allocation7], %s4346_s6  ;;  %s876_s19 = scalar_lea.sflag [#allocation9], %s857_s2 }
 0x156   : > { %s878_s3 = scalar_lea.vmem [#allocation8], %s4343_s24 }
 0x157   : > { %3837 = dma.done.wait (%p4827_p3), %s876_s19, 16  }
 0x158   : > { %3839 = vsyncadd (%p4827_p3), %s876_s19, 4294967280  ;;  %p4828_p4 = scmp.eq.s32.totalorder %s4065_s26, 0 }
 0x15a   : > { %3841 = dma.done.wait (%p4828_p4), [#allocation9], 256   ;;  %p4829_p8 = pmov %p4828_p4 }
 0x15b   : > { %p4830_p9 = pmov %p4828_p4 }
 0x15c   : > { %3843 = vsyncadd (%p4829_p8), [#allocation9], 4294967040 }
 0x15d   : > { %3845 = dma.done.wait (%p4830_p9), [#allocation12], 272   ;;  %p4831_p6 = pmov %p4828_p4 }
 0x15e   : > { %p4832_p7 = pmov %p4828_p4 }
 0x15f   : > { %3847 = vsyncadd (%p4831_p6), [#allocation12], 4294967024 }
 0x160   : > { %3849 = dma.done.wait (%p4832_p7), [#allocation15], 32   ;;  %p4833_p10 = pmov %p4828_p4 }
 0x161   : > { %p4834_p13 = pmov %p4828_p4 }
 0x162   : > { %3851 = vsyncadd (%p4833_p10), [#allocation15], 4294967264 }
 0x163   : > { %3853 = dma.done.wait (%p4834_p13), [#allocation18], 32   ;;  %p4835_p1 = pmov %p4828_p4 }
 0x165   : > { %3855 = vsyncadd (%p4835_p1), [#allocation18], 4294967264  ;;  %p4836_p0 = pmov %p4835_p1 }
 0x167   : > { %3857 = dma.done.wait (%p4836_p0), [#allocation21], 272   ;;  %p4837_p12 = pmov %p4836_p0 }
 0x168   : > { %p4838_p2 = pmov %p4836_p0 }
 0x169   : > { %3859 = vsyncadd (%p4837_p12), [#allocation21], 4294967024 }
 0x16a   : > { %3861 = dma.done.wait (%p4838_p2), [#allocation24], 272   ;;  %p4839_p11 = pmov %p4836_p0 }
 0x16b   : > { %p4840_p5 = pmov %p4836_p0 }
 0x16c   : > { %3863 = vsyncadd (%p4839_p11), [#allocation24], 4294967024 }
 0x16d   : > { %3865 = dma.done.wait (%p4840_p5), [#allocation27], 32   ;;  %p4841_p3 = pmov %p4836_p0 }
 0x16e   : > { %v3911_v0 = vmov 0.0   ;;  %vm3912_vm0 = vmmov 0   ;;  %v3260_v1 = vld [vmem:[#allocation10 + $0x8] sm:$0xff]   ;;  %v3261_v2 = vld [vmem:[#allocation10] sm:$0xff]   ;;  %vm1041_vm1 = vcmask 261120   ;;  %s3913_s0 = smov 104  }
 0x16f   : > { %3867 = vsyncadd (%p4841_p3), [#allocation27], 4294967264  ;;  %2906 = vmatprep.subr.bf16.mxu0 %v3911_v0  ;;  %2910 = vmatprep.mubr.msk.bf16.mxu0 %vm3912_vm0, %v3911_v0  ;;  %v4402_v3 = vld [vmem:[%s852_s18] sm:$0xff]  ;;  %s3914_s20 = smov 120   ;;  %s3915_s22 = smov 96   ;;  %vm1095_vm2 = vcmask 64512  }
 0x170   : > { %2914 = vmatprep.subr.bf16.mxu1 %v3911_v0  ;;  %2916 = vmatprep.mubr.msk.bf16.mxu1 %vm3912_vm0, %v3911_v0  ;;  %v1017_v4 = vpack.c.bf16 %v4402_v3, %v4402_v3  ;;  %v2801_v5 = vld [vmem:[#allocation11] ss:$0 sm:$0xff]  ;;  %s3916_s23 = smov 112   ;;  %s3917_s10 = smov 64   ;;  %vm1339_vm3 = vcmask 1043456   ;;  %vm1540_vm4 = vcmask 130048  }
 0x171   : > { %2907 = vmatpush3.bf16.msra.mxu0 %v3260_v1  ;;  %v1015_v23 = vld [vmem:[%s870_s4] sm:$0xff]  ;;  %s3918_s16 = smov 8   ;;  %s3919_s14 = smov 16   ;;  %vm1542_vm5 = vcmask 195584  }
 0x172   : > { %2908 = vmatprep.subr.bf16.mxu0 %v3911_v0  ;;  %s3920_s29 = smov 24   ;;  %s4842_s8 = sld [smem:[#allocation60_spill]] }
 0x173   : > { %s2800_s2 = sshll.u32 %s4343_s24, 5  ;;  %s4843_s19 = sld [smem:[#allocation64_spill]] }
 0x174   : > { %s4588_s27 = scalar_lea.vmem [#allocation30], %s2800_s2  ;;  %s4846_s9 = sld [smem:[#allocation69_spill]] }
 0x175   : > { %2909 = vmatpush3.bf16.msra.mxu0 %v3261_v2  ;;  %s2442_s2 = scalar_lea.sflag [#allocation31], %s4343_s24  ;;  %s3921_s4 = smov [#allocation30]  }
 0x176   : > { %2920 = vmatprep.subr.bf16.mxu0 %v3911_v0 }
 0x178   : > { %2911 = vmatmul.mubr.msk.bf16.vlgmr.msra.gmra.mxu0 %vm1041_vm1, %v1017_v4 }
 0x179   : > { %2922 = vmatprep.mubr.msk.bf16.mxu0 %vm3912_vm0, %v3911_v0 }
 0x238   : > { %v1079_v6 = vpop.f32.mrf.mxu0 }
 0x239   : > { %v1080_v7 = vadd.f32 %v2801_v5, %v1079_v6 }
 0x23a   : > { %v2912_v8 = vpop.f32.mrf.mxu0 }
 0x23b   : > { %v4411_v9 = vpack.c.bf16 %v1080_v7, %v1080_v7 }
 0x23c   : > { %v1082_v10 = vpop.f32.mrf.mxu0 }
 0x23d   : > { %1091 = vrot.lane.b32.xlu1 %v4411_v9, %s3913_s0  ;;  %1087 = vrot.lane.b32.xlu0 %v4411_v9, %s3914_s20 }
 0x23e   : > { %v2913_v11 = vpop.f32.mrf.mxu0 }
 0x241   : > { %1093 = vrot.lane.b32.xlu1 %v4411_v9, %s3915_s22  ;;  %1089 = vrot.lane.b32.xlu0 %v4411_v9, %s3916_s23 }
 0x2af   : > { %v4421_v12 = vpop.permute.xlu1 %1091  ;;  %v1088_v13 = vpop.permute.xlu0 %1087 }
 0x2b0   : > { %1142 = vrot.lane.b32.xlu0 %v1088_v13, %s3915_s22 }
 0x2b3   : > { %v1094_v14 = vpop.permute.xlu1 %1093  ;;  %v4424_v15 = vpop.permute.xlu0 %1089 }
 0x2b4   : > { %1238 = vrot.lane.b32.xlu0 %v4421_v12, %s3915_s22  ;;  %1190 = vrot.lane.b32.xlu1 %v4424_v15, %s3915_s22  ;;  %v1100_v16 = vsel %vm1095_vm2, %v1094_v14, 0 }
 0x2b5   : > { %2915 = vmatpush3.bf16.xpose.msra.mxu1 %v1100_v16 }
 0x2b6   : > { %2926 = vmatprep.subr.bf16.mxu1 %v3911_v0 }
 0x2bc   : > { %2917 = vmatmul.mubr.msk.bf16.vlgmr.msra.gmra.mxu1 %vm1095_vm2, %v4411_v9 }
 0x2bd   : > { %2928 = vmatprep.mubr.msk.bf16.mxu1 %vm3912_vm0, %v3911_v0 }
 0x322   : > { %v1143_v17 = vpop.permute.xlu0 %1142 }
 0x323   : > { %v1148_v18 = vsel %vm1095_vm2, %v1143_v17, 0 }
 0x324   : > { %2921 = vmatpush3.bf16.xpose.msra.mxu0 %v1148_v18 }
 0x325   : > { %2932 = vmatprep.subr.bf16.mxu0 %v3911_v0 }
 0x326   : > { %v1191_v19 = vpop.permute.xlu1 %1190  ;;  %v1239_v21 = vpop.permute.xlu0 %1238 }
 0x327   : > { %v1196_v20 = vsel %vm1095_vm2, %v1191_v19, 0  ;;  %v1244_v22 = vsel %vm1095_vm2, %v1239_v21, 0 }
 0x328   : > { %2927 = vmatpush3.bf16.xpose.msra.mxu1 %v1196_v20 }
 0x329   : > { %2938 = vmatprep.subr.bf16.mxu1 %v3911_v0 }
 0x32b   : > { %2923 = vmatmul.mubr.msk.bf16.vlgmr.msra.gmra.mxu0 %vm1095_vm2, %v1088_v13 }
 0x32c   : > { %2933 = vmatpush3.bf16.xpose.msra.mxu0 %v1244_v22  ;;  %2934 = vmatprep.mubr.msk.bf16.mxu0 %vm3912_vm0, %v3911_v0 }
 0x32d   : > { %2944 = vmatprep.subr.bf16.mxu0 %v3911_v0 }
 0x32f   : > { %2929 = vmatmul.mubr.msk.bf16.vlgmr.msra.gmra.mxu1 %vm1095_vm2, %v4424_v15 }
 0x330   : > { %2940 = vmatprep.mubr.msk.bf16.mxu1 %vm3912_vm0, %v3911_v0 }
 0x333   : > { %2935 = vmatmul.mubr.msk.bf16.vlgmr.msra.gmra.mxu0 %vm1095_vm2, %v4421_v12 }
 0x334   : > { %2946 = vmatprep.mubr.msk.bf16.mxu0 %vm3912_vm0, %v3911_v0 }
 0x37c   : > { %v1136_v24 = vpop.f32.mrf.mxu1 }
 0x37d   : > { %v1137_v25 = vadd.f32 %v1136_v24, %v1015_v23 }
 0x37e   : > { %v2918_v26 = vpop.f32.mrf.mxu1 }
 0x37f   : > { %v1286_v27 = vsel %vm1095_vm2, %v1137_v25, -inf }
 0x380   : > { %v1139_v28 = vpop.f32.mrf.mxu1  ;;  %1287 = vmax.xlane.f32.xlu1 %v1286_v27 }
 0x382   : > { %v2919_v29 = vpop.f32.mrf.mxu1 }
 0x3eb   : > { %v1184_v30 = vpop.f32.mrf.mxu0 }
 0x3ec   : > { %v1185_v31 = vadd.f32 %v1184_v30, %v1015_v23 }
 0x3ed   : > { %v2924_v32 = vpop.f32.mrf.mxu0 }
 0x3ee   : > { %v1289_v33 = vsel %vm1095_vm2, %v1185_v31, -inf }
 0x3ef   : > { %v1232_v34 = vpop.f32.mrf.mxu1  ;;  %1290 = vmax.xlane.f32.xlu0 %v1289_v33  ;;  %v1187_v35 = vpop.f32.mrf.mxu0 }
 0x3f0   : > { %v1233_v36 = vadd.f32 %v1232_v34, %v1015_v23  ;;  %v3262_v34 = vld [vmem:[#allocation13 + $0x8] sm:$0xff]   ;;  %v3263_v35 = vld [vmem:[#allocation13] sm:$0xff]  }
 0x3f1   : > { %v2925_v37 = vpop.f32.mrf.mxu0  ;;  %v2930_v38 = vpop.f32.mrf.mxu1 }
 0x3f2   : > { %v1292_v39 = vsel %vm1095_vm2, %v1233_v36, -inf }
 0x3f3   : > { %v1235_v40 = vpop.f32.mrf.mxu1  ;;  %1293 = vmax.xlane.f32.xlu0 %v1292_v39  ;;  %v1280_v41 = vpop.f32.mrf.mxu0 }
 0x3f4   : > { %v1281_v42 = vadd.f32 %v1280_v41, %v1015_v23 }
 0x3f5   : > { %v2931_v43 = vpop.f32.mrf.mxu1  ;;  %v2936_v44 = vpop.f32.mrf.mxu0 }
 0x3f6   : > { %v1295_v45 = vsel %vm1095_vm2, %v1281_v42, -inf }
 0x3f7   : > { %1296 = vmax.xlane.f32.xlu1 %v1295_v45  ;;  %v1283_v46 = vpop.f32.mrf.mxu0 }
 0x3f9   : > { %v2937_v47 = vpop.f32.mrf.mxu0 }
 0x408   : > { %1383 = vrot.lane.b32.xlu1 %v1088_v13, %s3917_s10 }
 0x409   : > { %1334 = vrot.lane.b32.xlu0 %v4411_v9, %s3917_s10  ;;  %v1288_v48 = vpop.xlane.xlu1 %1287 }
 0x40a   : > { %v1298_v49 = vsub.f32 %v1137_v25, %v1288_v48 }
 0x40c   : > { %v1302_v50 = vmul.f32 1.442695, %v1298_v49 }
 0x40e   : > { %3272 = vpow2.f32 %v1302_v50 }
 0x41b   : > { %v3273_v51 = vpop.eup %3272 }
 0x41c   : > { %v1310_v52 = vsel %vm1095_vm2, %v3273_v51, 0.0 }
 0x428   : > { %1311 = vadd.xlane.f32.xlu0 %v1310_v52 }
 0x478   : > { %v1291_v53 = vpop.xlane.xlu0 %1290 }
 0x479   : > { %v1299_v54 = vsub.f32 %v1185_v31, %v1291_v53 }
 0x47b   : > { %v1304_v55 = vmul.f32 1.442695, %v1299_v54 }
 0x47c   : > { %v1294_v56 = vpop.xlane.xlu0 %1293 }
 0x47d   : > { %3274 = vpow2.f32 %v1304_v55  ;;  %v1300_v57 = vsub.f32 %v1233_v36, %v1294_v56  ;;  %v2813_v55 = vld [vmem:[#allocation14] ss:$0 sm:$0xff] }
 0x47f   : > { %v1306_v58 = vmul.f32 1.442695, %v1300_v57 }
 0x480   : > { %v1335_v59 = vpop.permute.xlu0 %1334  ;;  %v1297_v60 = vpop.xlane.xlu1 %1296 }
 0x481   : > { %3276 = vpow2.f32 %v1306_v58  ;;  %v1341_v61 = vsel %vm1339_vm3, %v1335_v59, 0  ;;  %v1301_v62 = vsub.f32 %v1281_v42, %v1297_v60 }
 0x482   : > { %2939 = vmatpush3.bf16.msra.mxu1 %v1341_v61 }
 0x483   : > { %v1308_v63 = vmul.f32 1.442695, %v1301_v62  ;;  %2950 = vmatprep.subr.bf16.mxu1 %v3911_v0 }
 0x484   : > { %v1384_v1 = vpop.permute.xlu1 %1383 }
 0x485   : > { %3278 = vpow2.f32 %v1308_v63  ;;  %v1389_v2 = vsel %vm1339_vm3, %v1384_v1, 0 }
 0x486   : > { %2945 = vmatpush3.bf16.msra.mxu0 %v1389_v2 }
 0x487   : > { %2956 = vmatprep.subr.bf16.mxu0 %v3911_v0 }
 0x48a   : > { %v3275_v4 = vpop.eup %3274 }
 0x48b   : > { %v1313_v5 = vsel %vm1095_vm2, %v3275_v4, 0.0 }
 0x48c   : > { %1314 = vadd.xlane.f32.xlu1 %v1313_v5 }
 0x48e   : > { %v3277_v6 = vpop.eup %3276 }
 0x48f   : > { %v1316_v7 = vsel %vm1095_vm2, %v3277_v6, 0.0 }
 0x490   : > { %1317 = vadd.xlane.f32.xlu0 %v1316_v7  ;;  %v3265_v7 = vld [vmem:[#allocation20] sm:$0xff]  }
 0x492   : > { %v3279_v8 = vpop.eup %3278 }
 0x493   : > { %v1319_v9 = vsel %vm1095_vm2, %v3279_v8, 0.0 }
 0x494   : > { %1320 = vadd.xlane.f32.xlu1 %v1319_v9  ;;  %v3266_v9 = vld [vmem:[%s4842_s8 + $0x8] sm:$0xff]  }
 0x4a5   : > { %1431 = vrot.lane.b32.xlu1 %v4424_v15, %s3917_s10 }
 0x4a6   : > { %1479 = vrot.lane.b32.xlu0 %v4421_v12, %s3917_s10  ;;  %s4845_s10 = sld [smem:[#allocation48_spill]] }
 0x4ac   : > { %p4847_p8 = scmp.ne.s32.totalorder %s4845_s10, 0 }
 0x4b1   : > { %v1312_v10 = vpop.xlane.xlu0 %1311 }
 0x4b2   : > { %3280 = vrcp.f32 %v1312_v10  ;;  %v3267_v10 = vld [vmem:[%s4842_s8] sm:$0xff]  }
 0x4bf   : > { %v3281_v11 = vpop.eup %3280 }
 0x4c0   : > { %v1326_v13 = vmul.f32 %v3281_v11, %v3273_v51 }
 0x4c2   : > { %v1330_v14 = vpack.c.bf16 %v1326_v13, %v1326_v13 }
 0x4c4   : > { %2941 = vmatmul.mubr.msk.bf16.vlgmr.msra.gmra.mxu1 %vm1095_vm2, %v1330_v14 }
 0x4c5   : > { %2952 = vmatprep.mubr.msk.bf16.mxu1 %vm3912_vm0, %v3911_v0 }
 0x515   : > { %v1315_v16 = vpop.xlane.xlu1 %1314 }
 0x516   : > { %3282 = vrcp.f32 %v1315_v16 }
 0x519   : > { %v1318_v17 = vpop.xlane.xlu0 %1317 }
 0x51a   : > { %3284 = vrcp.f32 %v1318_v17  ;;  %v2817_v17 = vld [vmem:[#allocation16] ss:$0 sm:$0xff] }
 0x51d   : > { %v1321_v18 = vpop.xlane.xlu1 %1320  ;;  %v1480_v21 = vpop.permute.xlu0 %1479 }
 0x51e   : > { %3286 = vrcp.f32 %v1321_v18  ;;  %v1485_v24 = vsel %vm1339_vm3, %v1480_v21, 0  ;;  %v2823_v21 = vld [vmem:[#allocation22] ss:$0 sm:$0xff] }
 0x521   : > { %v1432_v15 = vpop.permute.xlu1 %1431 }
 0x522   : > { %v1437_v19 = vsel %vm1339_vm3, %v1432_v15, 0  ;;  %v2818_v15 = vld [vmem:[#allocation17] ss:$0 sm:$0xff] }
 0x523   : > { %v3283_v12 = vpop.eup %3282  ;;  %2951 = vmatpush3.bf16.msra.mxu1 %v1437_v19 }
 0x524   : > { %v1327_v20 = vmul.f32 %v3283_v12, %v3275_v4  ;;  %2962 = vmatprep.subr.bf16.mxu1 %v3911_v0 }
 0x526   : > { %v1331_v22 = vpack.c.bf16 %v1327_v20, %v1327_v20 }
 0x527   : > { %v3285_v23 = vpop.eup %3284 }
 0x528   : > { %2947 = vmatmul.mubr.msk.bf16.vlgmr.msra.gmra.mxu0 %vm1095_vm2, %v1331_v22  ;;  %v1328_v25 = vmul.f32 %v3285_v23, %v3277_v6  ;;  %v3264_v6 = vld [vmem:[#allocation20 + $0x8] sm:$0xff]  }
 0x529   : > { %2957 = vmatpush3.bf16.msra.mxu0 %v1485_v24  ;;  %2958 = vmatprep.mubr.msk.bf16.mxu0 %vm3912_vm0, %v3911_v0 }
 0x52a   : > { %v1332_v26 = vpack.c.bf16 %v1328_v25, %v1328_v25  ;;  %2970 = vmatprep.subr.bf16.mxu0 %v3911_v0 }
 0x52b   : > { %v3287_v27 = vpop.eup %3286 }
 0x52c   : > { %2953 = vmatmul.mubr.msk.bf16.vlgmr.msra.gmra.mxu1 %vm1095_vm2, %v1332_v26  ;;  %v1329_v28 = vmul.f32 %v3287_v27, %v3279_v8 }
 0x52d   : > { %2966 = vmatprep.mubr.msk.bf16.mxu1 %vm3912_vm0, %v3911_v0  ;;  %2963 = vmatpush3.bf16.msra.mxu1 %v3262_v34 }
 0x52e   : > { %v1333_v29 = vpack.c.bf16 %v1329_v28, %v1329_v28  ;;  %2964 = vmatprep.subr.bf16.mxu1 %v3911_v0 }
 0x530   : > { %2959 = vmatmul.mubr.msk.bf16.vlgmr.msra.gmra.mxu0 %vm1095_vm2, %v1333_v29 }
 0x531   : > { %2974 = vmatprep.mubr.msk.bf16.mxu0 %vm3912_vm0, %v3911_v0  ;;  %2965 = vmatpush3.bf16.msra.mxu1 %v3263_v35 }
 0x532   : > { %2978 = vmatprep.subr.bf16.mxu1 %v3911_v0  ;;  %2971 = vmatpush3.bf16.msra.mxu0 %v3266_v9 }
 0x533   : > { %2972 = vmatprep.subr.bf16.mxu0 %v3911_v0 }
 0x536   : > { %2973 = vmatpush3.bf16.msra.mxu0 %v3267_v10 }
 0x537   : > { %2986 = vmatprep.subr.bf16.mxu0 %v3911_v0 }
 0x584   : > { %v1377_v30 = vpop.f32.mrf.mxu1 }
 0x586   : > { %v2942_v31 = vpop.f32.mrf.mxu1 }
 0x587   : > { %v2819_v31 = vld [vmem:[#allocation19] ss:$0 sm:$0xff] }
 0x588   : > { %v1380_v32 = vpop.f32.mrf.mxu1 }
 0x58a   : > { %v2943_v33 = vpop.f32.mrf.mxu1 }
 0x5e8   : > { %v1425_v36 = vpop.f32.mrf.mxu0 }
 0x5e9   : > { %1528 = vrot.lane.b32.xlu1 %v1425_v36, %s3918_s16 }
 0x5ea   : > { %v2948_v37 = vpop.f32.mrf.mxu0 }
 0x5ec   : > { %v1428_v38 = vpop.f32.mrf.mxu0  ;;  %v1473_v39 = vpop.f32.mrf.mxu1 }
 0x5ed   : > { %1532 = vrot.lane.b32.xlu0 %v1473_v39, %s3919_s14 }
 0x5ee   : > { %v2949_v40 = vpop.f32.mrf.mxu0  ;;  %v2954_v41 = vpop.f32.mrf.mxu1 }
 0x5f0   : > { %v1476_v42 = vpop.f32.mrf.mxu1  ;;  %v1521_v43 = vpop.f32.mrf.mxu0 }
 0x5f1   : > { %1536 = vrot.lane.b32.xlu1 %v1521_v43, %s3920_s29 }
 0x5f2   : > { %v2955_v44 = vpop.f32.mrf.mxu1  ;;  %v2960_v45 = vpop.f32.mrf.mxu0 }
 0x5f3   : > { %v2827_v45 = vld [vmem:[%s878_s3] ss:$0 sm:$0xff]  ;;  %s3764_s3 = sshll.u32 %s3921_s4, 4  ;;  %s3765_s3 = int_to_ptr.vmem [resolvable:$false] %s3764_s3 }
 0x5f4   : > { %v1524_v46 = vpop.f32.mrf.mxu0 }
 0x5f6   : > { %v2961_v47 = vpop.f32.mrf.mxu0 }
 0x65b   : > { %v1529_v48 = vpop.permute.xlu1 %1528 }
 0x65c   : > { %v1539_v50 = vsel %vm1095_vm2, %v1377_v30, %v1529_v48 }
 0x65f   : > { %v1533_v49 = vpop.permute.xlu0 %1532 }
 0x660   : > { %v1541_v51 = vsel %vm1540_vm4, %v1539_v50, %v1533_v49 }
 0x663   : > { %v1537_v52 = vpop.permute.xlu1 %1536 }
 0x664   : > { %v1543_v53 = vsel %vm1542_vm5, %v1541_v51, %v1537_v52 }
 0x665   : > { %v1544_v54 = vpack.c.bf16 %v1543_v53, %v1543_v53 }
 0x667   : > { %2967 = vmatmul.mubr.msk.bf16.vlgmr.msra.gmra.mxu1 %vm1041_vm1, %v1544_v54 }
 0x668   : > { %2982 = vmatprep.mubr.msk.bf16.mxu1 %vm3912_vm0, %v3911_v0  ;;  %2979 = vmatpush3.bf16.msra.mxu1 %v3264_v6 }
 0x669   : > { %2980 = vmatprep.subr.bf16.mxu1 %v3911_v0 }
 0x66c   : > { %2981 = vmatpush3.bf16.msra.mxu1 %v3265_v7 }
 0x66d   : > { %2992 = vmatprep.subr.bf16.mxu1 %v3911_v0 }
 0x727   : > { %v1605_v56 = vpop.f32.mrf.mxu1 }
 0x728   : > { %v1606_v57 = vadd.f32 %v2813_v55, %v1605_v56 }
 0x729   : > { %v2968_v58 = vpop.f32.mrf.mxu1 }
 0x72a   : > { %v1611_v59 = vadd.f32 %v1606_v57, %v4402_v3  ;;  %v1014_v3 = vld [vmem:[%s861_s7] sm:$0xff] }
 0x72b   : > { %v1608_v60 = vpop.f32.mrf.mxu1  ;;  %v1709_v8 = vpack.c.bf16 %v1014_v3, %v1014_v3 }
 0x72c   : > { %v1614_v61 = vsel %vm1041_vm1, %v1611_v59, 0.0 }
 0x72d   : > { %1615 = vadd.xlane.f32.xlu0 %v1614_v61  ;;  %v2969_v62 = vpop.f32.mrf.mxu1  ;;  %2983 = vmatmul.mubr.msk.bf16.vlgmr.msra.gmra.mxu1 %vm1041_vm1, %v1709_v8 }
 0x72e   : > { %2994 = vmatprep.mubr.msk.bf16.mxu1 %vm3912_vm0, %v3911_v0 }
 0x7b6   : > { %v1616_v63 = vpop.xlane.xlu0 %1615 }
 0x7b7   : > { %v1618_v1 = vmul.f32 0.03125, %v1616_v63 }
 0x7b9   : > { %v1619_v2 = vsub.f32 %v1611_v59, %v1618_v1 }
 0x7bb   : > { %v1620_v4 = vmul.f32 %v1619_v2, %v1619_v2 }
 0x7bd   : > { %v1621_v5 = vsel %vm1041_vm1, %v1620_v4, 0.0 }
 0x7be   : > { %1622 = vadd.xlane.f32.xlu1 %v1621_v5 }
 0x7ed   : > { %v1770_v22 = vpop.f32.mrf.mxu1 }
 0x7ee   : > { %v1771_v23 = vadd.f32 %v2823_v21, %v1770_v22 }
 0x7ef   : > { %v2984_v24 = vpop.f32.mrf.mxu1 }
 0x7f0   : > { %v4526_v25 = vpack.c.bf16 %v1771_v23, %v1771_v23 }
 0x7f1   : > { %v1773_v26 = vpop.f32.mrf.mxu1 }
 0x7f2   : > { %1788 = vrot.lane.b32.xlu1 %v4526_v25, %s3916_s23  ;;  %1786 = vrot.lane.b32.xlu0 %v4526_v25, %s3914_s20  ;;  %v1802_v27 = vsel %vm1095_vm2, %v4526_v25, 0 }
 0x7f3   : > { %v2985_v28 = vpop.f32.mrf.mxu1 }
 0x7f6   : > { %1790 = vrot.lane.b32.xlu1 %v4526_v25, %s3913_s0 }
 0x847   : > { %v1623_v11 = vpop.xlane.xlu1 %1622 }
 0x848   : > { %v1624_v13 = vmul.f32 0.03125, %v1623_v11 }
 0x84a   : > { %v1625_v14 = vadd.f32 1e-05, %v1624_v13 }
 0x84c   : > { %3288 = vrsqrt.f32 %v1625_v14 }
 0x859   : > { %v3289_v16 = vpop.eup %3288 }
 0x85a   : > { %v1627_v18 = vmul.f32 %v3289_v16, %v1619_v2 }
 0x85c   : > { %v1634_v19 = vmul.f32 %v2817_v17, %v1627_v18 }
 0x85e   : > { %v4519_v12 = vadd.f32 %v2818_v15, %v1634_v19 }
 0x860   : > { %v1642_v20 = vpack.c.bf16 %v4519_v12, %v4519_v12 }
 0x862   : > { %2975 = vmatmul.mubr.msk.bf16.vlgmr.msra.gmra.mxu0 %vm1041_vm1, %v1642_v20 }
 0x863   : > { %2988 = vmatprep.mubr.msk.bf16.mxu0 %vm3912_vm0, %v3911_v0  ;;  %2987 = vmatpush3.bf16.xpose.msra.mxu0 %v1802_v27 }
 0x864   : > { %2998 = vmatprep.subr.bf16.mxu0 %v3911_v0  ;;  %v4537_v29 = vpop.permute.xlu0 %1786  ;;  %v4542_v36 = vpop.permute.xlu1 %1788 }
 0x865   : > { %v1848_v30 = vsel %vm1095_vm2, %v4537_v29, 0  ;;  %v1894_v38 = vsel %vm1095_vm2, %v4542_v36, 0 }
 0x866   : > { %2993 = vmatpush3.bf16.xpose.msra.mxu1 %v1848_v30 }
 0x867   : > { %3004 = vmatprep.subr.bf16.mxu1 %v3911_v0 }
 0x868   : > { %v4553_v40 = vpop.permute.xlu1 %1790 }
 0x869   : > { %v1940_v42 = vsel %vm1095_vm2, %v4553_v40, 0 }
 0x922   : > { %v1703_v32 = vpop.f32.mrf.mxu0 }
 0x923   : > { %v1704_v33 = vadd.f32 %v2819_v31, %v1703_v32 }
 0x924   : > { %v2976_v34 = vpop.f32.mrf.mxu0 }
 0x925   : > { %v1776_v35 = vpack.c.bf16 %v1704_v33, %v1704_v33 }
 0x926   : > { %v1706_v37 = vpop.f32.mrf.mxu0 }
 0x927   : > { %1783 = vrot.lane.b32.xlu1 %v1776_v35, %s3913_s0  ;;  %1779 = vrot.lane.b32.xlu0 %v1776_v35, %s3914_s20 }
 0x928   : > { %2989 = vmatmul.mubr.msk.bf16.vlgmr.msra.gmra.mxu0 %vm1095_vm2, %v1776_v35  ;;  %v2977_v39 = vpop.f32.mrf.mxu0 }
 0x929   : > { %2999 = vmatpush3.bf16.xpose.msra.mxu0 %v1894_v38  ;;  %3000 = vmatprep.mubr.msk.bf16.mxu0 %vm3912_vm0, %v3911_v0 }
 0x92a   : > { %3010 = vmatprep.subr.bf16.mxu0 %v3911_v0 }
 0x92b   : > { %1781 = vrot.lane.b32.xlu0 %v1776_v35, %s3916_s23  ;;  %s4844_s23 = sld [smem:[#allocation65_spill]] }
 0x999   : > { %v1780_v41 = vpop.permute.xlu0 %1779  ;;  %v1784_v44 = vpop.permute.xlu1 %1783 }
 0x99a   : > { %2995 = vmatmul.mubr.msk.bf16.vlgmr.msra.gmra.mxu1 %vm1095_vm2, %v1780_v41 }
 0x99b   : > { %3005 = vmatpush3.bf16.xpose.msra.mxu1 %v1940_v42  ;;  %3006 = vmatprep.mubr.msk.bf16.mxu1 %vm3912_vm0, %v3911_v0 }
 0x99c   : > { %3016 = vmatprep.subr.bf16.mxu1 %v3911_v0 }
 0x99d   : > { %v1782_v43 = vpop.permute.xlu0 %1781 }
 0x99e   : > { %3001 = vmatmul.mubr.msk.bf16.vlgmr.msra.gmra.mxu0 %vm1095_vm2, %v1782_v43 }
 0x99f   : > { %3012 = vmatprep.mubr.msk.bf16.mxu0 %vm3912_vm0, %v3911_v0 }
 0x9a2   : > { %3007 = vmatmul.mubr.msk.bf16.vlgmr.msra.gmra.mxu1 %vm1095_vm2, %v1784_v44 }
 0x9a3   : > { %3018 = vmatprep.mubr.msk.bf16.mxu1 %vm3912_vm0, %v3911_v0 }
 0x9e8   : > { %v1838_v46 = vpop.f32.mrf.mxu0 }
 0x9e9   : > { %v1839_v47 = vadd.f32 %v2827_v45, %v1838_v46 }
 0x9ea   : > { %v2990_v48 = vpop.f32.mrf.mxu0 }
 0x9eb   : > { %v1982_v49 = vsel %vm1095_vm2, %v1839_v47, -inf }
 0x9ec   : > { %1983 = vmax.xlane.f32.xlu0 %v1982_v49  ;;  %v1841_v50 = vpop.f32.mrf.mxu0 }
 0x9ee   : > { %v2991_v51 = vpop.f32.mrf.mxu0 }
 0xa5a   : > { %v1884_v52 = vpop.f32.mrf.mxu1 }
 0xa5b   : > { %v1885_v53 = vadd.f32 %v2827_v45, %v1884_v52 }
 0xa5c   : > { %v2996_v54 = vpop.f32.mrf.mxu1 }
 0xa5d   : > { %v1985_v55 = vsel %vm1095_vm2, %v1885_v53, -inf }
 0xa5e   : > { %1986 = vmax.xlane.f32.xlu1 %v1985_v55  ;;  %v1887_v56 = vpop.f32.mrf.mxu1  ;;  %v1930_v57 = vpop.f32.mrf.mxu0 }
 0xa5f   : > { %v1931_v58 = vadd.f32 %v2827_v45, %v1930_v57  ;;  %v3268_v56 = vld [vmem:[#allocation23 + $0x8] sm:$0xff]   ;;  %v3269_v57 = vld [vmem:[#allocation23] sm:$0xff]  }
 0xa60   : > { %v2997_v59 = vpop.f32.mrf.mxu1  ;;  %v3002_v60 = vpop.f32.mrf.mxu0 }
 0xa61   : > { %v1988_v61 = vsel %vm1095_vm2, %v1931_v58, -inf }
 0xa62   : > { %v1976_v62 = vpop.f32.mrf.mxu1  ;;  %1989 = vmax.xlane.f32.xlu0 %v1988_v61  ;;  %v1933_v63 = vpop.f32.mrf.mxu0 }
 0xa63   : > { %v1977_v1 = vadd.f32 %v2827_v45, %v1976_v62 }
 0xa64   : > { %v3003_v2 = vpop.f32.mrf.mxu0  ;;  %v3008_v4 = vpop.f32.mrf.mxu1 }
 0xa65   : > { %v1991_v5 = vsel %vm1095_vm2, %v1977_v1, -inf }
 0xa66   : > { %v1979_v6 = vpop.f32.mrf.mxu1  ;;  %1992 = vmax.xlane.f32.xlu0 %v1991_v5 }
 0xa68   : > { %v3009_v7 = vpop.f32.mrf.mxu1 }
 0xa6f   : > { %2030 = vrot.lane.b32.xlu1 %v4526_v25, %s3915_s22 }
 0xa75   : > { %v1984_v3 = vpop.xlane.xlu0 %1983 }
 0xa76   : > { %v1994_v8 = vsub.f32 %v1839_v47, %v1984_v3 }
 0xa78   : > { %v1998_v9 = vmul.f32 1.442695, %v1994_v8 }
 0xa7a   : > { %3290 = vpow2.f32 %v1998_v9 }
 0xa87   : > { %v3291_v10 = vpop.eup %3290 }
 0xa88   : > { %v2006_v11 = vsel %vm1095_vm2, %v3291_v10, 0.0 }
 0xa93   : > { %2007 = vadd.xlane.f32.xlu1 %v2006_v11 }
 0xae7   : > { %v1987_v13 = vpop.xlane.xlu1 %1986 }
 0xae8   : > { %v1995_v14 = vsub.f32 %v1885_v53, %v1987_v13 }
 0xaea   : > { %v2000_v16 = vmul.f32 1.442695, %v1995_v14 }
 0xaeb   : > { %v2031_v17 = vpop.permute.xlu1 %2030  ;;  %v1990_v18 = vpop.xlane.xlu0 %1989 }
 0xaec   : > { %3292 = vpow2.f32 %v2000_v16  ;;  %v2036_v15 = vsel %vm1339_vm3, %v2031_v17, 0  ;;  %v1996_v19 = vsub.f32 %v1931_v58, %v1990_v18  ;;  %v2836_v16 = vld [vmem:[#allocation25] ss:$0 sm:$0xff] }
 0xaed   : > { %3011 = vmatpush3.bf16.msra.mxu0 %v2036_v15 }
 0xaee   : > { %v2002_v20 = vmul.f32 1.442695, %v1996_v19  ;;  %3022 = vmatprep.subr.bf16.mxu0 %v3911_v0 }
 0xaef   : > { %v1993_v21 = vpop.xlane.xlu0 %1992 }
 0xaf0   : > { %3294 = vpow2.f32 %v2002_v20  ;;  %v1997_v22 = vsub.f32 %v1977_v1, %v1993_v21 }
 0xaf2   : > { %v2004_v23 = vmul.f32 1.442695, %v1997_v22 }
 0xaf4   : > { %3296 = vpow2.f32 %v2004_v23 }
 0xaf9   : > { %v3293_v24 = vpop.eup %3292 }
 0xafa   : > { %v2009_v25 = vsel %vm1095_vm2, %v3293_v24, 0.0 }
 0xafb   : > { %2010 = vadd.xlane.f32.xlu0 %v2009_v25 }
 0xafd   : > { %v3295_v26 = vpop.eup %3294 }
 0xafe   : > { %v2012_v27 = vsel %vm1095_vm2, %v3295_v26, 0.0 }
 0xaff   : > { %2013 = vadd.xlane.f32.xlu1 %v2012_v27 }
 0xb01   : > { %v3297_v28 = vpop.eup %3296 }
 0xb02   : > { %v2015_v30 = vsel %vm1095_vm2, %v3297_v28, 0.0 }
 0xb03   : > { %2016 = vadd.xlane.f32.xlu0 %v2015_v30 }
 0xb10   : > { %2126 = vrot.lane.b32.xlu1 %v4542_v36, %s3915_s22 }
 0xb14   : > { %2174 = vrot.lane.b32.xlu1 %v4553_v40, %s3915_s22 }
 0xb19   : > { %2078 = vrot.lane.b32.xlu0 %v4537_v29, %s3915_s22 }
 0xb1c   : > { %v2008_v31 = vpop.xlane.xlu1 %2007 }
 0xb1d   : > { %3298 = vrcp.f32 %v2008_v31 }
 0xb2a   : > { %v3299_v32 = vpop.eup %3298 }
 0xb2b   : > { %v2022_v33 = vmul.f32 %v3299_v32, %v3291_v10 }
 0xb2d   : > { %v2026_v34 = vpack.c.bf16 %v2022_v33, %v2022_v33  ;;  %2334 = vst.msk [vmem:[%s4588_s27] sm:$0xff] %vm1095_vm2, %v2022_v33 }
 0xb2f   : > { %3013 = vmatmul.mubr.msk.bf16.vlgmr.msra.gmra.mxu0 %vm1095_vm2, %v2026_v34  ;;  %v2840_v34 = vld [vmem:[#allocation26] ss:$0 sm:$0xff] }
 0xb30   : > { %3024 = vmatprep.mubr.msk.bf16.mxu0 %vm3912_vm0, %v3911_v0 }
 0xb84   : > { %v2011_v35 = vpop.xlane.xlu0 %2010 }
 0xb85   : > { %3300 = vrcp.f32 %v2011_v35 }
 0xb88   : > { %v2014_v36 = vpop.xlane.xlu1 %2013 }
 0xb89   : > { %3302 = vrcp.f32 %v2014_v36  ;;  %v2841_v36 = vld [vmem:[#allocation28] ss:$0 sm:$0xff] }
 0xb8c   : > { %v2127_v29 = vpop.permute.xlu1 %2126  ;;  %v2017_v37 = vpop.xlane.xlu0 %2016 }
 0xb8d   : > { %v2132_v38 = vsel %vm1339_vm3, %v2127_v29, 0  ;;  %3304 = vrcp.f32 %v2017_v37 }
 0xb8e   : > { %3023 = vmatpush3.bf16.msra.mxu0 %v2132_v38 }
 0xb8f   : > { %3034 = vmatprep.subr.bf16.mxu0 %v3911_v0 }
 0xb90   : > { %v2079_v39 = vpop.permute.xlu0 %2078  ;;  %v2175_v43 = vpop.permute.xlu1 %2174 }
 0xb91   : > { %v2084_v40 = vsel %vm1339_vm3, %v2079_v39, 0  ;;  %v2180_v46 = vsel %vm1339_vm3, %v2175_v43, 0  ;;  %v2842_v39 = vld [vmem:[%s4844_s23] ss:$0 sm:$0xff] }
 0xb92   : > { %v3301_v41 = vpop.eup %3300  ;;  %3017 = vmatpush3.bf16.msra.mxu1 %v2084_v40 }
 0xb93   : > { %3028 = vmatprep.subr.bf16.mxu1 %v3911_v0  ;;  %v2023_v42 = vmul.f32 %v3301_v41, %v3293_v24 }
 0xb95   : > { %v2027_v44 = vpack.c.bf16 %v2023_v42, %v2023_v42  ;;  %2335 = vst.msk [vmem:[%s4588_s27 + $0x8] sm:$0xff] %vm1095_vm2, %v2023_v42 }
 0xb96   : > { %v3303_v45 = vpop.eup %3302 }
 0xb97   : > { %3019 = vmatmul.mubr.msk.bf16.vlgmr.msra.gmra.mxu1 %vm1095_vm2, %v2027_v44  ;;  %v2024_v47 = vmul.f32 %v3303_v45, %v3295_v26 }
 0xb98   : > { %3029 = vmatpush3.bf16.msra.mxu1 %v2180_v46  ;;  %3030 = vmatprep.mubr.msk.bf16.mxu1 %vm3912_vm0, %v3911_v0 }
 0xb99   : > { %v2028_v48 = vpack.c.bf16 %v2024_v47, %v2024_v47  ;;  %2336 = vst.msk [vmem:[%s4588_s27 + $0x10] sm:$0xff] %vm1095_vm2, %v2024_v47  ;;  %3042 = vmatprep.subr.bf16.mxu1 %v3911_v0 }
 0xb9a   : > { %v3305_v49 = vpop.eup %3304 }
 0xb9b   : > { %3025 = vmatmul.mubr.msk.bf16.vlgmr.msra.gmra.mxu0 %vm1095_vm2, %v2028_v48  ;;  %v2025_v50 = vmul.f32 %v3305_v49, %v3297_v28  ;;  %v3270_v28 = vld [vmem:[%s4843_s19 + $0x8] sm:$0xff]  }
 0xb9c   : > { %3038 = vmatprep.mubr.msk.bf16.mxu0 %vm3912_vm0, %v3911_v0  ;;  %3035 = vmatpush3.bf16.msra.mxu0 %v3268_v56 }
 0xb9d   : > { %v2029_v51 = vpack.c.bf16 %v2025_v50, %v2025_v50  ;;  %2337 = vst.msk [vmem:[%s4588_s27 + $0x18] sm:$0xff] %vm1095_vm2, %v2025_v50  ;;  %3036 = vmatprep.subr.bf16.mxu0 %v3911_v0 }
 0xb9f   : > { %3031 = vmatmul.mubr.msk.bf16.vlgmr.msra.gmra.mxu1 %vm1095_vm2, %v2029_v51 }
 0xba0   : > { %3046 = vmatprep.mubr.msk.bf16.mxu1 %vm3912_vm0, %v3911_v0  ;;  %3037 = vmatpush3.bf16.msra.mxu0 %v3269_v57 }
 0xba1   : > { %3043 = vmatpush3.bf16.msra.mxu1 %v3270_v28 }
 0xba2   : > { %3044 = vmatprep.subr.bf16.mxu1 %v3911_v0 }
 0xbef   : > { %v2072_v52 = vpop.f32.mrf.mxu0 }
 0xbf1   : > { %v3014_v53 = vpop.f32.mrf.mxu0 }
 0xbf3   : > { %v2075_v54 = vpop.f32.mrf.mxu0 }
 0xbf5   : > { %v3015_v55 = vpop.f32.mrf.mxu0 }
 0xc57   : > { %v2120_v58 = vpop.f32.mrf.mxu1 }
 0xc58   : > { %2223 = vrot.lane.b32.xlu0 %v2120_v58, %s3918_s16 }
 0xc59   : > { %v3020_v59 = vpop.f32.mrf.mxu1 }
 0xc5b   : > { %v2123_v60 = vpop.f32.mrf.mxu1  ;;  %v2168_v61 = vpop.f32.mrf.mxu0 }
 0xc5c   : > { %2227 = vrot.lane.b32.xlu1 %v2168_v61, %s3919_s14  ;;  %s2855_s14 = sshll.u32 %s4065_s26, 9 }
 0xc5d   : > { %v3021_v62 = vpop.f32.mrf.mxu1  ;;  %v3026_v63 = vpop.f32.mrf.mxu0  ;;  %s4645_s18 = scalar_lea.hbm %s4846_s9, %s2855_s14 }
 0xc5f   : > { %v2171_v1 = vpop.f32.mrf.mxu0  ;;  %v2216_v2 = vpop.f32.mrf.mxu1 }
 0xc60   : > { %2231 = vrot.lane.b32.xlu0 %v2216_v2, %s3920_s29  ;;  %s2468_s29 = sshll.u32 %s4588_s27, 4  ;;  %s3766_s27 = scalar_lea.vmem %s3765_s3, 1024  ;;  %s4647_s29 = int_to_ptr.vmem [resolvable:$true] %s2468_s29 }
 0xc61   : > { %v3027_v4 = vpop.f32.mrf.mxu0  ;;  %v3032_v5 = vpop.f32.mrf.mxu1  ;;  %s3760_s7 = scalar_lea.vmem %s4647_s29, 512  ;;  %p3767_p7 = scmp.lt.s32.totalorder %s4647_s29, %s3765_s3 }
 0xc62   : > { %p3761_p4 = scmp.ne.s32.totalorder %s4647_s29, %s3760_s7  ;;  %p3768_p10 = scmp.lt.s32.totalorder %s3766_s27, %s3760_s7 }
 0xc63   : > { %v2219_v6 = vpop.f32.mrf.mxu1 }
 0xc64   : > { %p3762_p9 = pnand %p3761_p4, %p4847_p8  ;;  %p3769_p13 = por %p3768_p10, %p3767_p7 }
 0xc65   : > { %v3033_v7 = vpop.f32.mrf.mxu1 }
 0xc66   : > { %p3763_p6 = pneg %p3762_p9 }
 0xc68   : > { %p3770_p1 = pnand %p3769_p13, %p3763_p6 }
 0xcca   : > { %v2224_v3 = vpop.permute.xlu0 %2223 }
 0xccb   : > { %v2234_v9 = vsel %vm1095_vm2, %v2072_v52, %v2224_v3 }
 0xcce   : > { %v2228_v8 = vpop.permute.xlu1 %2227 }
 0xccf   : > { %v2235_v10 = vsel %vm1540_vm4, %v2234_v9, %v2228_v8 }
 0xcd2   : > { %v2232_v11 = vpop.permute.xlu0 %2231 }
 0xcd3   : > { %v2236_v13 = vsel %vm1542_vm5, %v2235_v10, %v2232_v11 }
 0xcd4   : > { %v2237_v14 = vpack.c.bf16 %v2236_v13, %v2236_v13 }
 0xcd6   : > { %3039 = vmatmul.mubr.msk.bf16.vlgmr.msra.gmra.mxu0 %vm1041_vm1, %v2237_v14 }
 0xd96   : > { %v2298_v17 = vpop.f32.mrf.mxu0 }
 0xd97   : > { %v2299_v18 = vadd.f32 %v2836_v16, %v2298_v17 }
 0xd98   : > { %v3040_v15 = vpop.f32.mrf.mxu0 }
 0xd99   : > { %v2304_v19 = vadd.f32 %v2299_v18, %v4519_v12  ;;  %v3271_v12 = vld [vmem:[%s4843_s19] sm:$0xff]  }
 0xd9a   : > { %v2301_v20 = vpop.f32.mrf.mxu0  ;;  %3045 = vmatpush3.bf16.msra.mxu1 %v3271_v12 }
 0xd9b   : > { %v2307_v21 = vsel %vm1041_vm1, %v2304_v19, 0.0 }
 0xd9c   : > { %2308 = vadd.xlane.f32.xlu1 %v2307_v21  ;;  %v3041_v22 = vpop.f32.mrf.mxu0 }
 0xe25   : > { %v2309_v23 = vpop.xlane.xlu1 %2308 }
 0xe26   : > { %v2310_v24 = vmul.f32 0.03125, %v2309_v23 }
 0xe28   : > { %v2311_v25 = vsub.f32 %v2304_v19, %v2310_v24 }
 0xe2a   : > { %v2312_v26 = vmul.f32 %v2311_v25, %v2311_v25 }
 0xe2c   : > { %v2313_v27 = vsel %vm1041_vm1, %v2312_v26, 0.0 }
 0xe2d   : > { %2314 = vadd.xlane.f32.xlu0 %v2313_v27 }
 0xeb6   : > { %v2315_v30 = vpop.xlane.xlu0 %2314 }
 0xeb7   : > { %v2316_v31 = vmul.f32 0.03125, %v2315_v30 }
 0xeb9   : > { %v2317_v32 = vadd.f32 1e-05, %v2316_v31 }
 0xebb   : > { %3306 = vrsqrt.f32 %v2317_v32 }
 0xec8   : > { %v3307_v33 = vpop.eup %3306 }
 0xec9   : > { %v2319_v35 = vmul.f32 %v3307_v33, %v2311_v25 }
 0xecb   : > { %v2326_v29 = vmul.f32 %v2840_v34, %v2319_v35 }
 0xecd   : > { %v2333_v37 = vadd.f32 %v2841_v36, %v2326_v29 }
 0xecf   : > { %v2338_v38 = vpack.c.bf16 %v2333_v37, %v2333_v37 }
 0xed1   : > { %3047 = vmatmul.mubr.msk.bf16.vlgmr.msra.gmra.mxu1 %vm1041_vm1, %v2338_v38 }
 0xf91   : > { %v2399_v0 = vpop.f32.mrf.mxu1 }
 0xf92   : > { %v2400_v40 = vadd.f32 %v2842_v39, %v2399_v0 }
 0xf93   : > { %v3048_v41 = vpop.f32.mrf.mxu1 }
 0xf94   : > { %v2405_v42 = vadd.f32 %v2400_v40, %v2333_v37 }
 0xf95   : > { %v2402_v43 = vpop.f32.mrf.mxu1 }
 0xf96   : > { %v2408_v44 = vsel %vm1041_vm1, %v2405_v42, 0.0 }
 0xf97   : > { %2409 = vadd.xlane.f32.xlu0 %v2408_v44  ;;  %v3049_v45 = vpop.f32.mrf.mxu1 }
0x1020   : > { %v2410_v46 = vpop.xlane.xlu0 %2409 }
0x1021   : > { %v2411_v47 = vmul.f32 0.03125, %v2410_v46 }
0x1023   : > { %v2412_v48 = vsub.f32 %v2405_v42, %v2411_v47 }
0x1025   : > { %v2413_v49 = vmul.f32 %v2412_v48, %v2412_v48 }
0x1027   : > { %v2414_v50 = vsel %vm1041_vm1, %v2413_v49, 0.0 }
0x1028   : > { %2415 = vadd.xlane.f32.xlu1 %v2414_v50 }
0x1029   : > { %3773 = shalt.err (!%p3770_p1)
}
0x102a   : > { %s3774_s0 = scalar_lea.hbm %s4645_s18, 512  ;;  %s3778_s23 = scalar_lea.hbm %s4846_s9, 1024 }
0x102b   : > { %p3775_p0 = scmp.ne.s32.totalorder %s4645_s18, %s3774_s0  ;;  %p3779_p11 = scmp.lt.s32.totalorder %s4645_s18, %s4846_s9 }
0x102c   : > { %p3780_p5 = scmp.lt.s32.totalorder %s3778_s23, %s3774_s0 }
0x102d   : > { %p3776_p12 = pnand %p3775_p0, %p4847_p8 }
0x102e   : > { %p3781_p3 = por %p3780_p5, %p3779_p11 }
0x102f   : > { %p3777_p2 = pneg %p3776_p12 }
0x1031   : > { %p3782_p4 = pnand %p3781_p3, %p3777_p2 }
0x1033   : > { %3785 = shalt.err (!%p3782_p4)
}
0x1034   : > { %s3922_s5 = smov 128   ;;  %s4848_s3 = sld [smem:[#allocation66_spill]] }
0x1035   : > { %3111 = dma.vmem_to_hbm [thread:$0]  (%p4847_p8), %s4647_s29, 512, %s4645_s18, %s2442_s2, %s3922_s5, %s3922_s5, %s3918_s16  }
0x1036   : > { %s4849_s20 = sld [smem:[#allocation67_spill]]  ;;  %s2850_s22 = sshll.u32 %s4065_s26, 7 }
0x1037   : > { %s1004_s23 = scalar_lea.vmem [#allocation29], %s4346_s6  ;;  %s4850_s18 = sld [smem:[#allocation68_spill]] }
0x1038   : > { %s2455_s14 = sshll.u32 %s1004_s23, 4  ;;  %s2437_s1 = scalar_lea.sflag [#allocation4], %s4343_s24  ;;  %s2456_s14 = int_to_ptr.vmem [resolvable:$true] %s2455_s14 }
0x1039   : > { %s3786_s5 = scalar_lea.vmem %s2456_s14, 128  ;;  %s3923_s7 = smov [#allocation29]  }
0x103a   : > { %v2846_v55 = vld [vmem:[%s4848_s3] ss:$0 sm:$0xff]  ;;  %p3787_p9 = scmp.ne.s32.totalorder %s2456_s14, %s3786_s5  ;;  %s3790_s4 = sshll.u32 %s3923_s7, 4  ;;  %s3791_s4 = int_to_ptr.vmem [resolvable:$false] %s3790_s4 }
0x103b   : > { %s3792_s26 = scalar_lea.vmem %s3791_s4, 256  ;;  %p3793_p10 = scmp.lt.s32.totalorder %s2456_s14, %s3791_s4 }
0x103c   : > { %v2847_v57 = vld [vmem:[%s4849_s20] ss:$0 sm:$0xff]  ;;  %p3788_p6 = pnand %p3787_p9, %p4847_p8  ;;  %p3794_p13 = scmp.lt.s32.totalorder %s3792_s26, %s3786_s5 }
0x103d   : > { %s2453_s2 = scalar_lea.hbm %s4850_s18, %s2850_s22 }
0x103e   : > { %p3789_p7 = pneg %p3788_p6  ;;  %p3795_p1 = por %p3794_p13, %p3793_p10 }
0x1040   : > { %p3796_p0 = pnand %p3795_p1, %p3789_p7 }
0x10b1   : > { %v2416_v51 = vpop.xlane.xlu1 %2415 }
0x10b2   : > { %v2417_v52 = vmul.f32 0.03125, %v2416_v51 }
0x10b4   : > { %v2418_v53 = vadd.f32 1e-05, %v2417_v52 }
0x10b6   : > { %3308 = vrsqrt.f32 %v2418_v53 }
0x10c3   : > { %v3309_v54 = vpop.eup %3308 }
0x10c4   : > { %v2420_v56 = vmul.f32 %v3309_v54, %v2412_v48 }
0x10c6   : > { %v2427_v58 = vmul.f32 %v2846_v55, %v2420_v56 }
0x10c8   : > { %v2434_v59 = vadd.f32 %v2847_v57, %v2427_v58 }
0x10ca   : > { %2435 = vst.msk [vmem:[%s1004_s23] sm:$0xff] %vm1041_vm1, %v2434_v59 }
0x10cb   : > { %3799 = shalt.err (!%p3796_p0)
}
0x10cc   : > { %s3800_s6 = scalar_lea.hbm %s2453_s2, 128  ;;  %s3804_s27 = scalar_lea.hbm %s4850_s18, 256 }
0x10cd   : > { %p3801_p12 = scmp.ne.s32.totalorder %s2453_s2, %s3800_s6  ;;  %p3805_p5 = scmp.lt.s32.totalorder %s2453_s2, %s4850_s18 }
0x10ce   : > { %p3806_p3 = scmp.lt.s32.totalorder %s3804_s27, %s3800_s6 }
0x10cf   : > { %p3802_p2 = pnand %p3801_p12, %p4847_p8 }
0x10d0   : > { %p3807_p4 = por %p3806_p3, %p3805_p5 }
0x10d1   : > { %p3803_p11 = pneg %p3802_p2 }
0x10d3   : > { %p3808_p9 = pnand %p3807_p4, %p3803_p11 }
0x10d5   : > { %3811 = shalt.err (!%p3808_p9)
}
0x10d6   : > { %3110 = dma.vmem_to_hbm [thread:$0]  (%p4847_p8), %s2456_s14, 128, %s2453_s2, %s2437_s1  }
0x10d7 PF: > { %s4851_s22 = sld [smem:[#allocation44_spill]]  ;;  %p4854_p7 = scmp.ge.s32.totalorder %s3890_s25, 2 }
0x10d8   : > { %s4852_s23 = sld [smem:[#allocation49_spill]] }
0x10dd   : > { %s2483_s16 = sand.u32 1, %s4851_s22  }
0x10de   : > { %p4853_p6 = scmp.ne.s32.totalorder %s4852_s23, 0  ;;  %s2484_s29 = scalar_lea.sflag [#allocation4], %s2483_s16 }
0x10e0   : > { %p3168_p10 = pnand %p4854_p7, %p4853_p6 }
0x10e2   : > { %p3169_p13 = pneg %p3168_p10 }
0x10e4   : > { %3869 = dma.done.wait (%p3169_p13), %s2484_s29, 128  }
0x10e5   : > { %3871 = vsyncadd (%p3169_p13), %s2484_s29, 4294967168  ;;  %s2493_s5 = scalar_lea.sflag [#allocation31], %s2483_s16 }
0x10e6   : > { %3873 = dma.done.wait (%p3169_p13), %s2493_s5, 512  }
0x10e7   : > { %3875 = vsyncadd (%p3169_p13), %s2493_s5, 4294966784  ;;  %s4855_s25 = sld [smem:[#allocation46_spill]]  ;;  %s4858_s4 = smov %s3882_s30 }
0x10e8   : > { %s4856_s7 = sld [smem:[#allocation45_spill]] }
0x10e9   : > { %s4857_s24 = sld [smem:[#allocation47_spill]] }
0x10ed   : > { %p52_p8 = scmp.ge.s32.totalorder %s4855_s25, 4  }
0x10ee   : > { %s4859_s30 = smov %s4856_s7 }
0x10ef   :  { %54 = sbr.rel (!%p52_p8) target bundleno = 38 (0x26), region = 259 }
0x10f4   :  { %2498 = vsyncpa [#allocation3], 1 }
0x10f5   :  { %2500 = vsyncpa [#allocation3 + $0x1], 1 }
0x10f6   :  { %2501 = vsyncpa [#allocation6], 1 }
0x10f7   :  { %2503 = vsyncpa [#allocation6 + $0x1], 1 }
0x10f8   :  { %2504 = vsyncpa [#allocation9], 1 }
0x10f9   :  { %2506 = vsyncpa [#allocation9 + $0x1], 1 }
0x10fa   :  { %2507 = vsyncpa [#allocation12], 1 }
0x10fb   :  { %2508 = vsyncpa [#allocation15], 1 }
0x10fc   :  { %2509 = vsyncpa [#allocation18], 1 }
0x10fd   :  { %2510 = vsyncpa [#allocation21], 1 }
0x10fe   :  { %2511 = vsyncpa [#allocation24], 1 }
0x10ff   :  { %2512 = vsyncpa [#allocation27], 1 }
0x1100   :  { %2513 = vsyncpa [#allocation4], 1 }
0x1101   :  { %2515 = vsyncpa [#allocation4 + $0x1], 1 }
0x1102   :  { %2516 = vsyncpa [#allocation31], 1 }
0x1103   :  { %2518 = vsyncpa [#allocation31 + $0x1], 1 }

</bundles_post_ra>
